<compile_context>
chip_gen: v5e
topology: v5e:2x2
jax: 0.10.0
libtpu: 0.0.40
codegen_flags: <defaults>
</compile_context>

<pallas_src>
import functools

import jax
import jax.numpy as jnp
from jax.experimental import pallas as pl
from jax.experimental.pallas import tpu as pltpu

F32 = jnp.float32

# Explicit scoped-VMEM budget: above every default, below v7x's 64 MiB physical.
VMEM_LIMIT = 48 * 1024 * 1024

TM_DEC_CAP = 512     # decoder mega kernel: bounds live [TM,32/64] ranges (spills)
TM_FRONT_CAP = 1024  # patch-embed kernel: pure DMA-bound matmul, amortize steps


def _pick_tm(pix, cap):
    """Pixel-tile: multiple of 8, aims for >= 2 tiles (megacore split), capped.
    Callers zero-pad the pixel axis up to a multiple of the tile, so any PIX works
    (no untiled single-block fallback)."""
    if pix <= 16:
        return 8
    tm = ((pix + 1) // 2 + 7) // 8 * 8
    return min(cap, tm)


def _pad_rows(x, pix_pad, axis=0):
    pad = pix_pad - x.shape[axis]
    if pad == 0:
        return x
    widths = [(0, 0)] * x.ndim
    widths[axis] = (0, pad)
    return jnp.pad(x, widths)


# ---------------------------------------------------------------------------
# In-kernel helpers
# ---------------------------------------------------------------------------

def _erf(x):
    # Abramowitz & Stegun 7.1.26 (max abs err ~1.5e-7): exact-GELU-grade erf built
    # only from ops with guaranteed Mosaic lowerings (abs / div / exp / where).
    # TODO(synk): switch to lax.erf if/when Mosaic exposes a direct erf lowering.
    ax = jnp.abs(x)
    t = 1.0 / (1.0 + 0.3275911 * ax)
    poly = ((((1.061405429 * t - 1.453152027) * t + 1.421413741) * t
             - 0.284496736) * t + 0.254829592) * t
    y = 1.0 - poly * jnp.exp(-ax * ax)
    return jnp.where(x < 0.0, -y, y)


def _gelu(x):
    # PyTorch nn.GELU() default = exact (erf) GELU.
    return 0.5 * x * (1.0 + _erf(x * 0.7071067811865476))


def _layer_norm(x, w, b, eps):
    # SAM LayerNorm2d: normalize over channels, biased variance, rsqrt on the EUP.
    u = jnp.mean(x, axis=-1, keepdims=True)
    xc = x - u
    var = jnp.mean(xc * xc, axis=-1, keepdims=True)
    return xc * jax.lax.rsqrt(var + eps) * w + b


# ---------------------------------------------------------------------------
# Pallas kernels
# ---------------------------------------------------------------------------

def _dark_maxpool_kernel(x_ref, o_ref):
    # One image per grid step: -max_pool2d((-min_c x).unsqueeze(1), 3, 1, 1),
    # i.e. exactly the `masks` argument handed to the prompt encoder.
    # Boundary masks come from in-kernel iota (no HBM mask stream).
    x = x_ref[0]                                    # [C, H, W]
    C, H, W = x.shape
    dark = x[0]
    for c in range(1, C):
        dark = jnp.minimum(dark, x[c])
    neg = -dark                                     # [H, W]
    NEG = jnp.float32(-3.0e38)
    rows = jax.lax.broadcasted_iota(jnp.int32, (H, W), 0)
    cols = jax.lax.broadcasted_iota(jnp.int32, (H, W), 1)
    up = jnp.where(rows > 0, pltpu.roll(neg, shift=1, axis=0), NEG)        # neg[r-1]
    down = jnp.where(rows < H - 1, pltpu.roll(neg, shift=H - 1, axis=0), NEG)  # neg[r+1]
    v = jnp.maximum(jnp.maximum(up, down), neg)
    left = jnp.where(cols > 0, pltpu.roll(v, shift=1, axis=1), NEG)        # v[:,c-1]
    right = jnp.where(cols < W - 1, pltpu.roll(v, shift=W - 1, axis=1), NEG)   # v[:,c+1]
    o_ref[0] = -jnp.maximum(jnp.maximum(left, right), v)


def _patch_embed_kernel(col_ref, w_ref, b_ref, o_ref):
    # Image-encoder patch-embed stand-in: one [TM,48] @ [48,64] matmul + bias.
    o_ref[...] = (jnp.dot(col_ref[...], w_ref[...],
                          preferred_element_type=jnp.float32) + b_ref[...])


def _detail_decoder_kernel(eps,
                           d_ref, x0_ref, cm_ref,
                           lnw_ref, lnb_ref,
                           convw_ref, convb_ref, projw_ref, projb_ref,
                           pmw_ref, pmb_ref,
                           n1w_ref, n1b_ref,
                           mw1_ref, mb1_ref, mw2_ref, mb2_ref,
                           n2w_ref, n2b_ref,
                           fused_ref):
    x0 = x0_ref[...]
    # DetailCapture.conv (1x1) and the encoder-projection stand-in: two separate
    # [TM,64]@[64,32] matmuls (MXU has slack here; avoids a mid-vreg lane split).
    xc = (jnp.dot(x0, convw_ref[...], preferred_element_type=jnp.float32)
          + convb_ref[...])
    x_emb = (jnp.dot(x0, projw_ref[...], preferred_element_type=jnp.float32)
             + projb_ref[...])
    # Prompt-encoder mask-downscale stand-in (dense prompt embeddings), in-kernel:
    # reads 16 f32/pixel instead of round-tripping a 32 f32/pixel dense buffer.
    dense = (jnp.dot(cm_ref[...], pmw_ref[...], preferred_element_type=jnp.float32)
             + pmb_ref[...])

    # Three DConv branches: pre-LN activations arrive from glue ([TM,32] each —
    # the grouped deform contraction is folded into the bilinear gather);
    # LayerNorm2d + GELU + sum stay fused here.
    acc = xc
    for br in range(d_ref.shape[0]):
        acc = acc + _gelu(_layer_norm(d_ref[br], lnw_ref[br], lnb_ref[br], eps))

    o = _layer_norm(acc, n1w_ref[...], n1b_ref[...], eps)                 # norm1
    h = _gelu(jnp.dot(o, mw1_ref[...], preferred_element_type=jnp.float32)
              + mb1_ref[...])                                             # MLP lin1+GELU
    m = (jnp.dot(h, mw2_ref[...], preferred_element_type=jnp.float32)
         + mb2_ref[...])                                                  # MLP lin2
    details = _layer_norm(m + o, n2w_ref[...], n2b_ref[...], eps)         # norm2

    fused_ref[...] = x_emb + dense + details                              # decoder fuse


# ---------------------------------------------------------------------------
# pallas_call wrappers
# ---------------------------------------------------------------------------

def pallas_dark_channel_mask(img):
    B, C, H, W = img.shape
    # TODO(synk): at real SAM resolutions (>=1024x1024) also tile over row blocks
    # with a 1-row halo; per-image blocks already fit 48 MiB VMEM and give both
    # v7x TensorCores work via the parallel batch grid.
    out = pl.pallas_call(
        _dark_maxpool_kernel,
        out_shape=jax.ShapeDtypeStruct((B, H, W), F32),
        grid=(B,),
        in_specs=[pl.BlockSpec((1, C, H, W), lambda b: (b, 0, 0, 0))],
        out_specs=pl.BlockSpec((1, H, W), lambda b: (b, 0, 0)),
        compiler_params=pltpu.CompilerParams(
            dimension_semantics=("parallel",), vmem_limit_bytes=VMEM_LIMIT),
    )(img.astype(F32))
    return out.reshape(B, 1, H, W)


def pallas_patch_embed(col_img, w, b, tm):
    pixp, K = col_img.shape
    N = w.shape[1]
    return pl.pallas_call(
        _patch_embed_kernel,
        out_shape=jax.ShapeDtypeStruct((pixp, N), F32),
        grid=(pixp // tm,),
        in_specs=[pl.BlockSpec((tm, K), lambda i: (i, 0)),
                  pl.BlockSpec((K, N), lambda i: (0, 0)),
                  pl.BlockSpec((1, N), lambda i: (0, 0))],
        out_specs=pl.BlockSpec((tm, N), lambda i: (i, 0)),
        compiler_params=pltpu.CompilerParams(
            dimension_semantics=("parallel",), vmem_limit_bytes=VMEM_LIMIT),
    )(col_img, w, b)


def pallas_detail_decoder(d_all, x0_pix, col_msk, P, tm, eps=1e-6):
    nb, pixp, out_ch = d_all.shape
    Cin = x0_pix.shape[1]
    Km = col_msk.shape[1]
    D = P['detail']
    mlp_dim = D['mlp_w1'].shape[1]
    cost = pl.CostEstimate(
        flops=2 * pixp * (2 * Cin * out_ch + Km * out_ch
                          + out_ch * mlp_dim + mlp_dim * out_ch),
        transcendentals=pixp * (nb * out_ch + mlp_dim + out_ch + 5),
        bytes_accessed=4 * pixp * (nb * out_ch + Cin + Km + out_ch),
    )
    kernel = functools.partial(_detail_decoder_kernel, eps)
    return pl.pallas_call(
        kernel,
        out_shape=jax.ShapeDtypeStruct((pixp, out_ch), F32),
        grid=(pixp // tm,),
        in_specs=[
            pl.BlockSpec((nb, tm, out_ch), lambda i: (0, i, 0)),   # branch pre-LN acts
            pl.BlockSpec((tm, Cin), lambda i: (i, 0)),             # x0 pixels
            pl.BlockSpec((tm, Km), lambda i: (i, 0)),              # mask patches
            pl.BlockSpec((nb, 1, out_ch), lambda i: (0, 0, 0)),    # branch LN w
            pl.BlockSpec((nb, 1, out_ch), lambda i: (0, 0, 0)),    # branch LN b
            pl.BlockSpec((Cin, out_ch), lambda i: (0, 0)),         # 1x1 conv w
            pl.BlockSpec((1, out_ch), lambda i: (0, 0)),           # 1x1 conv b
            pl.BlockSpec((Cin, out_ch), lambda i: (0, 0)),         # encoder proj w
            pl.BlockSpec((1, out_ch), lambda i: (0, 0)),           # encoder proj b
            pl.BlockSpec((Km, out_ch), lambda i: (0, 0)),          # prompt mask w
            pl.BlockSpec((1, out_ch), lambda i: (0, 0)),           # prompt mask b
            pl.BlockSpec((1, out_ch), lambda i: (0, 0)),           # norm1 w
            pl.BlockSpec((1, out_ch), lambda i: (0, 0)),           # norm1 b
            pl.BlockSpec((out_ch, mlp_dim), lambda i: (0, 0)),     # mlp lin1 w
            pl.BlockSpec((1, mlp_dim), lambda i: (0, 0)),          # mlp lin1 b
            pl.BlockSpec((mlp_dim, out_ch), lambda i: (0, 0)),     # mlp lin2 w
            pl.BlockSpec((1, out_ch), lambda i: (0, 0)),           # mlp lin2 b
            pl.BlockSpec((1, out_ch), lambda i: (0, 0)),           # norm2 w
            pl.BlockSpec((1, out_ch), lambda i: (0, 0)),           # norm2 b
        ],
        out_specs=pl.BlockSpec((tm, out_ch), lambda i: (i, 0)),
        compiler_params=pltpu.CompilerParams(
            dimension_semantics=("parallel",), vmem_limit_bytes=VMEM_LIMIT),
        cost_estimate=cost,
    )(d_all, x0_pix, col_msk,
      D['ln_w_all'], D['ln_b_all'],
      P['conv_w'], P['conv_b'], P['enc_proj_w'], P['enc_proj_b'],
      P['prompt_mask_w'], P['prompt_mask_b'],
      D['n1_w'], D['n1_b'],
      D['mlp_w1'], D['mlp_b1'], D['mlp_w2'], D['mlp_b2'],
      D['n2_w'], D['n2_b'])


# ---------------------------------------------------------------------------
# Plain-JAX glue
# ---------------------------------------------------------------------------

def patchify4(x):
    """NCHW -> [B*Ho*Wo, C*16] for a 4x4 / stride-4 patch conv; feature index
    = c*16 + i*4 + j (matches a torch conv weight reshaped as w.reshape(O, C*16).T).
    Non-overlapping, so this is a pure layout op (no byte duplication)."""
    B, C, H, W = x.shape
    Ho, Wo = H // 4, W // 4
    x = x.reshape(B, C, Ho, 4, Wo, 4).transpose(0, 2, 4, 1, 3, 5)
    return x.reshape(B * Ho * Wo, C * 16).astype(F32), Ho, Wo


def bilinear_sample(x, py, px):
    """Bilinear sample x[B,C,H,W] at float coords (py, px)[B,H,W]; zeros outside."""
    B, C, H, W = x.shape
    y0f, x0f = jnp.floor(py), jnp.floor(px)
    y0, x0 = y0f.astype(jnp.int32), x0f.astype(jnp.int32)
    wy = (py - y0f)[:, None]
    wx = (px - x0f)[:, None]

    def gather(yi, xi):
        valid = (yi >= 0) & (yi < H) & (xi >= 0) & (xi < W)
        yc = jnp.clip(yi, 0, H - 1)
        xc = jnp.clip(xi, 0, W - 1)
        vals = jax.vmap(lambda xb, ycb, xcb: xb[:, ycb, xcb])(x, yc, xc)
        return jnp.where(valid[:, None], vals, 0.0)

    v00 = gather(y0, x0)
    v01 = gather(y0, x0 + 1)
    v10 = gather(y0 + 1, x0)
    v11 = gather(y0 + 1, x0 + 1)
    return ((1 - wy) * (1 - wx) * v00 + (1 - wy) * wx * v01
            + wy * (1 - wx) * v10 + wy * wx * v11)


def deform_conv_grouped(x, offsets, w, k, padding, dilation):
    """torchvision-style DeformConv2d (offset_groups=1, stride=1, groups=G) with
    the grouped tap x channel contraction fused into the gather, so only a
    [B, G, H, W] pre-LN activation is ever materialized (no [PIX, 576] slab)."""
    B, C, H, W = x.shape
    G, cpg = w.shape[0], w.shape[1]
    ys = jnp.arange(H, dtype=F32)[None, :, None]
    xs = jnp.arange(W, dtype=F32)[None, None, :]
    out = jnp.zeros((B, G, H, W), F32)
    for i in range(k):
        for j in range(k):
            t = i * k + j
            dy = offsets[:, 2 * t]
            dx = offsets[:, 2 * t + 1]
            py = ys - padding + i * dilation + dy
            px = xs - padding + j * dilation + dx
            v = bilinear_sample(x, py, px)                    # [B, C, H, W]
            v = v.reshape(B, G, cpg, H, W)
            out = out + jnp.einsum('bgchw,gc->bghw', v, w[:, :, i, j])
    return out


# ---------------------------------------------------------------------------
# BaseExtendSam.forward
# ---------------------------------------------------------------------------

def base_extend_sam_forward(img, P):
    B = img.shape[0]

    # dark channel (min over C) + 3x3 max-pool (stride 1, pad 1) + negation — Pallas
    masks = pallas_dark_channel_mask(img)                       # [B, 1, H, W]

    # --- BaseImgEncodeAdapter + BasePromptEncodeAdapter front end ---
    # TODO(synk): the real SAM ViT-B image encoder / prompt encoder
    # (sam_model_registry) are not part of the provided source; deterministic
    # patch-embed / mask-downscale stand-ins are used instead.
    col_img, H0, W0 = patchify4(img)                            # [PIX, 48]
    col_msk, _, _ = patchify4(masks)                            # [PIX, 16]
    PIX = B * H0 * W0

    tm_dec = _pick_tm(PIX, TM_DEC_CAP)
    tm_front = min(TM_FRONT_CAP, 2 * tm_dec) if tm_dec == TM_DEC_CAP else tm_dec
    pix_pad = -(-PIX // tm_front) * tm_front                    # multiple of both TMs

    x0_pad = pallas_patch_embed(_pad_rows(col_img, pix_pad),
                                P['enc_patch_w'], P['enc_patch_b'], tm_front)
    x0_pix = x0_pad[:PIX]
    x0 = x0_pix.reshape(B, H0, W0, -1).transpose(0, 3, 1, 2)    # NCHW [B, 64, H0, W0]

    # points=None, boxes=None -> empty sparse embeddings (unused by the stand-in).

    # --- DetailCapture: the three DConv branches ---
    # Offset convs (conv1) run straight from x0 via XLA's dilated conv — no
    # [3, PIX, 576] im2col slab round-trips HBM.
    # TODO(synk): at real SAM resolutions fold these into a halo'd Pallas kernel
    # with shifted in-kernel loads.
    dils = (1, 9, 12)
    d_branches = []
    for bi, d in enumerate(dils):
        off = jax.lax.conv_general_dilated(
            x0, P['w_off_all'][bi], window_strides=(1, 1),
            padding=((d, d), (d, d)), rhs_dilation=(d, d),
            dimension_numbers=('NCHW', 'OIHW', 'NCHW'))         # [B, 18, H0, W0]
        # TODO(synk): DeformConv2d's data-dependent bilinear gather has no clean
        # Pallas/TPU vector equivalent; it stays plain-JAX glue.
        y = deform_conv_grouped(x0, off, P['w_def_all'][bi], 3, d, d)  # [B,32,H0,W0]
        d_branches.append(y.transpose(0, 2, 3, 1).reshape(PIX, -1))
    d_all = jnp.stack(d_branches)                               # [3, PIX, 32]

    # --- fused DetailCapture tail + prompt dense embedding + decoder stand-in ---
    # TODO(synk): SAM's two-way-transformer mask decoder isn't provided; the
    # stand-in fuses image embeddings + dense prompt embeddings + details.
    fused = pallas_detail_decoder(
        _pad_rows(d_all, pix_pad, axis=1), x0_pad,
        _pad_rows(col_msk, pix_pad), P, tm_dec)[:PIX]           # [PIX, 32]

    # Tiny 32x3 heads stay in XLA (fused already round-trips for the mean-pool).
    low = fused @ P['dec_mask_w'] + P['dec_mask_b']             # [PIX, 3]
    low_res_masks = low.reshape(B, H0, W0, 3).transpose(0, 3, 1, 2)
    pooled = fused.reshape(B, H0 * W0, -1).mean(axis=1)         # [B, 32]
    iou_predictions = pooled @ P['dec_iou_w'] + P['dec_iou_b']
    return low_res_masks, iou_predictions


# ---------------------------------------------------------------------------
# Deterministic parameter initialization
# ---------------------------------------------------------------------------

def init_params():
    keys = iter(jax.random.split(jax.random.PRNGKey(0), 64))

    def nrm(shape, scale):
        return scale * jax.random.normal(next(keys), shape, dtype=F32)

    in_ch, out_ch = 64, 32            # DetailCapture(64, 32)

    # DConv.conv1 (offset conv, bias=False): OIHW [18, 64, 3, 3] per branch.
    w_off_all = jnp.stack([nrm((18, in_ch, 3, 3), 0.02) for _ in range(3)])

    # DeformConv2d (groups=out_ch, bias=False): grouped weight [32, 2, 3, 3] per
    # branch, contracted in glue (no dense zero-expanded matmul any more).
    w_def_all = jnp.stack([nrm((out_ch, in_ch // out_ch, 3, 3), 0.15)
                           for _ in range(3)])

    detail = dict(
        ln_w_all=jnp.ones((3, 1, out_ch), F32),       # per-branch LayerNorm2d
        ln_b_all=jnp.zeros((3, 1, out_ch), F32),
        n1_w=jnp.ones((1, out_ch), F32), n1_b=jnp.zeros((1, out_ch), F32),
        n2_w=jnp.ones((1, out_ch), F32), n2_b=jnp.zeros((1, out_ch), F32),
        mlp_w1=nrm((out_ch, 2 * out_ch), 0.1), mlp_b1=nrm((1, 2 * out_ch), 0.02),
        mlp_w2=nrm((2 * out_ch, out_ch), 0.1), mlp_b2=nrm((1, out_ch), 0.02),
    )

    return dict(
        enc_patch_w=nrm((3 * 16, in_ch), 0.15),                 # [48, 64]
        enc_patch_b=nrm((in_ch,), 0.02).reshape(1, in_ch),
        prompt_mask_w=nrm((16, out_ch), 0.15),                  # [16, 32]
        prompt_mask_b=nrm((out_ch,), 0.02).reshape(1, out_ch),
        w_off_all=w_off_all,
        w_def_all=w_def_all,
        conv_w=nrm((in_ch, out_ch), 0.1),                       # DetailCapture.conv
        conv_b=nrm((out_ch,), 0.02).reshape(1, out_ch),
        enc_proj_w=nrm((in_ch, out_ch), 0.1),                   # encoder proj stand-in
        enc_proj_b=nrm((out_ch,), 0.02).reshape(1, out_ch),
        dec_mask_w=nrm((out_ch, 3), 0.1),
        dec_mask_b=nrm((3,), 0.02),
        dec_iou_w=nrm((out_ch, 3), 0.1),
        dec_iou_b=nrm((3,), 0.02),
        detail=detail,
    )


if __name__ == "__main__":
    params = init_params()
    img = jax.random.normal(jax.random.PRNGKey(0), (2, 3, 32, 32), dtype=F32)
    fwd = jax.jit(lambda im: base_extend_sam_forward(im, params))
    low_res_masks, iou_predictions = fwd(img)
    jax.block_until_ready((low_res_masks, iou_predictions))
    assert low_res_masks.shape == (2, 3, 8, 8)
    assert iou_predictions.shape == (2, 3)
    assert bool(jnp.all(jnp.isfinite(low_res_masks)))
    assert bool(jnp.all(jnp.isfinite(iou_predictions)))
    print("KERNEL_OK")
</pallas_src>

<mosaic_0001>
module attributes {stable_mosaic.version = 11 : i64} {
  func.func @_patch_embed_kernel(%arg0: i32, %arg1: memref<64x48xf32, #tpu.memory_space<vmem>>, %arg2: memref<48x64xf32, #tpu.memory_space<vmem>>, %arg3: memref<1x64xf32, #tpu.memory_space<vmem>>, %arg4: memref<64x64xf32, #tpu.memory_space<vmem>>) attributes {dimension_semantics = [#tpu.dimension_semantics<parallel>], iteration_bounds = array<i64: 2>, scalar_prefetch = 0 : i64, scratch_operands = 0 : i64, tpu.core_type = #tpu.core_type<tc>, window_params = [{transform_indices = @transform_0, window_bounds = array<i64: 64, 48>}, {pipeline_mode = #tpu.pipeline_mode<synchronous>, transform_indices = @transform_1, window_bounds = array<i64: 48, 64>}, {pipeline_mode = #tpu.pipeline_mode<synchronous>, transform_indices = @transform_2, window_bounds = array<i64: 1, 64>}, {transform_indices = @transform_3, window_bounds = array<i64: 64, 64>}]} {
    %c0 = arith.constant 0 : index
    %c0_0 = arith.constant 0 : index
    %0 = vector.load %arg1[%c0, %c0_0] : memref<64x48xf32, #tpu.memory_space<vmem>>, vector<64x48xf32>
    %c0_1 = arith.constant 0 : index
    %c0_2 = arith.constant 0 : index
    %1 = vector.load %arg2[%c0_1, %c0_2] : memref<48x64xf32, #tpu.memory_space<vmem>>, vector<48x64xf32>
    %cst = arith.constant dense<0.000000e+00> : vector<64x64xf32>
    %2 = tpu.matmul %0, %1, %cst {dimension_numbers = #tpu.dot_dimension_numbers<[1], [0], [0], [1], [0, 0, 1, 1], [], []>} : vector<64x48xf32>, vector<48x64xf32>, vector<64x64xf32> -> vector<64x64xf32>
    %c0_3 = arith.constant 0 : index
    %c0_4 = arith.constant 0 : index
    %3 = vector.load %arg3[%c0_3, %c0_4] : memref<1x64xf32, #tpu.memory_space<vmem>>, vector<1x64xf32>
    %4 = vector.broadcast %3 : vector<1x64xf32> to vector<64x64xf32>
    %5 = arith.addf %2, %4 : vector<64x64xf32>
    %c0_5 = arith.constant 0 : index
    %c0_6 = arith.constant 0 : index
    %6 = vector.load %arg4[%c0_5, %c0_6] : memref<64x64xf32, #tpu.memory_space<vmem>>, vector<64x64xf32>
    tpu.vector_store %arg4[%c0_5, %c0_6], %5 {strides = array<i32>} : memref<64x64xf32, #tpu.memory_space<vmem>>, vector<64x64xf32>,
    return
  }
  func.func @transform_0(%arg0: i32) -> (i32, i32) {
    %c0_i32 = arith.constant 0 : i32
    %c0_i32_0 = arith.constant 0 : i32
    return %arg0, %c0_i32 : i32, i32
  }
  func.func @transform_1(%arg0: i32) -> (i32, i32) {
    %c0_i32 = arith.constant 0 : i32
    %c0_i32_0 = arith.constant 0 : i32
    %c0_i32_1 = arith.constant 0 : i32
    return %c0_i32, %c0_i32_0 : i32, i32
  }
  func.func @transform_2(%arg0: i32) -> (i32, i32) {
    %c0_i32 = arith.constant 0 : i32
    %c0_i32_0 = arith.constant 0 : i32
    %c0_i32_1 = arith.constant 0 : i32
    return %c0_i32, %c0_i32_0 : i32, i32
  }
  func.func @transform_3(%arg0: i32) -> (i32, i32) {
    %c0_i32 = arith.constant 0 : i32
    %c0_i32_0 = arith.constant 0 : i32
    return %arg0, %c0_i32 : i32, i32
  }
}

module attributes {stable_mosaic.version = 11 : i64} {
  func.func @_dark_maxpool_kernel(%arg0: i32, %arg1: memref<1x3x32x32xf32, #tpu.memory_space<vmem>>, %arg2: memref<1x32x32xf32, #tpu.memory_space<vmem>>) attributes {dimension_semantics = [#tpu.dimension_semantics<parallel>], iteration_bounds = array<i64: 2>, scalar_prefetch = 0 : i64, scratch_operands = 0 : i64, tpu.core_type = #tpu.core_type<tc>, window_params = [{transform_indices = @transform_0, window_bounds = array<i64: 1, 3, 32, 32>}, {transform_indices = @transform_1, window_bounds = array<i64: 1, 32, 32>}]} {
    %c0 = arith.constant 0 : index
    %c0_0 = arith.constant 0 : index
    %c0_1 = arith.constant 0 : index
    %c0_2 = arith.constant 0 : index
    %0 = vector.load %arg1[%c0, %c0_0, %c0_1, %c0_2] : memref<1x3x32x32xf32, #tpu.memory_space<vmem>>, vector<1x3x32x32xf32>
    %1 = vector.shape_cast %0 : vector<1x3x32x32xf32> to vector<3x32x32xf32>
    %2 = vector.extract_strided_slice %1 {offsets = [0, 0, 0], sizes = [1, 32, 32], strides = [1, 1, 1]} : vector<3x32x32xf32> to vector<1x32x32xf32>
    %3 = vector.shape_cast %2 : vector<1x32x32xf32> to vector<32x32xf32>
    %4 = vector.extract_strided_slice %1 {offsets = [1, 0, 0], sizes = [1, 32, 32], strides = [1, 1, 1]} : vector<3x32x32xf32> to vector<1x32x32xf32>
    %5 = vector.shape_cast %4 : vector<1x32x32xf32> to vector<32x32xf32>
    %6 = arith.minimumf %3, %5 : vector<32x32xf32>
    %7 = vector.extract_strided_slice %1 {offsets = [2, 0, 0], sizes = [1, 32, 32], strides = [1, 1, 1]} : vector<3x32x32xf32> to vector<1x32x32xf32>
    %8 = vector.shape_cast %7 : vector<1x32x32xf32> to vector<32x32xf32>
    %9 = arith.minimumf %6, %8 : vector<32x32xf32>
    %cst = arith.constant 0.000000e+00 : f32
    %10 = vector.broadcast %cst : f32 to vector<32x32xf32>
    %11 = arith.subf %10, %9 : vector<32x32xf32>
    %12 = tpu.iota {dimensions = array<i32: 0>} : vector<32x32xi32>
    %13 = tpu.iota {dimensions = array<i32: 1>} : vector<32x32xi32>
    %c0_i32 = arith.constant 0 : i32
    %14 = vector.broadcast %c0_i32 : i32 to vector<32x32xi32>
    %15 = arith.cmpi sgt, %12, %14 : vector<32x32xi32>
    %c1_i32 = arith.constant 1 : i32
    %16 = tpu.dynamic_rotate %11 by %c1_i32 dim 0 : vector<32x32xf32>, i32 -> vector<32x32xf32>
    %cst_3 = arith.constant -3.000000e+38 : f32
    %17 = vector.broadcast %cst_3 : f32 to vector<32x32xf32>
    %18 = arith.select %15, %16, %17 : vector<32x32xi1>, vector<32x32xf32>
    %c31_i32 = arith.constant 31 : i32
    %19 = vector.broadcast %c31_i32 : i32 to vector<32x32xi32>
    %20 = arith.cmpi slt, %12, %19 : vector<32x32xi32>
    %c31_i32_4 = arith.constant 31 : i32
    %21 = tpu.dynamic_rotate %11 by %c31_i32_4 dim 0 : vector<32x32xf32>, i32 -> vector<32x32xf32>
    %cst_5 = arith.constant -3.000000e+38 : f32
    %22 = vector.broadcast %cst_5 : f32 to vector<32x32xf32>
    %23 = arith.select %20, %21, %22 : vector<32x32xi1>, vector<32x32xf32>
    %24 = arith.maximumf %18, %23 : vector<32x32xf32>
    %25 = arith.maximumf %24, %11 : vector<32x32xf32>
    %c0_i32_6 = arith.constant 0 : i32
    %26 = vector.broadcast %c0_i32_6 : i32 to vector<32x32xi32>
    %27 = arith.cmpi sgt, %13, %26 : vector<32x32xi32>
    %c1_i32_7 = arith.constant 1 : i32
    %28 = tpu.dynamic_rotate %25 by %c1_i32_7 dim 1 : vector<32x32xf32>, i32 -> vector<32x32xf32>
    %cst_8 = arith.constant -3.000000e+38 : f32
    %29 = vector.broadcast %cst_8 : f32 to vector<32x32xf32>
    %30 = arith.select %27, %28, %29 : vector<32x32xi1>, vector<32x32xf32>
    %c31_i32_9 = arith.constant 31 : i32
    %31 = vector.broadcast %c31_i32_9 : i32 to vector<32x32xi32>
    %32 = arith.cmpi slt, %13, %31 : vector<32x32xi32>
    %c31_i32_10 = arith.constant 31 : i32
    %33 = tpu.dynamic_rotate %25 by %c31_i32_10 dim 1 : vector<32x32xf32>, i32 -> vector<32x32xf32>
    %cst_11 = arith.constant -3.000000e+38 : f32
    %34 = vector.broadcast %cst_11 : f32 to vector<32x32xf32>
    %35 = arith.select %32, %33, %34 : vector<32x32xi1>, vector<32x32xf32>
    %36 = arith.maximumf %30, %35 : vector<32x32xf32>
    %37 = arith.maximumf %36, %25 : vector<32x32xf32>
    %cst_12 = arith.constant 0.000000e+00 : f32
    %38 = vector.broadcast %cst_12 : f32 to vector<32x32xf32>
    %39 = arith.subf %38, %37 : vector<32x32xf32>
    %c0_13 = arith.constant 0 : index
    %c0_14 = arith.constant 0 : index
    %c0_15 = arith.constant 0 : index
    %40 = vector.load %arg2[%c0_13, %c0_14, %c0_15] : memref<1x32x32xf32, #tpu.memory_space<vmem>>, vector<1x32x32xf32>
    %41 = vector.shape_cast %40 : vector<1x32x32xf32> to vector<32x32xf32>
    %42 = vector.shape_cast %39 : vector<32x32xf32> to vector<1x32x32xf32>
    tpu.vector_store %arg2[%c0_13, %c0_14, %c0_15], %42 {strides = array<i32>} : memref<1x32x32xf32, #tpu.memory_space<vmem>>, vector<1x32x32xf32>,
    return
  }
  func.func @transform_0(%arg0: i32) -> (i32, i32, i32, i32) {
    %c0_i32 = arith.constant 0 : i32
    %c0_i32_0 = arith.constant 0 : i32
    %c0_i32_1 = arith.constant 0 : i32
    %c0_i32_2 = arith.constant 0 : i32
    return %arg0, %c0_i32, %c0_i32_0, %c0_i32_1 : i32, i32, i32, i32
  }
  func.func @transform_1(%arg0: i32) -> (i32, i32, i32) {
    %c0_i32 = arith.constant 0 : i32
    %c0_i32_0 = arith.constant 0 : i32
    %c0_i32_1 = arith.constant 0 : i32
    return %arg0, %c0_i32, %c0_i32_0 : i32, i32, i32
  }
}

module attributes {stable_mosaic.version = 11 : i64} {
  func.func @_detail_decoder_kernel(%arg0: i32, %arg1: memref<3x64x32xf32, #tpu.memory_space<vmem>>, %arg2: memref<64x64xf32, #tpu.memory_space<vmem>>, %arg3: memref<64x16xf32, #tpu.memory_space<vmem>>, %arg4: memref<3x1x32xf32, #tpu.memory_space<vmem>>, %arg5: memref<3x1x32xf32, #tpu.memory_space<vmem>>, %arg6: memref<64x32xf32, #tpu.memory_space<vmem>>, %arg7: memref<1x32xf32, #tpu.memory_space<vmem>>, %arg8: memref<64x32xf32, #tpu.memory_space<vmem>>, %arg9: memref<1x32xf32, #tpu.memory_space<vmem>>, %arg10: memref<16x32xf32, #tpu.memory_space<vmem>>, %arg11: memref<1x32xf32, #tpu.memory_space<vmem>>, %arg12: memref<1x32xf32, #tpu.memory_space<vmem>>, %arg13: memref<1x32xf32, #tpu.memory_space<vmem>>, %arg14: memref<32x64xf32, #tpu.memory_space<vmem>>, %arg15: memref<1x64xf32, #tpu.memory_space<vmem>>, %arg16: memref<64x32xf32, #tpu.memory_space<vmem>>, %arg17: memref<1x32xf32, #tpu.memory_space<vmem>>, %arg18: memref<1x32xf32, #tpu.memory_space<vmem>>, %arg19: memref<1x32xf32, #tpu.memory_space<vmem>>, %arg20: memref<64x32xf32, #tpu.memory_space<vmem>>) attributes {dimension_semantics = [#tpu.dimension_semantics<parallel>], iteration_bounds = array<i64: 2>, scalar_prefetch = 0 : i64, scratch_operands = 0 : i64, tpu.core_type = #tpu.core_type<tc>, window_params = [{transform_indices = @transform_0, window_bounds = array<i64: 3, 64, 32>}, {transform_indices = @transform_1, window_bounds = array<i64: 64, 64>}, {transform_indices = @transform_2, window_bounds = array<i64: 64, 16>}, {pipeline_mode = #tpu.pipeline_mode<synchronous>, transform_indices = @transform_3, window_bounds = array<i64: 3, 1, 32>}, {pipeline_mode = #tpu.pipeline_mode<synchronous>, transform_indices = @transform_4, window_bounds = array<i64: 3, 1, 32>}, {pipeline_mode = #tpu.pipeline_mode<synchronous>, transform_indices = @transform_5, window_bounds = array<i64: 64, 32>}, {pipeline_mode = #tpu.pipeline_mode<synchronous>, transform_indices = @transform_6, window_bounds = array<i64: 1, 32>}, {pipeline_mode = #tpu.pipeline_mode<synchronous>, transform_indices = @transform_7, window_bounds = array<i64: 64, 32>}, {pipeline_mode = #tpu.pipeline_mode<synchronous>, transform_indices = @transform_8, window_bounds = array<i64: 1, 32>}, {pipeline_mode = #tpu.pipeline_mode<synchronous>, transform_indices = @transform_9, window_bounds = array<i64: 16, 32>}, {pipeline_mode = #tpu.pipeline_mode<synchronous>, transform_indices = @transform_10, window_bounds = array<i64: 1, 32>}, {pipeline_mode = #tpu.pipeline_mode<synchronous>, transform_indices = @transform_11, window_bounds = array<i64: 1, 32>}, {pipeline_mode = #tpu.pipeline_mode<synchronous>, transform_indices = @transform_12, window_bounds = array<i64: 1, 32>}, {pipeline_mode = #tpu.pipeline_mode<synchronous>, transform_indices = @transform_13, window_bounds = array<i64: 32, 64>}, {pipeline_mode = #tpu.pipeline_mode<synchronous>, transform_indices = @transform_14, window_bounds = array<i64: 1, 64>}, {pipeline_mode = #tpu.pipeline_mode<synchronous>, transform_indices = @transform_15, window_bounds = array<i64: 64, 32>}, {pipeline_mode = #tpu.pipeline_mode<synchronous>, transform_indices = @transform_16, window_bounds = array<i64: 1, 32>}, {pipeline_mode = #tpu.pipeline_mode<synchronous>, transform_indices = @transform_17, window_bounds = array<i64: 1, 32>}, {pipeline_mode = #tpu.pipeline_mode<synchronous>, transform_indices = @transform_18, window_bounds = array<i64: 1, 32>}, {transform_indices = @transform_19, window_bounds = array<i64: 64, 32>}]} {
    %c0 = arith.constant 0 : index
    %c0_0 = arith.constant 0 : index
    %0 = vector.load %arg2[%c0, %c0_0] : memref<64x64xf32, #tpu.memory_space<vmem>>, vector<64x64xf32>
    %c0_1 = arith.constant 0 : index
    %c0_2 = arith.constant 0 : index
    %1 = vector.load %arg6[%c0_1, %c0_2] : memref<64x32xf32, #tpu.memory_space<vmem>>, vector<64x32xf32>
    %cst = arith.constant dense<0.000000e+00> : vector<64x32xf32>
    %2 = tpu.matmul %0, %1, %cst {dimension_numbers = #tpu.dot_dimension_numbers<[1], [0], [0], [1], [0, 0, 1, 1], [], []>} : vector<64x64xf32>, vector<64x32xf32>, vector<64x32xf32> -> vector<64x32xf32>
    %c0_3 = arith.constant 0 : index
    %c0_4 = arith.constant 0 : index
    %3 = vector.load %arg7[%c0_3, %c0_4] : memref<1x32xf32, #tpu.memory_space<vmem>>, vector<1x32xf32>
    %4 = vector.broadcast %3 : vector<1x32xf32> to vector<64x32xf32>
    %5 = arith.addf %2, %4 : vector<64x32xf32>
    %c0_5 = arith.constant 0 : index
    %c0_6 = arith.constant 0 : index
    %6 = vector.load %arg8[%c0_5, %c0_6] : memref<64x32xf32, #tpu.memory_space<vmem>>, vector<64x32xf32>
    %cst_7 = arith.constant dense<0.000000e+00> : vector<64x32xf32>
    %7 = tpu.matmul %0, %6, %cst_7 {dimension_numbers = #tpu.dot_dimension_numbers<[1], [0], [0], [1], [0, 0, 1, 1], [], []>} : vector<64x64xf32>, vector<64x32xf32>, vector<64x32xf32> -> vector<64x32xf32>
    %c0_8 = arith.constant 0 : index
    %c0_9 = arith.constant 0 : index
    %8 = vector.load %arg9[%c0_8, %c0_9] : memref<1x32xf32, #tpu.memory_space<vmem>>, vector<1x32xf32>
    %9 = vector.broadcast %8 : vector<1x32xf32> to vector<64x32xf32>
    %10 = arith.addf %7, %9 : vector<64x32xf32>
    %c0_10 = arith.constant 0 : index
    %c0_11 = arith.constant 0 : index
    %11 = vector.load %arg3[%c0_10, %c0_11] : memref<64x16xf32, #tpu.memory_space<vmem>>, vector<64x16xf32>
    %c0_12 = arith.constant 0 : index
    %c0_13 = arith.constant 0 : index
    %12 = vector.load %arg10[%c0_12, %c0_13] : memref<16x32xf32, #tpu.memory_space<vmem>>, vector<16x32xf32>
    %cst_14 = arith.constant dense<0.000000e+00> : vector<64x32xf32>
    %13 = tpu.matmul %11, %12, %cst_14 {dimension_numbers = #tpu.dot_dimension_numbers<[1], [0], [0], [1], [0, 0, 1, 1], [], []>} : vector<64x16xf32>, vector<16x32xf32>, vector<64x32xf32> -> vector<64x32xf32>
    %c0_15 = arith.constant 0 : index
    %c0_16 = arith.constant 0 : index
    %14 = vector.load %arg11[%c0_15, %c0_16] : memref<1x32xf32, #tpu.memory_space<vmem>>, vector<1x32xf32>
    %15 = vector.broadcast %14 : vector<1x32xf32> to vector<64x32xf32>
    %16 = arith.addf %13, %15 : vector<64x32xf32>
    %c0_17 = arith.constant 0 : index
    %c0_18 = arith.constant 0 : index
    %c0_19 = arith.constant 0 : index
    %17 = vector.load %arg1[%c0_17, %c0_18, %c0_19] : memref<3x64x32xf32, #tpu.memory_space<vmem>>, vector<1x64x32xf32>
    %18 = vector.shape_cast %17 : vector<1x64x32xf32> to vector<64x32xf32>
    %c0_20 = arith.constant 0 : index
    %c0_21 = arith.constant 0 : index
    %c0_22 = arith.constant 0 : index
    %19 = vector.load %arg4[%c0_20, %c0_21, %c0_22] : memref<3x1x32xf32, #tpu.memory_space<vmem>>, vector<1x1x32xf32>
    %20 = vector.shape_cast %19 : vector<1x1x32xf32> to vector<1x32xf32>
    %c0_23 = arith.constant 0 : index
    %c0_24 = arith.constant 0 : index
    %c0_25 = arith.constant 0 : index
    %21 = vector.load %arg5[%c0_23, %c0_24, %c0_25] : memref<3x1x32xf32, #tpu.memory_space<vmem>>, vector<1x1x32xf32>
    %22 = vector.shape_cast %21 : vector<1x1x32xf32> to vector<1x32xf32>
    %cst_26 = arith.constant dense<0.000000e+00> : vector<64xf32>
    %23 = vector.multi_reduction <add>, %18, %cst_26 [1] : vector<64x32xf32> to vector<64xf32>
    %24 = vector.shape_cast %23 : vector<64xf32> to vector<64x1xf32>
    %cst_27 = arith.constant 3.200000e+01 : f32
    %25 = vector.broadcast %cst_27 : f32 to vector<64x1xf32>
    %26 = arith.divf %24, %25 : vector<64x1xf32>
    %27 = vector.broadcast %26 : vector<64x1xf32> to vector<64x32xf32>
    %28 = arith.subf %18, %27 : vector<64x32xf32>
    %29 = arith.mulf %28, %28 : vector<64x32xf32>
    %cst_28 = arith.constant dense<0.000000e+00> : vector<64xf32>
    %30 = vector.multi_reduction <add>, %29, %cst_28 [1] : vector<64x32xf32> to vector<64xf32>
    %31 = vector.shape_cast %30 : vector<64xf32> to vector<64x1xf32>
    %cst_29 = arith.constant 3.200000e+01 : f32
    %32 = vector.broadcast %cst_29 : f32 to vector<64x1xf32>
    %33 = arith.divf %31, %32 : vector<64x1xf32>
    %cst_30 = arith.constant 9.99999997E-7 : f32
    %34 = vector.broadcast %cst_30 : f32 to vector<64x1xf32>
    %35 = arith.addf %33, %34 : vector<64x1xf32>
    %36 = math.rsqrt %35 : vector<64x1xf32>
    %37 = vector.broadcast %36 : vector<64x1xf32> to vector<64x32xf32>
    %38 = arith.mulf %28, %37 : vector<64x32xf32>
    %39 = vector.broadcast %20 : vector<1x32xf32> to vector<64x32xf32>
    %40 = arith.mulf %38, %39 : vector<64x32xf32>
    %41 = vector.broadcast %22 : vector<1x32xf32> to vector<64x32xf32>
    %42 = arith.addf %40, %41 : vector<64x32xf32>
    %cst_31 = arith.constant 5.000000e-01 : f32
    %43 = vector.broadcast %cst_31 : f32 to vector<64x32xf32>
    %44 = arith.mulf %43, %42 : vector<64x32xf32>
    %cst_32 = arith.constant 0.707106769 : f32
    %45 = vector.broadcast %cst_32 : f32 to vector<64x32xf32>
    %46 = arith.mulf %42, %45 : vector<64x32xf32>
    %47 = math.absf %46 : vector<64x32xf32>
    %cst_33 = arith.constant 0.327591091 : f32
    %48 = vector.broadcast %cst_33 : f32 to vector<64x32xf32>
    %49 = arith.mulf %48, %47 : vector<64x32xf32>
    %cst_34 = arith.constant 1.000000e+00 : f32
    %50 = vector.broadcast %cst_34 : f32 to vector<64x32xf32>
    %51 = arith.addf %50, %49 : vector<64x32xf32>
    %cst_35 = arith.constant 1.000000e+00 : f32
    %52 = vector.broadcast %cst_35 : f32 to vector<64x32xf32>
    %53 = arith.divf %52, %51 : vector<64x32xf32>
    %cst_36 = arith.constant 1.06140542 : f32
    %54 = vector.broadcast %cst_36 : f32 to vector<64x32xf32>
    %55 = arith.mulf %54, %53 : vector<64x32xf32>
    %cst_37 = arith.constant 1.45315206 : f32
    %56 = vector.broadcast %cst_37 : f32 to vector<64x32xf32>
    %57 = arith.subf %55, %56 : vector<64x32xf32>
    %58 = arith.mulf %57, %53 : vector<64x32xf32>
    %cst_38 = arith.constant 1.42141378 : f32
    %59 = vector.broadcast %cst_38 : f32 to vector<64x32xf32>
    %60 = arith.addf %58, %59 : vector<64x32xf32>
    %61 = arith.mulf %60, %53 : vector<64x32xf32>
    %cst_39 = arith.constant 0.284496725 : f32
    %62 = vector.broadcast %cst_39 : f32 to vector<64x32xf32>
    %63 = arith.subf %61, %62 : vector<64x32xf32>
    %64 = arith.mulf %63, %53 : vector<64x32xf32>
    %cst_40 = arith.constant 0.254829586 : f32
    %65 = vector.broadcast %cst_40 : f32 to vector<64x32xf32>
    %66 = arith.addf %64, %65 : vector<64x32xf32>
    %67 = arith.mulf %66, %53 : vector<64x32xf32>
    %cst_41 = arith.constant 0.000000e+00 : f32
    %68 = vector.broadcast %cst_41 : f32 to vector<64x32xf32>
    %69 = arith.subf %68, %47 : vector<64x32xf32>
    %70 = arith.mulf %69, %47 : vector<64x32xf32>
    %71 = math.exp %70 : vector<64x32xf32>
    %72 = arith.mulf %67, %71 : vector<64x32xf32>
    %cst_42 = arith.constant 1.000000e+00 : f32
    %73 = vector.broadcast %cst_42 : f32 to vector<64x32xf32>
    %74 = arith.subf %73, %72 : vector<64x32xf32>
    %cst_43 = arith.constant 0.000000e+00 : f32
    %75 = vector.broadcast %cst_43 : f32 to vector<64x32xf32>
    %76 = arith.cmpf olt, %46, %75 : vector<64x32xf32>
    %cst_44 = arith.constant 0.000000e+00 : f32
    %77 = vector.broadcast %cst_44 : f32 to vector<64x32xf32>
    %78 = arith.subf %77, %74 : vector<64x32xf32>
    %79 = arith.select %76, %78, %74 : vector<64x32xi1>, vector<64x32xf32>
    %cst_45 = arith.constant 1.000000e+00 : f32
    %80 = vector.broadcast %cst_45 : f32 to vector<64x32xf32>
    %81 = arith.addf %80, %79 : vector<64x32xf32>
    %82 = arith.mulf %44, %81 : vector<64x32xf32>
    %83 = arith.addf %5, %82 : vector<64x32xf32>
    %c1 = arith.constant 1 : index
    %c0_46 = arith.constant 0 : index
    %c0_47 = arith.constant 0 : index
    %84 = vector.load %arg1[%c1, %c0_46, %c0_47] : memref<3x64x32xf32, #tpu.memory_space<vmem>>, vector<1x64x32xf32>
    %85 = vector.shape_cast %84 : vector<1x64x32xf32> to vector<64x32xf32>
    %c1_48 = arith.constant 1 : index
    %c0_49 = arith.constant 0 : index
    %c0_50 = arith.constant 0 : index
    %86 = vector.load %arg4[%c1_48, %c0_49, %c0_50] : memref<3x1x32xf32, #tpu.memory_space<vmem>>, vector<1x1x32xf32>
    %87 = vector.shape_cast %86 : vector<1x1x32xf32> to vector<1x32xf32>
    %c1_51 = arith.constant 1 : index
    %c0_52 = arith.constant 0 : index
    %c0_53 = arith.constant 0 : index
    %88 = vector.load %arg5[%c1_51, %c0_52, %c0_53] : memref<3x1x32xf32, #tpu.memory_space<vmem>>, vector<1x1x32xf32>
    %89 = vector.shape_cast %88 : vector<1x1x32xf32> to vector<1x32xf32>
    %cst_54 = arith.constant dense<0.000000e+00> : vector<64xf32>
    %90 = vector.multi_reduction <add>, %85, %cst_54 [1] : vector<64x32xf32> to vector<64xf32>
    %91 = vector.shape_cast %90 : vector<64xf32> to vector<64x1xf32>
    %cst_55 = arith.constant 3.200000e+01 : f32
    %92 = vector.broadcast %cst_55 : f32 to vector<64x1xf32>
    %93 = arith.divf %91, %92 : vector<64x1xf32>
    %94 = vector.broadcast %93 : vector<64x1xf32> to vector<64x32xf32>
    %95 = arith.subf %85, %94 : vector<64x32xf32>
    %96 = arith.mulf %95, %95 : vector<64x32xf32>
    %cst_56 = arith.constant dense<0.000000e+00> : vector<64xf32>
    %97 = vector.multi_reduction <add>, %96, %cst_56 [1] : vector<64x32xf32> to vector<64xf32>
    %98 = vector.shape_cast %97 : vector<64xf32> to vector<64x1xf32>
    %cst_57 = arith.constant 3.200000e+01 : f32
    %99 = vector.broadcast %cst_57 : f32 to vector<64x1xf32>
    %100 = arith.divf %98, %99 : vector<64x1xf32>
    %cst_58 = arith.constant 9.99999997E-7 : f32
    %101 = vector.broadcast %cst_58 : f32 to vector<64x1xf32>
    %102 = arith.addf %100, %101 : vector<64x1xf32>
    %103 = math.rsqrt %102 : vector<64x1xf32>
    %104 = vector.broadcast %103 : vector<64x1xf32> to vector<64x32xf32>
    %105 = arith.mulf %95, %104 : vector<64x32xf32>
    %106 = vector.broadcast %87 : vector<1x32xf32> to vector<64x32xf32>
    %107 = arith.mulf %105, %106 : vector<64x32xf32>
    %108 = vector.broadcast %89 : vector<1x32xf32> to vector<64x32xf32>
    %109 = arith.addf %107, %108 : vector<64x32xf32>
    %cst_59 = arith.constant 5.000000e-01 : f32
    %110 = vector.broadcast %cst_59 : f32 to vector<64x32xf32>
    %111 = arith.mulf %110, %109 : vector<64x32xf32>
    %cst_60 = arith.constant 0.707106769 : f32
    %112 = vector.broadcast %cst_60 : f32 to vector<64x32xf32>
    %113 = arith.mulf %109, %112 : vector<64x32xf32>
    %114 = math.absf %113 : vector<64x32xf32>
    %cst_61 = arith.constant 0.327591091 : f32
    %115 = vector.broadcast %cst_61 : f32 to vector<64x32xf32>
    %116 = arith.mulf %115, %114 : vector<64x32xf32>
    %cst_62 = arith.constant 1.000000e+00 : f32
    %117 = vector.broadcast %cst_62 : f32 to vector<64x32xf32>
    %118 = arith.addf %117, %116 : vector<64x32xf32>
    %cst_63 = arith.constant 1.000000e+00 : f32
    %119 = vector.broadcast %cst_63 : f32 to vector<64x32xf32>
    %120 = arith.divf %119, %118 : vector<64x32xf32>
    %cst_64 = arith.constant 1.06140542 : f32
    %121 = vector.broadcast %cst_64 : f32 to vector<64x32xf32>
    %122 = arith.mulf %121, %120 : vector<64x32xf32>
    %cst_65 = arith.constant 1.45315206 : f32
    %123 = vector.broadcast %cst_65 : f32 to vector<64x32xf32>
    %124 = arith.subf %122, %123 : vector<64x32xf32>
    %125 = arith.mulf %124, %120 : vector<64x32xf32>
    %cst_66 = arith.constant 1.42141378 : f32
    %126 = vector.broadcast %cst_66 : f32 to vector<64x32xf32>
    %127 = arith.addf %125, %126 : vector<64x32xf32>
    %128 = arith.mulf %127, %120 : vector<64x32xf32>
    %cst_67 = arith.constant 0.284496725 : f32
    %129 = vector.broadcast %cst_67 : f32 to vector<64x32xf32>
    %130 = arith.subf %128, %129 : vector<64x32xf32>
    %131 = arith.mulf %130, %120 : vector<64x32xf32>
    %cst_68 = arith.constant 0.254829586 : f32
    %132 = vector.broadcast %cst_68 : f32 to vector<64x32xf32>
    %133 = arith.addf %131, %132 : vector<64x32xf32>
    %134 = arith.mulf %133, %120 : vector<64x32xf32>
    %cst_69 = arith.constant 0.000000e+00 : f32
    %135 = vector.broadcast %cst_69 : f32 to vector<64x32xf32>
    %136 = arith.subf %135, %114 : vector<64x32xf32>
    %137 = arith.mulf %136, %114 : vector<64x32xf32>
    %138 = math.exp %137 : vector<64x32xf32>
    %139 = arith.mulf %134, %138 : vector<64x32xf32>
    %cst_70 = arith.constant 1.000000e+00 : f32
    %140 = vector.broadcast %cst_70 : f32 to vector<64x32xf32>
    %141 = arith.subf %140, %139 : vector<64x32xf32>
    %cst_71 = arith.constant 0.000000e+00 : f32
    %142 = vector.broadcast %cst_71 : f32 to vector<64x32xf32>
    %143 = arith.cmpf olt, %113, %142 : vector<64x32xf32>
    %cst_72 = arith.constant 0.000000e+00 : f32
    %144 = vector.broadcast %cst_72 : f32 to vector<64x32xf32>
    %145 = arith.subf %144, %141 : vector<64x32xf32>
    %146 = arith.select %143, %145, %141 : vector<64x32xi1>, vector<64x32xf32>
    %cst_73 = arith.constant 1.000000e+00 : f32
    %147 = vector.broadcast %cst_73 : f32 to vector<64x32xf32>
    %148 = arith.addf %147, %146 : vector<64x32xf32>
    %149 = arith.mulf %111, %148 : vector<64x32xf32>
    %150 = arith.addf %83, %149 : vector<64x32xf32>
    %c2 = arith.constant 2 : index
    %c0_74 = arith.constant 0 : index
    %c0_75 = arith.constant 0 : index
    %151 = vector.load %arg1[%c2, %c0_74, %c0_75] : memref<3x64x32xf32, #tpu.memory_space<vmem>>, vector<1x64x32xf32>
    %152 = vector.shape_cast %151 : vector<1x64x32xf32> to vector<64x32xf32>
    %c2_76 = arith.constant 2 : index
    %c0_77 = arith.constant 0 : index
    %c0_78 = arith.constant 0 : index
    %153 = vector.load %arg4[%c2_76, %c0_77, %c0_78] : memref<3x1x32xf32, #tpu.memory_space<vmem>>, vector<1x1x32xf32>
    %154 = vector.shape_cast %153 : vector<1x1x32xf32> to vector<1x32xf32>
    %c2_79 = arith.constant 2 : index
    %c0_80 = arith.constant 0 : index
    %c0_81 = arith.constant 0 : index
    %155 = vector.load %arg5[%c2_79, %c0_80, %c0_81] : memref<3x1x32xf32, #tpu.memory_space<vmem>>, vector<1x1x32xf32>
    %156 = vector.shape_cast %155 : vector<1x1x32xf32> to vector<1x32xf32>
    %cst_82 = arith.constant dense<0.000000e+00> : vector<64xf32>
    %157 = vector.multi_reduction <add>, %152, %cst_82 [1] : vector<64x32xf32> to vector<64xf32>
    %158 = vector.shape_cast %157 : vector<64xf32> to vector<64x1xf32>
    %cst_83 = arith.constant 3.200000e+01 : f32
    %159 = vector.broadcast %cst_83 : f32 to vector<64x1xf32>
    %160 = arith.divf %158, %159 : vector<64x1xf32>
    %161 = vector.broadcast %160 : vector<64x1xf32> to vector<64x32xf32>
    %162 = arith.subf %152, %161 : vector<64x32xf32>
    %163 = arith.mulf %162, %162 : vector<64x32xf32>
    %cst_84 = arith.constant dense<0.000000e+00> : vector<64xf32>
    %164 = vector.multi_reduction <add>, %163, %cst_84 [1] : vector<64x32xf32> to vector<64xf32>
    %165 = vector.shape_cast %164 : vector<64xf32> to vector<64x1xf32>
    %cst_85 = arith.constant 3.200000e+01 : f32
    %166 = vector.broadcast %cst_85 : f32 to vector<64x1xf32>
    %167 = arith.divf %165, %166 : vector<64x1xf32>
    %cst_86 = arith.constant 9.99999997E-7 : f32
    %168 = vector.broadcast %cst_86 : f32 to vector<64x1xf32>
    %169 = arith.addf %167, %168 : vector<64x1xf32>
    %170 = math.rsqrt %169 : vector<64x1xf32>
    %171 = vector.broadcast %170 : vector<64x1xf32> to vector<64x32xf32>
    %172 = arith.mulf %162, %171 : vector<64x32xf32>
    %173 = vector.broadcast %154 : vector<1x32xf32> to vector<64x32xf32>
    %174 = arith.mulf %172, %173 : vector<64x32xf32>
    %175 = vector.broadcast %156 : vector<1x32xf32> to vector<64x32xf32>
    %176 = arith.addf %174, %175 : vector<64x32xf32>
    %cst_87 = arith.constant 5.000000e-01 : f32
    %177 = vector.broadcast %cst_87 : f32 to vector<64x32xf32>
    %178 = arith.mulf %177, %176 : vector<64x32xf32>
    %cst_88 = arith.constant 0.707106769 : f32
    %179 = vector.broadcast %cst_88 : f32 to vector<64x32xf32>
    %180 = arith.mulf %176, %179 : vector<64x32xf32>
    %181 = math.absf %180 : vector<64x32xf32>
    %cst_89 = arith.constant 0.327591091 : f32
    %182 = vector.broadcast %cst_89 : f32 to vector<64x32xf32>
    %183 = arith.mulf %182, %181 : vector<64x32xf32>
    %cst_90 = arith.constant 1.000000e+00 : f32
    %184 = vector.broadcast %cst_90 : f32 to vector<64x32xf32>
    %185 = arith.addf %184, %183 : vector<64x32xf32>
    %cst_91 = arith.constant 1.000000e+00 : f32
    %186 = vector.broadcast %cst_91 : f32 to vector<64x32xf32>
    %187 = arith.divf %186, %185 : vector<64x32xf32>
    %cst_92 = arith.constant 1.06140542 : f32
    %188 = vector.broadcast %cst_92 : f32 to vector<64x32xf32>
    %189 = arith.mulf %188, %187 : vector<64x32xf32>
    %cst_93 = arith.constant 1.45315206 : f32
    %190 = vector.broadcast %cst_93 : f32 to vector<64x32xf32>
    %191 = arith.subf %189, %190 : vector<64x32xf32>
    %192 = arith.mulf %191, %187 : vector<64x32xf32>
    %cst_94 = arith.constant 1.42141378 : f32
    %193 = vector.broadcast %cst_94 : f32 to vector<64x32xf32>
    %194 = arith.addf %192, %193 : vector<64x32xf32>
    %195 = arith.mulf %194, %187 : vector<64x32xf32>
    %cst_95 = arith.constant 0.284496725 : f32
    %196 = vector.broadcast %cst_95 : f32 to vector<64x32xf32>
    %197 = arith.subf %195, %196 : vector<64x32xf32>
    %198 = arith.mulf %197, %187 : vector<64x32xf32>
    %cst_96 = arith.constant 0.254829586 : f32
    %199 = vector.broadcast %cst_96 : f32 to vector<64x32xf32>
    %200 = arith.addf %198, %199 : vector<64x32xf32>
    %201 = arith.mulf %200, %187 : vector<64x32xf32>
    %cst_97 = arith.constant 0.000000e+00 : f32
    %202 = vector.broadcast %cst_97 : f32 to vector<64x32xf32>
    %203 = arith.subf %202, %181 : vector<64x32xf32>
    %204 = arith.mulf %203, %181 : vector<64x32xf32>
    %205 = math.exp %204 : vector<64x32xf32>
    %206 = arith.mulf %201, %205 : vector<64x32xf32>
    %cst_98 = arith.constant 1.000000e+00 : f32
    %207 = vector.broadcast %cst_98 : f32 to vector<64x32xf32>
    %208 = arith.subf %207, %206 : vector<64x32xf32>
    %cst_99 = arith.constant 0.000000e+00 : f32
    %209 = vector.broadcast %cst_99 : f32 to vector<64x32xf32>
    %210 = arith.cmpf olt, %180, %209 : vector<64x32xf32>
    %cst_100 = arith.constant 0.000000e+00 : f32
    %211 = vector.broadcast %cst_100 : f32 to vector<64x32xf32>
    %212 = arith.subf %211, %208 : vector<64x32xf32>
    %213 = arith.select %210, %212, %208 : vector<64x32xi1>, vector<64x32xf32>
    %cst_101 = arith.constant 1.000000e+00 : f32
    %214 = vector.broadcast %cst_101 : f32 to vector<64x32xf32>
    %215 = arith.addf %214, %213 : vector<64x32xf32>
    %216 = arith.mulf %178, %215 : vector<64x32xf32>
    %217 = arith.addf %150, %216 : vector<64x32xf32>
    %c0_102 = arith.constant 0 : index
    %c0_103 = arith.constant 0 : index
    %218 = vector.load %arg12[%c0_102, %c0_103] : memref<1x32xf32, #tpu.memory_space<vmem>>, vector<1x32xf32>
    %c0_104 = arith.constant 0 : index
    %c0_105 = arith.constant 0 : index
    %219 = vector.load %arg13[%c0_104, %c0_105] : memref<1x32xf32, #tpu.memory_space<vmem>>, vector<1x32xf32>
    %cst_106 = arith.constant dense<0.000000e+00> : vector<64xf32>
    %220 = vector.multi_reduction <add>, %217, %cst_106 [1] : vector<64x32xf32> to vector<64xf32>
    %221 = vector.shape_cast %220 : vector<64xf32> to vector<64x1xf32>
    %cst_107 = arith.constant 3.200000e+01 : f32
    %222 = vector.broadcast %cst_107 : f32 to vector<64x1xf32>
    %223 = arith.divf %221, %222 : vector<64x1xf32>
    %224 = vector.broadcast %223 : vector<64x1xf32> to vector<64x32xf32>
    %225 = arith.subf %217, %224 : vector<64x32xf32>
    %226 = arith.mulf %225, %225 : vector<64x32xf32>
    %cst_108 = arith.constant dense<0.000000e+00> : vector<64xf32>
    %227 = vector.multi_reduction <add>, %226, %cst_108 [1] : vector<64x32xf32> to vector<64xf32>
    %228 = vector.shape_cast %227 : vector<64xf32> to vector<64x1xf32>
    %cst_109 = arith.constant 3.200000e+01 : f32
    %229 = vector.broadcast %cst_109 : f32 to vector<64x1xf32>
    %230 = arith.divf %228, %229 : vector<64x1xf32>
    %cst_110 = arith.constant 9.99999997E-7 : f32
    %231 = vector.broadcast %cst_110 : f32 to vector<64x1xf32>
    %232 = arith.addf %230, %231 : vector<64x1xf32>
    %233 = math.rsqrt %232 : vector<64x1xf32>
    %234 = vector.broadcast %233 : vector<64x1xf32> to vector<64x32xf32>
    %235 = arith.mulf %225, %234 : vector<64x32xf32>
    %236 = vector.broadcast %218 : vector<1x32xf32> to vector<64x32xf32>
    %237 = arith.mulf %235, %236 : vector<64x32xf32>
    %238 = vector.broadcast %219 : vector<1x32xf32> to vector<64x32xf32>
    %239 = arith.addf %237, %238 : vector<64x32xf32>
    %c0_111 = arith.constant 0 : index
    %c0_112 = arith.constant 0 : index
    %240 = vector.load %arg14[%c0_111, %c0_112] : memref<32x64xf32, #tpu.memory_space<vmem>>, vector<32x64xf32>
    %cst_113 = arith.constant dense<0.000000e+00> : vector<64x64xf32>
    %241 = tpu.matmul %239, %240, %cst_113 {dimension_numbers = #tpu.dot_dimension_numbers<[1], [0], [0], [1], [0, 0, 1, 1], [], []>} : vector<64x32xf32>, vector<32x64xf32>, vector<64x64xf32> -> vector<64x64xf32>
    %c0_114 = arith.constant 0 : index
    %c0_115 = arith.constant 0 : index
    %242 = vector.load %arg15[%c0_114, %c0_115] : memref<1x64xf32, #tpu.memory_space<vmem>>, vector<1x64xf32>
    %243 = vector.broadcast %242 : vector<1x64xf32> to vector<64x64xf32>
    %244 = arith.addf %241, %243 : vector<64x64xf32>
    %cst_116 = arith.constant 5.000000e-01 : f32
    %245 = vector.broadcast %cst_116 : f32 to vector<64x64xf32>
    %246 = arith.mulf %245, %244 : vector<64x64xf32>
    %cst_117 = arith.constant 0.707106769 : f32
    %247 = vector.broadcast %cst_117 : f32 to vector<64x64xf32>
    %248 = arith.mulf %244, %247 : vector<64x64xf32>
    %249 = math.absf %248 : vector<64x64xf32>
    %cst_118 = arith.constant 0.327591091 : f32
    %250 = vector.broadcast %cst_118 : f32 to vector<64x64xf32>
    %251 = arith.mulf %250, %249 : vector<64x64xf32>
    %cst_119 = arith.constant 1.000000e+00 : f32
    %252 = vector.broadcast %cst_119 : f32 to vector<64x64xf32>
    %253 = arith.addf %252, %251 : vector<64x64xf32>
    %cst_120 = arith.constant 1.000000e+00 : f32
    %254 = vector.broadcast %cst_120 : f32 to vector<64x64xf32>
    %255 = arith.divf %254, %253 : vector<64x64xf32>
    %cst_121 = arith.constant 1.06140542 : f32
    %256 = vector.broadcast %cst_121 : f32 to vector<64x64xf32>
    %257 = arith.mulf %256, %255 : vector<64x64xf32>
    %cst_122 = arith.constant 1.45315206 : f32
    %258 = vector.broadcast %cst_122 : f32 to vector<64x64xf32>
    %259 = arith.subf %257, %258 : vector<64x64xf32>
    %260 = arith.mulf %259, %255 : vector<64x64xf32>
    %cst_123 = arith.constant 1.42141378 : f32
    %261 = vector.broadcast %cst_123 : f32 to vector<64x64xf32>
    %262 = arith.addf %260, %261 : vector<64x64xf32>
    %263 = arith.mulf %262, %255 : vector<64x64xf32>
    %cst_124 = arith.constant 0.284496725 : f32
    %264 = vector.broadcast %cst_124 : f32 to vector<64x64xf32>
    %265 = arith.subf %263, %264 : vector<64x64xf32>
    %266 = arith.mulf %265, %255 : vector<64x64xf32>
    %cst_125 = arith.constant 0.254829586 : f32
    %267 = vector.broadcast %cst_125 : f32 to vector<64x64xf32>
    %268 = arith.addf %266, %267 : vector<64x64xf32>
    %269 = arith.mulf %268, %255 : vector<64x64xf32>
    %cst_126 = arith.constant 0.000000e+00 : f32
    %270 = vector.broadcast %cst_126 : f32 to vector<64x64xf32>
    %271 = arith.subf %270, %249 : vector<64x64xf32>
    %272 = arith.mulf %271, %249 : vector<64x64xf32>
    %273 = math.exp %272 : vector<64x64xf32>
    %274 = arith.mulf %269, %273 : vector<64x64xf32>
    %cst_127 = arith.constant 1.000000e+00 : f32
    %275 = vector.broadcast %cst_127 : f32 to vector<64x64xf32>
    %276 = arith.subf %275, %274 : vector<64x64xf32>
    %cst_128 = arith.constant 0.000000e+00 : f32
    %277 = vector.broadcast %cst_128 : f32 to vector<64x64xf32>
    %278 = arith.cmpf olt, %248, %277 : vector<64x64xf32>
    %cst_129 = arith.constant 0.000000e+00 : f32
    %279 = vector.broadcast %cst_129 : f32 to vector<64x64xf32>
    %280 = arith.subf %279, %276 : vector<64x64xf32>
    %281 = arith.select %278, %280, %276 : vector<64x64xi1>, vector<64x64xf32>
    %cst_130 = arith.constant 1.000000e+00 : f32
    %282 = vector.broadcast %cst_130 : f32 to vector<64x64xf32>
    %283 = arith.addf %282, %281 : vector<64x64xf32>
    %284 = arith.mulf %246, %283 : vector<64x64xf32>
    %c0_131 = arith.constant 0 : index
    %c0_132 = arith.constant 0 : index
    %285 = vector.load %arg16[%c0_131, %c0_132] : memref<64x32xf32, #tpu.memory_space<vmem>>, vector<64x32xf32>
    %cst_133 = arith.constant dense<0.000000e+00> : vector<64x32xf32>
    %286 = tpu.matmul %284, %285, %cst_133 {dimension_numbers = #tpu.dot_dimension_numbers<[1], [0], [0], [1], [0, 0, 1, 1], [], []>} : vector<64x64xf32>, vector<64x32xf32>, vector<64x32xf32> -> vector<64x32xf32>
    %c0_134 = arith.constant 0 : index
    %c0_135 = arith.constant 0 : index
    %287 = vector.load %arg17[%c0_134, %c0_135] : memref<1x32xf32, #tpu.memory_space<vmem>>, vector<1x32xf32>
    %288 = vector.broadcast %287 : vector<1x32xf32> to vector<64x32xf32>
    %289 = arith.addf %286, %288 : vector<64x32xf32>
    %290 = arith.addf %289, %239 : vector<64x32xf32>
    %c0_136 = arith.constant 0 : index
    %c0_137 = arith.constant 0 : index
    %291 = vector.load %arg18[%c0_136, %c0_137] : memref<1x32xf32, #tpu.memory_space<vmem>>, vector<1x32xf32>
    %c0_138 = arith.constant 0 : index
    %c0_139 = arith.constant 0 : index
    %292 = vector.load %arg19[%c0_138, %c0_139] : memref<1x32xf32, #tpu.memory_space<vmem>>, vector<1x32xf32>
    %cst_140 = arith.constant dense<0.000000e+00> : vector<64xf32>
    %293 = vector.multi_reduction <add>, %290, %cst_140 [1] : vector<64x32xf32> to vector<64xf32>
    %294 = vector.shape_cast %293 : vector<64xf32> to vector<64x1xf32>
    %cst_141 = arith.constant 3.200000e+01 : f32
    %295 = vector.broadcast %cst_141 : f32 to vector<64x1xf32>
    %296 = arith.divf %294, %295 : vector<64x1xf32>
    %297 = vector.broadcast %296 : vector<64x1xf32> to vector<64x32xf32>
    %298 = arith.subf %290, %297 : vector<64x32xf32>
    %299 = arith.mulf %298, %298 : vector<64x32xf32>
    %cst_142 = arith.constant dense<0.000000e+00> : vector<64xf32>
    %300 = vector.multi_reduction <add>, %299, %cst_142 [1] : vector<64x32xf32> to vector<64xf32>
    %301 = vector.shape_cast %300 : vector<64xf32> to vector<64x1xf32>
    %cst_143 = arith.constant 3.200000e+01 : f32
    %302 = vector.broadcast %cst_143 : f32 to vector<64x1xf32>
    %303 = arith.divf %301, %302 : vector<64x1xf32>
    %cst_144 = arith.constant 9.99999997E-7 : f32
    %304 = vector.broadcast %cst_144 : f32 to vector<64x1xf32>
    %305 = arith.addf %303, %304 : vector<64x1xf32>
    %306 = math.rsqrt %305 : vector<64x1xf32>
    %307 = vector.broadcast %306 : vector<64x1xf32> to vector<64x32xf32>
    %308 = arith.mulf %298, %307 : vector<64x32xf32>
    %309 = vector.broadcast %291 : vector<1x32xf32> to vector<64x32xf32>
    %310 = arith.mulf %308, %309 : vector<64x32xf32>
    %311 = vector.broadcast %292 : vector<1x32xf32> to vector<64x32xf32>
    %312 = arith.addf %310, %311 : vector<64x32xf32>
    %313 = arith.addf %10, %16 : vector<64x32xf32>
    %314 = arith.addf %313, %312 : vector<64x32xf32>
    %c0_145 = arith.constant 0 : index
    %c0_146 = arith.constant 0 : index
    %315 = vector.load %arg20[%c0_145, %c0_146] : memref<64x32xf32, #tpu.memory_space<vmem>>, vector<64x32xf32>
    tpu.vector_store %arg20[%c0_145, %c0_146], %314 {strides = array<i32>} : memref<64x32xf32, #tpu.memory_space<vmem>>, vector<64x32xf32>,
    return
  }
  func.func @transform_0(%arg0: i32) -> (i32, i32, i32) {
    %c0_i32 = arith.constant 0 : i32
    %c0_i32_0 = arith.constant 0 : i32
    %c0_i32_1 = arith.constant 0 : i32
    return %c0_i32, %arg0, %c0_i32_0 : i32, i32, i32
  }
  func.func @transform_1(%arg0: i32) -> (i32, i32) {
    %c0_i32 = arith.constant 0 : i32
    %c0_i32_0 = arith.constant 0 : i32
    return %arg0, %c0_i32 : i32, i32
  }
  func.func @transform_2(%arg0: i32) -> (i32, i32) {
    %c0_i32 = arith.constant 0 : i32
    %c0_i32_0 = arith.constant 0 : i32
    return %arg0, %c0_i32 : i32, i32
  }
  func.func @transform_3(%arg0: i32) -> (i32, i32, i32) {
    %c0_i32 = arith.constant 0 : i32
    %c0_i32_0 = arith.constant 0 : i32
    %c0_i32_1 = arith.constant 0 : i32
    %c0_i32_2 = arith.constant 0 : i32
    return %c0_i32, %c0_i32_0, %c0_i32_1 : i32, i32, i32
  }
  func.func @transform_4(%arg0: i32) -> (i32, i32, i32) {
    %c0_i32 = arith.constant 0 : i32
    %c0_i32_0 = arith.constant 0 : i32
    %c0_i32_1 = arith.constant 0 : i32
    %c0_i32_2 = arith.constant 0 : i32
    return %c0_i32, %c0_i32_0, %c0_i32_1 : i32, i32, i32
  }
  func.func @transform_5(%arg0: i32) -> (i32, i32) {
    %c0_i32 = arith.constant 0 : i32
    %c0_i32_0 = arith.constant 0 : i32
    %c0_i32_1 = arith.constant 0 : i32
    return %c0_i32, %c0_i32_0 : i32, i32
  }
  func.func @transform_6(%arg0: i32) -> (i32, i32) {
    %c0_i32 = arith.constant 0 : i32
    %c0_i32_0 = arith.constant 0 : i32
    %c0_i32_1 = arith.constant 0 : i32
    return %c0_i32, %c0_i32_0 : i32, i32
  }
  func.func @transform_7(%arg0: i32) -> (i32, i32) {
    %c0_i32 = arith.constant 0 : i32
    %c0_i32_0 = arith.constant 0 : i32
    %c0_i32_1 = arith.constant 0 : i32
    return %c0_i32, %c0_i32_0 : i32, i32
  }
  func.func @transform_8(%arg0: i32) -> (i32, i32) {
    %c0_i32 = arith.constant 0 : i32
    %c0_i32_0 = arith.constant 0 : i32
    %c0_i32_1 = arith.constant 0 : i32
    return %c0_i32, %c0_i32_0 : i32, i32
  }
  func.func @transform_9(%arg0: i32) -> (i32, i32) {
    %c0_i32 = arith.constant 0 : i32
    %c0_i32_0 = arith.constant 0 : i32
    %c0_i32_1 = arith.constant 0 : i32
    return %c0_i32, %c0_i32_0 : i32, i32
  }
  func.func @transform_10(%arg0: i32) -> (i32, i32) {
    %c0_i32 = arith.constant 0 : i32
    %c0_i32_0 = arith.constant 0 : i32
    %c0_i32_1 = arith.constant 0 : i32
    return %c0_i32, %c0_i32_0 : i32, i32
  }
  func.func @transform_11(%arg0: i32) -> (i32, i32) {
    %c0_i32 = arith.constant 0 : i32
    %c0_i32_0 = arith.constant 0 : i32
    %c0_i32_1 = arith.constant 0 : i32
    return %c0_i32, %c0_i32_0 : i32, i32
  }
  func.func @transform_12(%arg0: i32) -> (i32, i32) {
    %c0_i32 = arith.constant 0 : i32
    %c0_i32_0 = arith.constant 0 : i32
    %c0_i32_1 = arith.constant 0 : i32
    return %c0_i32, %c0_i32_0 : i32, i32
  }
  func.func @transform_13(%arg0: i32) -> (i32, i32) {
    %c0_i32 = arith.constant 0 : i32
    %c0_i32_0 = arith.constant 0 : i32
    %c0_i32_1 = arith.constant 0 : i32
    return %c0_i32, %c0_i32_0 : i32, i32
  }
  func.func @transform_14(%arg0: i32) -> (i32, i32) {
    %c0_i32 = arith.constant 0 : i32
    %c0_i32_0 = arith.constant 0 : i32
    %c0_i32_1 = arith.constant 0 : i32
    return %c0_i32, %c0_i32_0 : i32, i32
  }
  func.func @transform_15(%arg0: i32) -> (i32, i32) {
    %c0_i32 = arith.constant 0 : i32
    %c0_i32_0 = arith.constant 0 : i32
    %c0_i32_1 = arith.constant 0 : i32
    return %c0_i32, %c0_i32_0 : i32, i32
  }
  func.func @transform_16(%arg0: i32) -> (i32, i32) {
    %c0_i32 = arith.constant 0 : i32
    %c0_i32_0 = arith.constant 0 : i32
    %c0_i32_1 = arith.constant 0 : i32
    return %c0_i32, %c0_i32_0 : i32, i32
  }
  func.func @transform_17(%arg0: i32) -> (i32, i32) {
    %c0_i32 = arith.constant 0 : i32
    %c0_i32_0 = arith.constant 0 : i32
    %c0_i32_1 = arith.constant 0 : i32
    return %c0_i32, %c0_i32_0 : i32, i32
  }
  func.func @transform_18(%arg0: i32) -> (i32, i32) {
    %c0_i32 = arith.constant 0 : i32
    %c0_i32_0 = arith.constant 0 : i32
    %c0_i32_1 = arith.constant 0 : i32
    return %c0_i32, %c0_i32_0 : i32, i32
  }
  func.func @transform_19(%arg0: i32) -> (i32, i32) {
    %c0_i32 = arith.constant 0 : i32
    %c0_i32_0 = arith.constant 0 : i32
    return %arg0, %c0_i32 : i32, i32
  }
}

</mosaic_0001>

<bundles_post_ra>
// kernel: _lambda_.4
= control target key start
LH: loop header
LB: loop body
LE: loop exit
PB: predicated region body
PF: predicated region fallthrough
CT: control target
= control target key end

     0   :  { %s397_s12 = smov 0   ;;  %s458_s0 = inlined_call_operand.vmem [shape: f32[128,48], index: 0, kind: input, shape index: {}]   ;;  %s459_s1 = inlined_call_operand.vmem [shape: f32[48,64], index: 1, kind: input, shape index: {}]   ;;  %s460_s2 = inlined_call_operand.vmem [shape: f32[1,64], index: 2, kind: input, shape index: {}]   ;;  %s461_s3 = inlined_call_operand.vmem [shape: f32[128,64], index: 3, kind: output, shape index: {}]  }
   0x1 LB: > { %s323_s13 = sadd.s32 4294967295, %s375_s12   ;;  %p327_p0 = scmp.ge.s32.totalorder %s375_s12, 1  ;;  %s375_s12 = sphi %s397_s12, %s13_s12  }
   0x2   : > { %p138_p1 = scmp.lt.s32.totalorder %s375_s12, 3 }
   0x4   : > { %p139_p2 = pnand %p327_p0, %p138_p1 }
   0x5   : > { %s328_s18 = sshll.u32 (!%p139_p2), %s323_s13, 3 }
   0x6   : > { %142 = sbr.rel (%p139_p2) target bundleno = 167 (0xa7), region = 32  ;;  %p163_p3 = scmp.lt.s32.totalorder (!%p139_p2), %s328_s18, 15 }
   0xb   : > { %v187_v0 = vld [vmem:[%s459_s1 + $0x28] sm:$0xff]  ;;  %v186_v1 = vld [vmem:[%s459_s1 + $0x20] sm:$0xff]  ;;  %v185_v2 = vld [vmem:[%s459_s1 + $0x18] sm:$0xff]  ;;  %s463_s18 = smov (!%p163_p3, %s328_s18), 15  ;;  %vm192_vm0 = vcmask 392192   ;;  %vm258_vm1 = vcmask 523264  }
   0xc   : > { %343 = vmatpush.msra.mxu2 %v187_v0  ;;  %344 = vmatpush.msra.mxu3 %v187_v0  ;;  %v184_v3 = vld [vmem:[%s459_s1 + $0x10] sm:$0xff]  ;;  %s329_s23 = sshll.u32 %s463_s18, 3  ;;  %v183_v4 = vld [vmem:[%s459_s1 + $0x8] sm:$0xff]  ;;  %v182_v5 = vld [vmem:[%s459_s1] sm:$0xff] }
   0xd   : > { %227 = vmatpush.msra.mxu0 %v187_v0  ;;  %342 = vmatpush.msra.mxu1 %v187_v0  ;;  %s166_s28 = scalar_lea.vmem %s458_s0, %s329_s23  ;;  %v368_v14 = vld [vmem:[%s460_s2] ss:$0 sm:$0xff]  ;;  %s172_s8 = scalar_lea.vmem %s461_s3, %s329_s23 }
   0xe   : > { %346 = vmatpush.msra.mxu2 %v186_v1  ;;  %347 = vmatpush.msra.mxu3 %v186_v1  ;;  %v178_v6 = vld [vmem:[%s166_s28 + $0x20] sm:$0xff]  ;;  %v180_v7 = vld [vmem:[%s166_s28 + $0x30] sm:$0xff]  ;;  %v179_v10 = vld [vmem:[%s166_s28 + $0x28] sm:$0xff] }
   0xf   : > { %228 = vmatpush.msra.mxu0 %v186_v1  ;;  %345 = vmatpush.msra.mxu1 %v186_v1  ;;  %v174_v8 = vld [vmem:[%s166_s28] sm:$0xff]  ;;  %v176_v9 = vld [vmem:[%s166_s28 + $0x10] sm:$0xff]  ;;  %v181_v11 = vld [vmem:[%s166_s28 + $0x38] sm:$0xff] }
  0x10   : > { %349 = vmatpush.msra.mxu2 %v185_v2  ;;  %350 = vmatpush.msra.mxu3 %v185_v2  ;;  %v175_v12 = vld [vmem:[%s166_s28 + $0x8] sm:$0xff]  ;;  %v177_v13 = vld [vmem:[%s166_s28 + $0x18] sm:$0xff] }
  0x11   : > { %229 = vmatpush.msra.mxu0 %v185_v2  ;;  %348 = vmatpush.msra.mxu1 %v185_v2 }
  0x12   : > { %352 = vmatpush.msra.mxu2 %v184_v3  ;;  %353 = vmatpush.msra.mxu3 %v184_v3 }
  0x13   : > { %230 = vmatpush.msra.mxu0 %v184_v3  ;;  %351 = vmatpush.msra.mxu1 %v184_v3 }
  0x14   : > { %355 = vmatpush.msra.mxu2 %v183_v4  ;;  %356 = vmatpush.msra.mxu3 %v183_v4 }
  0x15   : > { %231 = vmatpush.msra.mxu0 %v183_v4  ;;  %354 = vmatpush.msra.mxu1 %v183_v4 }
  0x16   : > { %358 = vmatpush.msra.mxu2 %v182_v5  ;;  %359 = vmatpush.msra.mxu3 %v182_v5 }
  0x17   : > { %336 = vmatmul.msk.f32.vlgmr.msra.gmra.mxu2 %vm192_vm0, %v178_v6  ;;  %338 = vmatmul.msk.f32.vlgmr.msra.gmra.mxu3 %vm192_vm0, %v180_v7 }
  0x18   : > { %232 = vmatpush.msra.mxu0 %v182_v5  ;;  %357 = vmatpush.msra.mxu1 %v182_v5 }
  0x19   : > { %332 = vmatmul.msk.f32.vlgmr.msra.gmra.mxu0 %vm192_vm0, %v174_v8  ;;  %334 = vmatmul.msk.f32.vlgmr.msra.gmra.mxu1 %vm192_vm0, %v176_v9 }
  0x1f   : > { %337 = vmatmul.msk.f32.gmra.mxu2 %vm192_vm0, %v179_v10  ;;  %339 = vmatmul.msk.f32.gmra.mxu3 %vm192_vm0, %v181_v11 }
  0x21   : > { %333 = vmatmul.msk.f32.gmra.mxu0 %vm192_vm0, %v175_v12  ;;  %335 = vmatmul.msk.f32.gmra.mxu1 %vm192_vm0, %v177_v13 }
  0x96   : > { %v234_v15 = vpop.f32.mrf.mxu0  ;;  %v240_v16 = vpop.f32.mrf.mxu1 }
  0x97   : > { %v235_v17 = vadd.f32 %v368_v14, %v234_v15  ;;  %v241_v18 = vadd.f32 %v368_v14, %v240_v16 }
  0x99   : > { %259 = vst.msk [vmem:[%s172_s8] sm:$0xff] %vm258_vm1, %v235_v17 }
  0x9a   : > { %261 = vst.msk [vmem:[%s172_s8 + $0x10] sm:$0xff] %vm258_vm1, %v241_v18  ;;  %v246_v19 = vpop.f32.mrf.mxu2  ;;  %v252_v20 = vpop.f32.mrf.mxu3 }
  0x9b   : > { %v247_v21 = vadd.f32 %v368_v14, %v246_v19  ;;  %v253_v22 = vadd.f32 %v368_v14, %v252_v20 }
  0x9d   : > { %263 = vst.msk [vmem:[%s172_s8 + $0x20] sm:$0xff] %vm258_vm1, %v247_v21 }
  0x9e   : > { %265 = vst.msk [vmem:[%s172_s8 + $0x30] sm:$0xff] %vm258_vm1, %v253_v22  ;;  %v237_v23 = vpop.f32.mrf.mxu0  ;;  %v243_v24 = vpop.f32.mrf.mxu1 }
  0x9f   : > { %v238_v25 = vadd.f32 %v368_v14, %v237_v23  ;;  %v244_v26 = vadd.f32 %v368_v14, %v243_v24 }
  0xa1   : > { %260 = vst.msk [vmem:[%s172_s8 + $0x8] sm:$0xff] %vm258_vm1, %v238_v25 }
  0xa2   : > { %262 = vst.msk [vmem:[%s172_s8 + $0x18] sm:$0xff] %vm258_vm1, %v244_v26  ;;  %v249_v27 = vpop.f32.mrf.mxu2  ;;  %v255_v28 = vpop.f32.mrf.mxu3 }
  0xa3   : > { %v250_v29 = vadd.f32 %v368_v14, %v249_v27  ;;  %v256_v30 = vadd.f32 %v368_v14, %v255_v28 }
  0xa5   : > { %264 = vst.msk [vmem:[%s172_s8 + $0x28] sm:$0xff] %vm258_vm1, %v250_v29 }
  0xa6   : > { %266 = vst.msk [vmem:[%s172_s8 + $0x38] sm:$0xff] %vm258_vm1, %v256_v30 }
  0xa7 PF: > { %s13_s12 = sadd.s32 1, %s375_s12  }
  0xa8   : > { %p10_p4 = scmp.ge.s32.totalorder %s13_s12, 4  }
  0xaa   :  { %12 = sbr.rel (!%p10_p4) target bundleno = 1 (0x1), region = 62 }

// kernel: _lambda_.3
= control target key start
LH: loop header
LB: loop body
LE: loop exit
PB: predicated region body
PF: predicated region fallthrough
CT: control target
= control target key end

     0   :  { %s369_s6 = smov 0   ;;  %s438_s0 = inlined_call_operand.vmem [shape: f32[2,3,32,32], index: 0, kind: input, shape index: {}]   ;;  %s439_s1 = inlined_call_operand.vmem [shape: f32[2,32,32], index: 1, kind: output, shape index: {}]  }
   0x1 LB: > { %s325_s7 = sadd.s32 4294967295, %s354_s6   ;;  %p329_p0 = scmp.ge.s32.totalorder %s354_s6, 1  ;;  %s354_s6 = sphi %s369_s6, %s11_s6  }
   0x2   : > { %p87_p1 = scmp.lt.s32.totalorder %s354_s6, 3 }
   0x4   : > { %p88_p2 = pnand %p329_p0, %p87_p1 }
   0x5   : > { %p107_p3 = scmp.lt.s32.totalorder (!%p88_p2), %s325_s7, 1  ;;  %s356_s12 = smov (!%p88_p2), 32  }
   0x6   : > { %91 = sbr.rel (%p88_p2) target bundleno = 394 (0x18a), region = 24  ;;  %s357_s13 = smov (!%p88_p2), 97  }
   0x7   : > { %s358_s14 = smov (!%p88_p2), 127  }
   0xb   : > { %s441_s7 = smov (!%p107_p3, %s325_s7), 1  ;;  %v141_v0 = vlaneseq  ;;  %vm191_vm4 = vcmask 1047808   ;;  %vm265_vm7 = vcmask 261120  }
   0xc   : > { %s336_s8 = smul.u32 96, %s441_s7  ;;  %s335_s15 = sshll.u32 %s441_s7, 5 }
   0xd   : > { %v142_v13 = vshrl.u32 %v141_v0, 7  ;;  %s116_s18 = scalar_lea.vmem %s439_s1, %s335_s15 }
   0xe   : > { %s111_s11 = scalar_lea.vmem %s438_s0, %s336_s8 }
   0xf   : > { %v118_v1 = vld [vmem:[%s111_s11 + $0x8] sm:$0xff]  ;;  %v119_v2 = vld [vmem:[%s111_s11 + $0x10] sm:$0xff]  ;;  %v120_v3 = vld [vmem:[%s111_s11 + $0x18] sm:$0xff]  ;;  %vm156_vm0 = vcmp.lt.s32.totalorder %v142_v13, 1  ;;  %vm173_vm1 = vcmp.lt.s32.totalorder %v142_v13, 7  ;;  %v145_v25 = vadd.s32 24, %v142_v13 }
  0x10   : > { %v122_v4 = vld [vmem:[%s111_s11 + $0x28] sm:$0xff]  ;;  %v123_v5 = vld [vmem:[%s111_s11 + $0x30] sm:$0xff]  ;;  %v124_v6 = vld [vmem:[%s111_s11 + $0x38] sm:$0xff]  ;;  %vm148_vm2 = vcmp.gt.s32.totalorder %v142_v13, 0 }
  0x11   : > { %v126_v7 = vld [vmem:[%s111_s11 + $0x48] sm:$0xff]  ;;  %v127_v8 = vld [vmem:[%s111_s11 + $0x50] sm:$0xff]  ;;  %v128_v9 = vld [vmem:[%s111_s11 + $0x58] sm:$0xff]  ;;  %v130_v10 = vmin.f32 %v118_v1, %v122_v4  ;;  %v131_v11 = vmin.f32 %v119_v2, %v123_v5  ;;  %v132_v12 = vmin.f32 %v120_v3, %v124_v6  ;;  %vm168_vm3 = vcmp.lt.s32.totalorder %v145_v25, 31 }
  0x12   : > { %v117_v14 = vld [vmem:[%s111_s11] sm:$0xff] }
  0x13   : > { %v121_v15 = vld [vmem:[%s111_s11 + $0x20] sm:$0xff]  ;;  %v134_v17 = vmin.f32 %v130_v10, %v126_v7  ;;  %v135_v18 = vmin.f32 %v131_v11, %v127_v8  ;;  %v136_v19 = vmin.f32 %v132_v12, %v128_v9  ;;  %v147_v9 = vand.u32 127, %v141_v0 }
  0x14   : > { %v125_v16 = vld [vmem:[%s111_s11 + $0x40] sm:$0xff]  ;;  %v129_v20 = vmin.f32 %v117_v14, %v121_v15 }
  0x15   : > { %v138_v21 = vsub.f32 0.0, %v134_v17  ;;  %v139_v22 = vsub.f32 0.0, %v135_v18  ;;  %v140_v23 = vsub.f32 0.0, %v136_v19  ;;  %vm190_vm5 = vcmp.gt.s32.totalorder %v147_v9, 0 }
  0x16   : > { %v133_v24 = vmin.f32 %v129_v20, %v125_v16  ;;  %vm236_vm6 = vcmp.lt.s32.totalorder %v147_v9, 31 }
  0x17   : > { %v153_v26 = vrot.slane %v138_v21, 7  ;;  %v154_v27 = vrot.slane %v139_v22, 7  ;;  %v171_v28 = vrot.slane %v139_v22, 1  ;;  %v172_v29 = vrot.slane %v140_v23, 1 }
  0x18   : > { %v137_v30 = vsub.f32 0.0, %v133_v24  ;;  %v155_v31 = vrot.slane %v140_v23, 7  ;;  %v170_v32 = vrot.slane %v138_v21, 1 }
  0x19   : > { %v158_v33 = vsel %vm156_vm0, %v153_v26, %v154_v27  ;;  %v174_v34 = vsel %vm173_vm1, %v171_v28, %v172_v29 }
  0x1a   : > { %v184_v35 = vmax.f32 %v158_v33, %v174_v34  ;;  %v152_v36 = vrot.slane %v137_v30, 7  ;;  %v169_v37 = vrot.slane %v137_v30, 1  ;;  %v157_v38 = vsel %vm156_vm0, %v154_v27, %v155_v31 }
  0x1b   : > { %v175_v48 = vsel %vm173_vm1, %v170_v32, %v171_v28 }
  0x1c   : > { %v387_v39 = vmax.f32 %v184_v35, %v139_v22  ;;  %v160_v40 = vsel %vm156_vm0, %v155_v31, %v152_v36  ;;  %v176_v41 = vsel %vm173_vm1, %v169_v37, %v170_v32  ;;  %v177_v42 = vsel %vm173_vm1, %v172_v29, %v169_v37 }
  0x1d   : > { %v161_v43 = vsel %vm148_vm2, %v160_v40, -3e+38  ;;  %v181_v44 = vsel %vm168_vm3, %v177_v42, -3e+38  ;;  %v159_v47 = vsel %vm156_vm0, %v152_v36, %v153_v26 }
  0x1e   : > { %198 = vrot.lane.b32.xlu1 %v387_v39, %s356_s12  ;;  %v182_v45 = vmax.f32 %v161_v43, %v176_v41  ;;  %v185_v46 = vmax.f32 %v157_v38, %v181_v44  ;;  %v183_v51 = vmax.f32 %v159_v47, %v175_v48 }
  0x20   : > { %v186_v49 = vmax.f32 %v182_v45, %v137_v30  ;;  %v395_v50 = vmax.f32 %v185_v46, %v140_v23  ;;  %v398_v52 = vmax.f32 %v183_v51, %v138_v21 }
  0x22   : > { %192 = vrot.lane.b32.xlu0 %v186_v49, %s356_s12 }
  0x26   : > { %201 = vrot.lane.b32.xlu1 %v395_v50, %s356_s12 }
  0x2a   : > { %195 = vrot.lane.b32.xlu0 %v398_v52, %s356_s12 }
  0x90   : > { %v199_v53 = vpop.permute.xlu1 %198 }
  0x91   : > { %v200_v54 = vsel %vm191_vm4, %v199_v53, %v387_v39 }
  0x92   : > { %208 = vrot.lane.b32.xlu0 %v200_v54, %s356_s12 }
  0x94   : > { %v193_v55 = vpop.permute.xlu0 %192 }
  0x95   : > { %v194_v56 = vsel %vm191_vm4, %v193_v55, %v186_v49 }
  0x96   : > { %204 = vrot.lane.b32.xlu2 %v194_v56, %s356_s12 }
  0x98   : > { %v202_v57 = vpop.permute.xlu1 %201 }
  0x99   : > { %v203_v58 = vsel %vm191_vm4, %v202_v57, %v395_v50 }
  0x9a   : > { %210 = vrot.lane.b32.xlu1 %v203_v58, %s356_s12 }
  0x9c   : > { %v196_v59 = vpop.permute.xlu0 %195 }
  0x9d   : > { %v197_v60 = vsel %vm191_vm4, %v196_v59, %v398_v52 }
  0x9e   : > { %206 = vrot.lane.b32.xlu2 %v197_v60, %s356_s12 }
  0xf0   : > { %v205_v61 = vpop.permute.xlu2 %204 }
  0xf1   : > { %v212_v62 = vsel %vm191_vm4, %v205_v61, %v186_v49 }
  0xf2   : > { %220 = vrot.lane.b32.xlu2 %v212_v62, %s357_s13 }
  0xf8   : > { %v207_v63 = vpop.permute.xlu2 %206 }
  0xf9   : > { %v213_v1 = vsel %vm191_vm4, %v207_v63, %v398_v52 }
  0xfa   : > { %222 = vrot.lane.b32.xlu0 %v213_v1, %s357_s13 }
 0x102   : > { %237 = vrot.lane.b32.xlu0 %v212_v62, %s358_s14 }
 0x104   : > { %v209_v2 = vpop.permute.xlu0 %208 }
 0x105   : > { %v214_v3 = vsel %vm191_vm4, %v209_v2, %v387_v39 }
 0x106   : > { %224 = vrot.lane.b32.xlu1 %v214_v3, %s357_s13 }
 0x10c   : > { %v211_v4 = vpop.permute.xlu1 %210 }
 0x10d   : > { %v215_v5 = vsel %vm191_vm4, %v211_v4, %v395_v50 }
 0x10e   : > { %226 = vrot.lane.b32.xlu2 %v215_v5, %s357_s13  ;;  %243 = vrot.lane.b32.xlu0 %v215_v5, %s358_s14 }
 0x10f   : > { %239 = vrot.lane.b32.xlu1 %v213_v1, %s358_s14 }
 0x116   : > { %241 = vrot.lane.b32.xlu2 %v214_v3, %s358_s14 }
 0x14c   : > { %v221_v6 = vpop.permute.xlu2 %220 }
 0x14d   : > { %v232_v11 = vsel %vm190_vm5, %v221_v6, -3e+38 }
 0x168   : > { %v227_v7 = vpop.permute.xlu2 %226 }
 0x169   : > { %v235_v23 = vsel %vm190_vm5, %v227_v7, -3e+38 }
 0x16c   : > { %v223_v8 = vpop.permute.xlu0 %222 }
 0x16d   : > { %v233_v26 = vsel %vm190_vm5, %v223_v8, -3e+38 }
 0x170   : > { %v242_v13 = vpop.permute.xlu2 %241 }
 0x171   : > { %v251_v17 = vsel %vm236_vm6, %v242_v13, -3e+38 }
 0x174   : > { %v238_v10 = vpop.permute.xlu0 %237 }
 0x175   : > { %v249_v12 = vsel %vm236_vm6, %v238_v10, -3e+38 }
 0x176   : > { %v253_v14 = vmax.f32 %v232_v11, %v249_v12 }
 0x178   : > { %v257_v15 = vmax.f32 %v253_v14, %v186_v49  ;;  %v225_v16 = vpop.permute.xlu1 %224 }
 0x179   : > { %v234_v0 = vsel %vm190_vm5, %v225_v16, -3e+38 }
 0x17a   : > { %v261_v18 = vsub.f32 0.0, %v257_v15  ;;  %v255_v19 = vmax.f32 %v234_v0, %v251_v17 }
 0x17c   : > { %266 = vst.msk [vmem:[%s116_s18] sm:$0xff] %vm265_vm7, %v261_v18  ;;  %v259_v20 = vmax.f32 %v255_v19, %v387_v39 }
 0x17e   : > { %v263_v21 = vsub.f32 0.0, %v259_v20 }
 0x180   : > { %268 = vst.msk [vmem:[%s116_s18 + $0x10] sm:$0xff] %vm265_vm7, %v263_v21  ;;  %v244_v22 = vpop.permute.xlu0 %243 }
 0x181   : > { %v240_v24 = vpop.permute.xlu1 %239  ;;  %v252_v25 = vsel %vm236_vm6, %v244_v22, -3e+38 }
 0x182   : > { %v250_v27 = vsel %vm236_vm6, %v240_v24, -3e+38  ;;  %v256_v28 = vmax.f32 %v235_v23, %v252_v25 }
 0x183   : > { %v254_v29 = vmax.f32 %v233_v26, %v250_v27 }
 0x184   : > { %v260_v30 = vmax.f32 %v256_v28, %v395_v50 }
 0x185   : > { %v258_v31 = vmax.f32 %v254_v29, %v398_v52 }
 0x186   : > { %v264_v32 = vsub.f32 0.0, %v260_v30 }
 0x187   : > { %v262_v33 = vsub.f32 0.0, %v258_v31 }
 0x188   : > { %269 = vst.msk [vmem:[%s116_s18 + $0x18] sm:$0xff] %vm265_vm7, %v264_v32 }
 0x189   : > { %267 = vst.msk [vmem:[%s116_s18 + $0x8] sm:$0xff] %vm265_vm7, %v262_v33 }
 0x18a PF: > { %s11_s6 = sadd.s32 1, %s354_s6  }
 0x18b   : > { %p8_p4 = scmp.ge.s32.totalorder %s11_s6, 4  }
 0x18d   :  { %10 = sbr.rel (!%p8_p4) target bundleno = 1 (0x1), region = 54 }

// kernel: _lambda_.5
= control target key start
LH: loop header
LB: loop body
LE: loop exit
PB: predicated region body
PF: predicated region fallthrough
CT: control target
= control target key end

     0   :  { %s6886_s0 = inlined_call_operand.vmem [shape: f32[3,128,32], index: 0, kind: input, shape index: {}]   ;;  %s6887_s1 = inlined_call_operand.vmem [shape: f32[128,64], index: 1, kind: input, shape index: {}]   ;;  %s6888_s2 = inlined_call_operand.vmem [shape: f32[128,16], index: 2, kind: input, shape index: {}]   ;;  %s6889_s3 = inlined_call_operand.vmem [shape: f32[3,1,32], index: 3, kind: input, shape index: {}]   ;;  %s6890_s4 = inlined_call_operand.vmem [shape: f32[3,1,32], index: 4, kind: input, shape index: {}]   ;;  %s6891_s5 = inlined_call_operand.vmem [shape: f32[64,32], index: 5, kind: input, shape index: {}]   ;;  %s6892_s6 = inlined_call_operand.vmem [shape: f32[1,32], index: 6, kind: input, shape index: {}]   ;;  %s6893_s7 = inlined_call_operand.vmem [shape: f32[64,32], index: 7, kind: input, shape index: {}]   ;;  %s6894_s8 = inlined_call_operand.vmem [shape: f32[1,32], index: 8, kind: input, shape index: {}]   ;;  %s6895_s9 = inlined_call_operand.vmem [shape: f32[16,32], index: 9, kind: input, shape index: {}]   ;;  %s6896_s10 = inlined_call_operand.vmem [shape: f32[1,32], index: 10, kind: input, shape index: {}]   ;;  %s6897_s11 = inlined_call_operand.vmem [shape: f32[1,32], index: 11, kind: input, shape index: {}, may-alias: {11,17}]   ;;  %s6898_s12 = inlined_call_operand.vmem [shape: f32[1,32], index: 12, kind: input, shape index: {}, may-alias: {12,18}]   ;;  %s6899_s13 = inlined_call_operand.vmem [shape: f32[32,64], index: 13, kind: input, shape index: {}]   ;;  %s6900_s14 = inlined_call_operand.vmem [shape: f32[1,64], index: 14, kind: input, shape index: {}]   ;;  %s6901_s15 = inlined_call_operand.vmem [shape: f32[64,32], index: 15, kind: input, shape index: {}]   ;;  %s6902_s16 = inlined_call_operand.vmem [shape: f32[1,32], index: 16, kind: input, shape index: {}]   ;;  %s6903_s17 = inlined_call_operand.vmem [shape: f32[1,32], index: 17, kind: input, shape index: {}, may-alias: {11,17}]   ;;  %s6904_s18 = inlined_call_operand.vmem [shape: f32[1,32], index: 18, kind: input, shape index: {}, may-alias: {12,18}]   ;;  %s6905_s19 = inlined_call_operand.vmem [shape: f32[128,32], index: 19, kind: output, shape index: {}]  }
   0x1   :  { %6925 = sst [smem:[#allocation23_spill]] %s6886_s0 }
   0x2   :  { %6926 = sst [smem:[#allocation24_spill]] %s6887_s1 }
   0x3   :  { %6927 = sst [smem:[#allocation25_spill]] %s6888_s2 }
   0x4   :  { %6928 = sst [smem:[#allocation26_spill]] %s6889_s3 }
   0x5   :  { %6929 = sst [smem:[#allocation27_spill]] %s6890_s4 }
   0x6   :  { %6930 = sst [smem:[#allocation28_spill]] %s6891_s5 }
   0x7   :  { %s4144_s0 = smov 0   ;;  %s4146_s30 = smov 0  }
   0x8   :  { %s4148_s20 = smov 0  }
   0x9 LB: > { %s3606_s21 = sadd.s32 4294967295, %s4041_s20   ;;  %s4161_s1 = sadd.s32 1, %s4041_s20   ;;  %s4041_s20 = sphi %s4148_s20, %s7047_s20   ;;  %s4037_s30 = sphi %s4146_s30, %s7046_s30   ;;  %s4033_s0 = sphi %s4144_s0, %s7045_s0  }
   0xa   : > { %s33_s22 = ssub.s32 %s4041_s20, %s4161_s1  ;;  %s36_s2 = sadd.s32 1, %s4037_s30 }
   0xb   : > { %p34_p0 = scmp.eq.s32.totalorder %s33_s22, 0  ;;  %p43_p1 = scmp.ne.s32.totalorder %s4037_s30, %s4033_s0 }
   0xc   : > { %p44_p2 = scmp.eq.s32.totalorder %s4041_s20, 0  ;;  %p3609_p4 = scmp.ge.s32.totalorder %s4041_s20, 2 }
   0xd   : > { %s4170_s23 = scalar_select %p34_p0, %s4037_s30, %s36_s2  }
   0xe   : > { %p45_p3 = por %p44_p2, %p43_p1  ;;  %531 = sbr.rel (%p3609_p4) target bundleno = 53 (0x35), region = 80 }
  0x13   : > { %534 = sbr.rel (!%p45_p3) target bundleno = 53 (0x35), region = 84  ;;  %s536_s24 = sand.u32 (%p45_p3), 1, %s4037_s30  }
  0x14   : > { %s3745_s25 = sshll.u32 (%p45_p3), %s4041_s20, 6  ;;  %s3752_s3 = smul.u32 (%p45_p3), 192, %s536_s24 }
  0x15   : > { %s6931_s28 = sld [smem:[#allocation23_spill]] (%p45_p3) }
  0x16   : > { %s4183_s22 = scalar_lea.vmem (%p45_p3), [#allocation2], %s3752_s3 }
  0x1b   : > { %s4178_s29 = scalar_lea.vmem %s6931_s28, %s3745_s25 }
  0x1c   : > { %v616_v0 = vld [vmem:[%s4178_s29] sm:$0xff]  ;;  %v618_v1 = vld [vmem:[%s4178_s29 + $0x8] sm:$0xff]  ;;  %v620_v2 = vld [vmem:[%s4178_s29 + $0x10] sm:$0xff] }
  0x1d   : > { %617 = vst [vmem:[%s4183_s22] sm:$0xff] %v616_v0  ;;  %v622_v3 = vld [vmem:[%s4178_s29 + $0x18] sm:$0xff]  ;;  %v624_v4 = vld [vmem:[%s4178_s29 + $0x20] sm:$0xff]  ;;  %v626_v5 = vld [vmem:[%s4178_s29 + $0x28] sm:$0xff] }
  0x1e   : > { %619 = vst [vmem:[%s4183_s22 + $0x8] sm:$0xff] %v618_v1  ;;  %v628_v6 = vld [vmem:[%s4178_s29 + $0x30] sm:$0xff]  ;;  %v630_v7 = vld [vmem:[%s4178_s29 + $0x38] sm:$0xff]  ;;  %v632_v8 = vld [vmem:[%s4178_s29 + $0x80] sm:$0xff] }
  0x1f   : > { %621 = vst [vmem:[%s4183_s22 + $0x10] sm:$0xff] %v620_v2  ;;  %v634_v9 = vld [vmem:[%s4178_s29 + $0x88] sm:$0xff]  ;;  %v636_v10 = vld [vmem:[%s4178_s29 + $0x90] sm:$0xff]  ;;  %v638_v11 = vld [vmem:[%s4178_s29 + $0x98] sm:$0xff] }
  0x20   : > { %623 = vst [vmem:[%s4183_s22 + $0x18] sm:$0xff] %v622_v3  ;;  %v640_v12 = vld [vmem:[%s4178_s29 + $0xa0] sm:$0xff]  ;;  %v642_v13 = vld [vmem:[%s4178_s29 + $0xa8] sm:$0xff]  ;;  %v644_v14 = vld [vmem:[%s4178_s29 + $0xb0] sm:$0xff] }
  0x21   : > { %625 = vst [vmem:[%s4183_s22 + $0x20] sm:$0xff] %v624_v4  ;;  %v646_v15 = vld [vmem:[%s4178_s29 + $0xb8] sm:$0xff]  ;;  %v648_v16 = vld [vmem:[%s4178_s29 + $0x100] sm:$0xff]  ;;  %v650_v17 = vld [vmem:[%s4178_s29 + $0x108] sm:$0xff] }
  0x22   : > { %627 = vst [vmem:[%s4183_s22 + $0x28] sm:$0xff] %v626_v5  ;;  %v652_v18 = vld [vmem:[%s4178_s29 + $0x110] sm:$0xff]  ;;  %v654_v19 = vld [vmem:[%s4178_s29 + $0x118] sm:$0xff]  ;;  %v656_v20 = vld [vmem:[%s4178_s29 + $0x120] sm:$0xff] }
  0x23   : > { %629 = vst [vmem:[%s4183_s22 + $0x30] sm:$0xff] %v628_v6  ;;  %v658_v21 = vld [vmem:[%s4178_s29 + $0x128] sm:$0xff]  ;;  %v660_v22 = vld [vmem:[%s4178_s29 + $0x130] sm:$0xff]  ;;  %v662_v23 = vld [vmem:[%s4178_s29 + $0x138] sm:$0xff] }
  0x24   : > { %631 = vst [vmem:[%s4183_s22 + $0x38] sm:$0xff] %v630_v7 }
  0x25   : > { %633 = vst [vmem:[%s4183_s22 + $0x40] sm:$0xff] %v632_v8 }
  0x26   : > { %635 = vst [vmem:[%s4183_s22 + $0x48] sm:$0xff] %v634_v9 }
  0x27   : > { %637 = vst [vmem:[%s4183_s22 + $0x50] sm:$0xff] %v636_v10 }
  0x28   : > { %639 = vst [vmem:[%s4183_s22 + $0x58] sm:$0xff] %v638_v11 }
  0x29   : > { %641 = vst [vmem:[%s4183_s22 + $0x60] sm:$0xff] %v640_v12 }
  0x2a   : > { %643 = vst [vmem:[%s4183_s22 + $0x68] sm:$0xff] %v642_v13 }
  0x2b   : > { %645 = vst [vmem:[%s4183_s22 + $0x70] sm:$0xff] %v644_v14 }
  0x2c   : > { %647 = vst [vmem:[%s4183_s22 + $0x78] sm:$0xff] %v646_v15 }
  0x2d   : > { %649 = vst [vmem:[%s4183_s22 + $0x80] sm:$0xff] %v648_v16 }
  0x2e   : > { %651 = vst [vmem:[%s4183_s22 + $0x88] sm:$0xff] %v650_v17 }
  0x2f   : > { %653 = vst [vmem:[%s4183_s22 + $0x90] sm:$0xff] %v652_v18 }
  0x30   : > { %655 = vst [vmem:[%s4183_s22 + $0x98] sm:$0xff] %v654_v19 }
  0x31   : > { %657 = vst [vmem:[%s4183_s22 + $0xa0] sm:$0xff] %v656_v20 }
  0x32   : > { %659 = vst [vmem:[%s4183_s22 + $0xa8] sm:$0xff] %v658_v21 }
  0x33   : > { %661 = vst [vmem:[%s4183_s22 + $0xb0] sm:$0xff] %v660_v22 }
  0x34   : > { %663 = vst [vmem:[%s4183_s22 + $0xb8] sm:$0xff] %v662_v23 }
  0x35 PF: > { %p3612_p5 = scmp.ge.s32.totalorder %s4041_s20, 1  ;;  %p686_p6 = scmp.lt.s32.totalorder %s4041_s20, 3 }
  0x37   : > { %p687_p7 = pnand %p3612_p5, %p686_p6 }
  0x39   : > { %690 = sbr.rel (%p687_p7) target bundleno = 1539 (0x603), region = 130 }
  0x3e   : > { %s693_s2 = sand.u32 1, %s4033_s0   ;;  %vm1006_vm0 = vcmask 261120   ;;  %v4043_v6 = vmov 32.0   ;;  %s6933_s5 = sld [smem:[#allocation28_spill]]  ;;  %vm797_vm2 = vcmask 523264  }
  0x3f   : > { %s3753_s24 = smul.u32 192, %s693_s2  ;;  %3794 = vrcp.f32 %v4043_v6  ;;  %s3613_s26 = sshll.u32 %s3606_s21, 3 }
  0x40   : > { %p760_p8 = scmp.lt.s32.totalorder %s3613_s26, 15  ;;  %s6934_s28 = sld [smem:[#allocation24_spill]] }
  0x41   : > { %s4233_s25 = scalar_lea.vmem [#allocation2], %s3753_s24  ;;  %s6951_s0 = sld [smem:[#allocation26_spill]] }
  0x42   : > { %v4236_v24 = vld [vmem:[%s4233_s25 + $0x80] sm:$0xff]  ;;  %v4239_v25 = vld [vmem:[%s4233_s25 + $0x48] sm:$0xff]  ;;  %v4266_v36 = vld [vmem:[%s4233_s25 + $0x50] sm:$0xff]  ;;  %s7049_s26 = smov (!%p760_p8, %s3613_s26), 15  ;;  %s6961_s4 = sld [smem:[#allocation27_spill]] }
  0x43   : > { %v4242_v26 = vld [vmem:[%s4233_s25] sm:$0xff]  ;;  %v2092_v27 = vsel %vm1006_vm0, %v4236_v24, 0.0  ;;  %v1556_v28 = vsel %vm1006_vm0, %v4239_v25, 0.0  ;;  %v4251_v30 = vld [vmem:[%s4233_s25 + $0x88] sm:$0xff]  ;;  %v4269_v37 = vld [vmem:[%s4233_s25 + $0x90] sm:$0xff]  ;;  %v1559_v39 = vsel %vm1006_vm0, %v4266_v36, 0.0 }
  0x44   : > { %v1007_v29 = vsel %vm1006_vm0, %v4242_v26, 0.0  ;;  %2093 = vadd.xlane.f32.xlu1 %v2092_v27  ;;  %1557 = vadd.xlane.f32.xlu2 %v1556_v28  ;;  %v4254_v31 = vld [vmem:[%s4233_s25 + $0x8] sm:$0xff]  ;;  %v4257_v32 = vld [vmem:[%s4233_s25 + $0x40] sm:$0xff]  ;;  %v2095_v33 = vsel %vm1006_vm0, %v4251_v30, 0.0  ;;  %v4272_v38 = vld [vmem:[%s4233_s25 + $0x10] sm:$0xff]  ;;  %v2098_v40 = vsel %vm1006_vm0, %v4269_v37, 0.0 }
  0x45   : > { %1008 = vadd.xlane.f32.xlu0 %v1007_v29  ;;  %v1010_v34 = vsel %vm1006_vm0, %v4254_v31, 0.0  ;;  %v1553_v35 = vsel %vm1006_vm0, %v4257_v32, 0.0  ;;  %v1013_v41 = vsel %vm1006_vm0, %v4272_v38, 0.0  ;;  %v4281_v42 = vld [vmem:[%s4233_s25 + $0x58] sm:$0xff]  ;;  %v4296_v48 = vld [vmem:[%s4233_s25 + $0x60] sm:$0xff]  ;;  %v4311_v54 = vld [vmem:[%s4233_s25 + $0x68] sm:$0xff]  ;;  %v3795_v7 = vpop.eup %3794 }
  0x46   : > { %v4284_v43 = vld [vmem:[%s4233_s25 + $0x98] sm:$0xff]  ;;  %v1562_v45 = vsel %vm1006_vm0, %v4281_v42, 0.0  ;;  %v4299_v49 = vld [vmem:[%s4233_s25 + $0xa0] sm:$0xff]  ;;  %v1565_v51 = vsel %vm1006_vm0, %v4296_v48, 0.0  ;;  %v4314_v55 = vld [vmem:[%s4233_s25 + $0xa8] sm:$0xff]  ;;  %v1568_v57 = vsel %vm1006_vm0, %v4311_v54, 0.0  ;;  %vm1036_vm1 = vweird.f32 %v3795_v7 }
  0x47   : > { %v4287_v44 = vld [vmem:[%s4233_s25 + $0x18] sm:$0xff]  ;;  %v2101_v46 = vsel %vm1006_vm0, %v4284_v43, 0.0  ;;  %v4302_v50 = vld [vmem:[%s4233_s25 + $0x20] sm:$0xff]  ;;  %v2104_v52 = vsel %vm1006_vm0, %v4299_v49, 0.0  ;;  %v4317_v56 = vld [vmem:[%s4233_s25 + $0x28] sm:$0xff]  ;;  %v2107_v58 = vsel %vm1006_vm0, %v4314_v55, 0.0  ;;  %s6952_s21 = smov %s6951_s0 }
  0x48   : > { %v1016_v47 = vsel %vm1006_vm0, %v4287_v44, 0.0  ;;  %v1019_v53 = vsel %vm1006_vm0, %v4302_v50, 0.0  ;;  %v1022_v59 = vsel %vm1006_vm0, %v4317_v56, 0.0  ;;  %v4326_v60 = vld [vmem:[%s4233_s25 + $0x30] sm:$0xff]  ;;  %v4341_v2 = vld [vmem:[%s4233_s25 + $0x38] sm:$0xff]  ;;  %v1032_v8 = vmul.f32 32.0, %v3795_v7 }
  0x49   : > { %v4329_v61 = vld [vmem:[%s4233_s25 + $0xb0] sm:$0xff]  ;;  %v1025_v63 = vsel %vm1006_vm0, %v4326_v60, 0.0  ;;  %v4344_v3 = vld [vmem:[%s4233_s25 + $0x78] sm:$0xff]  ;;  %v1028_v4 = vsel %vm1006_vm0, %v4341_v2, 0.0  ;;  %s4473_s3 = sshll.u32 %s7049_s26, 3  ;;  %s7038_s26 = sld [smem:[#allocation25_spill]] }
  0x4a   : > { %v4332_v62 = vld [vmem:[%s4233_s25 + $0x70] sm:$0xff]  ;;  %v2110_v0 = vsel %vm1006_vm0, %v4329_v61, 0.0  ;;  %v1574_v5 = vsel %vm1006_vm0, %v4344_v3, 0.0  ;;  %v1033_v9 = vsub.f32 1.0, %v1032_v8  ;;  %s4492_s29 = scalar_lea.vmem %s6934_s28, %s4473_s3 }
  0x4b   : > { %v1571_v1 = vsel %vm1006_vm0, %v4332_v62, 0.0 }
  0x4c   : > { %2096 = vadd.xlane.f32.xlu2 %v2095_v33  ;;  %1011 = vadd.xlane.f32.xlu1 %v1010_v34  ;;  %v1034_v10 = vmul.f32 %v3795_v7, %v1033_v9 }
  0x4d   : > { %1554 = vadd.xlane.f32.xlu0 %v1553_v35 }
  0x4e   : > { %v1035_v11 = vadd.f32 %v3795_v7, %v1034_v10 }
  0x4f   : > { %s6261_s27 = scalar_lea.vmem %s7038_s26, %s4473_s3 }
  0x50   : > { %v4350_v12 = vsel %vm1036_vm1, %v3795_v7, %v1035_v11 }
  0x51   : > { %6932 = vst [vmem:[#allocation3_spill] sm:$0xff] %v4350_v12 }
  0x54   : > { %1560 = vadd.xlane.f32.xlu1 %v1559_v39  ;;  %2099 = vadd.xlane.f32.xlu2 %v2098_v40 }
  0x55   : > { %1014 = vadd.xlane.f32.xlu0 %v1013_v41 }
  0x5c   : > { %1563 = vadd.xlane.f32.xlu1 %v1562_v45  ;;  %2102 = vadd.xlane.f32.xlu2 %v2101_v46 }
  0x5d   : > { %1017 = vadd.xlane.f32.xlu0 %v1016_v47 }
  0x64   : > { %1566 = vadd.xlane.f32.xlu1 %v1565_v51  ;;  %2105 = vadd.xlane.f32.xlu2 %v2104_v52 }
  0x65   : > { %1020 = vadd.xlane.f32.xlu0 %v1019_v53 }
  0x6c   : > { %1569 = vadd.xlane.f32.xlu1 %v1568_v57  ;;  %2108 = vadd.xlane.f32.xlu2 %v2107_v58 }
  0x6d   : > { %1023 = vadd.xlane.f32.xlu0 %v1022_v59 }
  0x74   : > { %1026 = vadd.xlane.f32.xlu1 %v1025_v63  ;;  %2111 = vadd.xlane.f32.xlu2 %v2110_v0 }
  0x75   : > { %1572 = vadd.xlane.f32.xlu0 %v1571_v1 }
  0x7c   : > { %1029 = vadd.xlane.f32.xlu1 %v1028_v4 }
  0x7d   : > { %1575 = vadd.xlane.f32.xlu0 %v1574_v5 }
  0xb7   : > { %v2094_v13 = vpop.xlane.xlu1 %2093  ;;  %v1558_v14 = vpop.xlane.xlu2 %1557 }
  0xb8   : > { %v2116_v15 = vmul.f32 %v2094_v13, %v4350_v12  ;;  %v1009_v16 = vpop.xlane.xlu0 %1008  ;;  %v1578_v33 = vmul.f32 %v1558_v14, %v4350_v12  ;;  %v4415_v13 = vld [vmem:[%s4233_s25 + $0xb8] sm:$0xff] }
  0xb9   : > { %v1038_v17 = vmul.f32 %v4350_v12, %v1009_v16 }
  0xba   : > { %v4355_v18 = vsub.f32 %v4236_v24, %v2116_v15  ;;  %v4384_v46 = vsub.f32 %v4239_v25, %v1578_v33  ;;  %v792_v15 = vld [vmem:[%s6933_s5 + $0x38] sm:$0xff] }
  0xbb   : > { %v4358_v19 = vsub.f32 %v4242_v26, %v1038_v17  ;;  %830 = vmatpush.msra.mxu0 %v792_v15 }
  0xbc   : > { %v2132_v20 = vmul.f32 %v4355_v18, %v4355_v18  ;;  %v1594_v58 = vmul.f32 %v4384_v46, %v4384_v46 }
  0xbd   : > { %v1054_v21 = vmul.f32 %v4358_v19, %v4358_v19 }
  0xbe   : > { %v2140_v22 = vsel %vm1006_vm0, %v2132_v20, 0.0  ;;  %v1604_v1 = vsel %vm1006_vm0, %v1594_v58, 0.0 }
  0xbf   : > { %v2097_v23 = vpop.xlane.xlu2 %2096  ;;  %2141 = vadd.xlane.f32.xlu1 %v2140_v22  ;;  %v1012_v27 = vpop.xlane.xlu1 %1011  ;;  %v1062_v28 = vsel %vm1006_vm0, %v1054_v21, 0.0 }
  0xc0   : > { %v2117_v29 = vmul.f32 %v2097_v23, %v4350_v12  ;;  %v1039_v24 = vmul.f32 %v4350_v12, %v1012_v27  ;;  %1063 = vadd.xlane.f32.xlu0 %v1062_v28  ;;  %v1555_v26 = vpop.xlane.xlu0 %1554 }
  0xc1   : > { %v1577_v34 = vmul.f32 %v1555_v26, %v4350_v12  ;;  %v790_v26 = vld [vmem:[%s6933_s5 + $0x28] sm:$0xff] }
  0xc2   : > { %v4371_v35 = vsub.f32 %v4251_v30, %v2117_v29  ;;  %v4374_v39 = vsub.f32 %v4254_v31, %v1039_v24  ;;  %v791_v24 = vld [vmem:[%s6933_s5 + $0x30] sm:$0xff] }
  0xc3   : > { %v4377_v40 = vsub.f32 %v4257_v32, %v1577_v34  ;;  %831 = vmatpush.msra.mxu0 %v791_v24 }
  0xc4   : > { %v2133_v41 = vmul.f32 %v4371_v35, %v4371_v35  ;;  %v1055_v45 = vmul.f32 %v4374_v39, %v4374_v39 }
  0xc5   : > { %v1593_v47 = vmul.f32 %v4377_v40, %v4377_v40  ;;  %832 = vmatpush.msra.mxu0 %v790_v26  ;;  %v778_v26 = vld [vmem:[%s4492_s29 + $0x8] sm:$0xff] }
  0xc6   : > { %v2143_v30 = vsel %vm1006_vm0, %v2133_v41, 0.0  ;;  %v1065_v31 = vsel %vm1006_vm0, %v1055_v45, 0.0  ;;  %v789_v45 = vld [vmem:[%s6933_s5 + $0x20] sm:$0xff] }
  0xc7   : > { %2144 = vadd.xlane.f32.xlu1 %v2143_v30  ;;  %v1561_v51 = vpop.xlane.xlu1 %1560  ;;  %v1601_v32 = vsel %vm1006_vm0, %v1593_v47, 0.0  ;;  %v2100_v52 = vpop.xlane.xlu2 %2099  ;;  %833 = vmatpush.msra.mxu0 %v789_v45 }
  0xc8   : > { %v1579_v53 = vmul.f32 %v1561_v51, %v4350_v12  ;;  %1066 = vadd.xlane.f32.xlu0 %v1065_v31  ;;  %1602 = vadd.xlane.f32.xlu2 %v1601_v32  ;;  %v1015_v57 = vpop.xlane.xlu0 %1014  ;;  %v2118_v10 = vmul.f32 %v2100_v52, %v4350_v12  ;;  %v788_v51 = vld [vmem:[%s6933_s5 + $0x18] sm:$0xff] }
  0xc9   : > { %v1040_v25 = vmul.f32 %v4350_v12, %v1015_v57  ;;  %v787_v57 = vld [vmem:[%s6933_s5 + $0x10] sm:$0xff]  ;;  %834 = vmatpush.msra.mxu0 %v788_v51 }
  0xca   : > { %v4396_v59 = vsub.f32 %v4266_v36, %v1579_v53  ;;  %v4426_v17 = vsub.f32 %v4269_v37, %v2118_v10 }
  0xcb   : > { %v4399_v63 = vsub.f32 %v4272_v38, %v1040_v25  ;;  %835 = vmatpush.msra.mxu0 %v787_v57 }
  0xcc   : > { %v1595_v0 = vmul.f32 %v4396_v59, %v4396_v59  ;;  %v2134_v29 = vmul.f32 %v4426_v17, %v4426_v17 }
  0xcd   : > { %v1056_v4 = vmul.f32 %v4399_v63, %v4399_v63 }
  0xce   : > { %v1607_v5 = vsel %vm1006_vm0, %v1595_v0, 0.0 }
  0xcf   : > { %1608 = vadd.xlane.f32.xlu1 %v1607_v5  ;;  %v1564_v6 = vpop.xlane.xlu1 %1563  ;;  %v1068_v7 = vsel %vm1006_vm0, %v1056_v4, 0.0  ;;  %v2103_v8 = vpop.xlane.xlu2 %2102  ;;  %v786_v4 = vld [vmem:[%s6933_s5 + $0x8] sm:$0xff] }
  0xd0   : > { %v1580_v36 = vmul.f32 %v1564_v6, %v4350_v12  ;;  %1605 = vadd.xlane.f32.xlu2 %v1604_v1  ;;  %1069 = vadd.xlane.f32.xlu0 %v1068_v7  ;;  %v1018_v38 = vpop.xlane.xlu0 %1017  ;;  %v2119_v28 = vmul.f32 %v2103_v8, %v4350_v12 }
  0xd1   : > { %v1041_v9 = vmul.f32 %v4350_v12, %v1018_v38  ;;  %836 = vmatpush.msra.mxu0 %v786_v4  ;;  %v783_v4 = vld [vmem:[%s4492_s29 + $0x30] sm:$0xff] }
  0xd2   : > { %v4412_v11 = vsub.f32 %v4281_v42, %v1580_v36  ;;  %v2113_v42 = vsel %vm1006_vm0, %v4415_v13, 0.0  ;;  %v4459_v30 = vsub.f32 %v4284_v43, %v2119_v28 }
  0xd3   : > { %v4418_v14 = vsub.f32 %v4287_v44, %v1041_v9  ;;  %v777_v9 = vld [vmem:[%s4492_s29] sm:$0xff] }
  0xd4   : > { %v1596_v16 = vmul.f32 %v4412_v11, %v4412_v11  ;;  %v2135_v0 = vmul.f32 %v4459_v30, %v4459_v30 }
  0xd5   : > { %v1057_v20 = vmul.f32 %v4418_v14, %v4418_v14 }
  0xd6   : > { %v1610_v44 = vsel %vm1006_vm0, %v1596_v16, 0.0 }
  0xd7   : > { %1611 = vadd.xlane.f32.xlu1 %v1610_v44  ;;  %v1567_v21 = vpop.xlane.xlu1 %1566  ;;  %v1071_v22 = vsel %vm1006_vm0, %v1057_v20, 0.0  ;;  %v2106_v34 = vpop.xlane.xlu2 %2105 }
  0xd8   : > { %v1581_v23 = vmul.f32 %v1567_v21, %v4350_v12  ;;  %2114 = vadd.xlane.f32.xlu2 %v2113_v42  ;;  %1072 = vadd.xlane.f32.xlu0 %v1071_v22  ;;  %v1021_v37 = vpop.xlane.xlu0 %1020  ;;  %v2120_v58 = vmul.f32 %v2106_v34, %v4350_v12 }
  0xd9   : > { %v1042_v27 = vmul.f32 %v4350_v12, %v1021_v37 }
  0xda   : > { %v4448_v33 = vsub.f32 %v4296_v48, %v1581_v23  ;;  %v2146_v48 = vsel %vm1006_vm0, %v2134_v29, 0.0  ;;  %v4500_v36 = vsub.f32 %v4299_v49, %v2120_v58  ;;  %v781_v58 = vld [vmem:[%s4492_s29 + $0x20] sm:$0xff] }
  0xdb   : > { %v4451_v41 = vsub.f32 %v4302_v50, %v1042_v27 }
  0xdc   : > { %v1597_v47 = vmul.f32 %v4448_v33, %v4448_v33  ;;  %v2136_v44 = vmul.f32 %v4500_v36, %v4500_v36 }
  0xdd   : > { %v1058_v31 = vmul.f32 %v4451_v41, %v4451_v41 }
  0xde   : > { %v1613_v50 = vsel %vm1006_vm0, %v1597_v47, 0.0  ;;  %v2152_v27 = vsel %vm1006_vm0, %v2136_v44, 0.0 }
  0xdf   : > { %1614 = vadd.xlane.f32.xlu1 %v1613_v50  ;;  %v1570_v32 = vpop.xlane.xlu1 %1569  ;;  %v1074_v52 = vsel %vm1006_vm0, %v1058_v31, 0.0  ;;  %v2109_v7 = vpop.xlane.xlu2 %2108 }
  0xe0   : > { %v1582_v53 = vmul.f32 %v1570_v32, %v4350_v12  ;;  %2147 = vadd.xlane.f32.xlu2 %v2146_v48  ;;  %1075 = vadd.xlane.f32.xlu0 %v1074_v52  ;;  %v1024_v43 = vpop.xlane.xlu0 %1023  ;;  %v2121_v20 = vmul.f32 %v2109_v7, %v4350_v12 }
  0xe1   : > { %v1043_v25 = vmul.f32 %v4350_v12, %v1024_v43 }
  0xe2   : > { %v4480_v1 = vsub.f32 %v4311_v54, %v1582_v53  ;;  %v785_v54 = vld [vmem:[%s6933_s5] sm:$0xff]  ;;  %v4523_v37 = vsub.f32 %v4314_v55, %v2121_v20  ;;  %s6822_s5 = scalar_lea.vmem %s6905_s19, %s4473_s3 }
  0xe3   : > { %v4486_v5 = vsub.f32 %v4317_v56, %v1043_v25  ;;  %v2149_v56 = vsel %vm1006_vm0, %v2135_v0, 0.0  ;;  %837 = vmatpush.msra.mxu0 %v785_v54  ;;  %v780_v25 = vld [vmem:[%s4492_s29 + $0x18] sm:$0xff]  ;;  %v782_v0 = vld [vmem:[%s4492_s29 + $0x28] sm:$0xff] }
  0xe4   : > { %v1598_v6 = vmul.f32 %v4480_v1, %v4480_v1  ;;  %3619 = vmatmul.msk.f32.vlgmr.msra.gmra.mxu0 %vm797_vm2, %v777_v9  ;;  %v2137_v48 = vmul.f32 %v4523_v37, %v4523_v37 }
  0xe5   : > { %v1059_v38 = vmul.f32 %v4486_v5, %v4486_v5 }
  0xe6   : > { %v1616_v8 = vsel %vm1006_vm0, %v1598_v6, 0.0  ;;  %v2155_v52 = vsel %vm1006_vm0, %v2137_v48, 0.0  ;;  %v784_v6 = vld [vmem:[%s4492_s29 + $0x38] sm:$0xff] }
  0xe7   : > { %1617 = vadd.xlane.f32.xlu1 %v1616_v8  ;;  %v1027_v10 = vpop.xlane.xlu1 %1026  ;;  %v1077_v15 = vsel %vm1006_vm0, %v1059_v38, 0.0  ;;  %v2112_v24 = vpop.xlane.xlu2 %2111 }
  0xe8   : > { %v1044_v16 = vmul.f32 %v4350_v12, %v1027_v10  ;;  %2150 = vadd.xlane.f32.xlu2 %v2149_v56  ;;  %1078 = vadd.xlane.f32.xlu0 %v1077_v15  ;;  %v1573_v49 = vpop.xlane.xlu0 %1572  ;;  %v2122_v47 = vmul.f32 %v2112_v24, %v4350_v12 }
  0xe9   : > { %v1583_v42 = vmul.f32 %v1573_v49, %v4350_v12 }
  0xea   : > { %v4515_v21 = vsub.f32 %v4326_v60, %v1044_v16  ;;  %v4546_v32 = vsub.f32 %v4329_v61, %v2122_v47 }
  0xeb   : > { %v4518_v22 = vsub.f32 %v4332_v62, %v1583_v42 }
  0xec   : > { %v1060_v23 = vmul.f32 %v4515_v21, %v4515_v21  ;;  %3620 = vmatmul.msk.f32.gmra.mxu0 %vm797_vm2, %v778_v26  ;;  %6937 = vst [vmem:[#allocation6_spill] sm:$0xff] %v4546_v32  ;;  %v2138_v61 = vmul.f32 %v4546_v32, %v4546_v32 }
  0xed   : > { %v1599_v28 = vmul.f32 %v4518_v22, %v4518_v22 }
  0xee   : > { %v1080_v29 = vsel %vm1006_vm0, %v1060_v23, 0.0  ;;  %v2158_v57 = vsel %vm1006_vm0, %v2138_v61, 0.0 }
  0xef   : > { %v1030_v60 = vpop.xlane.xlu1 %1029  ;;  %v1619_v34 = vsel %vm1006_vm0, %v1599_v28, 0.0 }
  0xf0   : > { %v1045_v62 = vmul.f32 %v4350_v12, %v1030_v60  ;;  %2153 = vadd.xlane.f32.xlu2 %v2152_v27  ;;  %1081 = vadd.xlane.f32.xlu0 %v1080_v29  ;;  %v1576_v45 = vpop.xlane.xlu0 %1575 }
  0xf1   : > { %1620 = vadd.xlane.f32.xlu1 %v1619_v34  ;;  %v1584_v55 = vmul.f32 %v1576_v45, %v4350_v12 }
  0xf2   : > { %v4538_v31 = vsub.f32 %v4341_v2, %v1045_v62  ;;  %v779_v2 = vld [vmem:[%s4492_s29 + $0x10] sm:$0xff] }
  0xf3   : > { %v4541_v50 = vsub.f32 %v4344_v3, %v1584_v55 }
  0xf4   : > { %6935 = vst [vmem:[#allocation4_spill] sm:$0xff] %v4538_v31  ;;  %v1061_v51 = vmul.f32 %v4538_v31, %v4538_v31  ;;  %3621 = vmatmul.msk.f32.gmra.mxu0 %vm797_vm2, %v779_v2 }
  0xf5   : > { %6936 = vst [vmem:[#allocation5_spill] sm:$0xff] %v4541_v50  ;;  %v1600_v53 = vmul.f32 %v4541_v50, %v4541_v50 }
  0xf6   : > { %v1083_v43 = vsel %vm1006_vm0, %v1061_v51, 0.0 }
  0xf7   : > { %v1622_v3 = vsel %vm1006_vm0, %v1600_v53, 0.0 }
  0xf8   : > { %2156 = vadd.xlane.f32.xlu2 %v2155_v52  ;;  %1084 = vadd.xlane.f32.xlu0 %v1083_v43 }
  0xf9   : > { %1623 = vadd.xlane.f32.xlu1 %v1622_v3 }
  0xfc   : > { %3622 = vmatmul.msk.f32.gmra.mxu0 %vm797_vm2, %v780_v25 }
 0x100   : > { %2159 = vadd.xlane.f32.xlu2 %v2158_v57 }
 0x104   : > { %3623 = vmatmul.msk.f32.gmra.mxu0 %vm797_vm2, %v781_v58 }
 0x10c   : > { %3624 = vmatmul.msk.f32.gmra.mxu0 %vm797_vm2, %v782_v0 }
 0x114   : > { %3625 = vmatmul.msk.f32.gmra.mxu0 %vm797_vm2, %v783_v4 }
 0x11c   : > { %3626 = vmatmul.msk.f32.gmra.mxu0 %vm797_vm2, %v784_v6 }
 0x132   : > { %v2142_v7 = vpop.xlane.xlu1 %2141 }
 0x133   : > { %v1064_v54 = vpop.xlane.xlu0 %1063  ;;  %v2164_v56 = vmul.f32 %v2142_v7, %v4350_v12 }
 0x134   : > { %v1086_v15 = vmul.f32 %v1064_v54, %v4350_v12 }
 0x135   : > { %v4569_v10 = vadd.f32 1e-06, %v2164_v56 }
 0x136   : > { %v4573_v16 = vadd.f32 1e-06, %v1086_v15 }
 0x137   : > { %3796 = vrsqrt.f32 %v4569_v10  ;;  %vm2186_vm3 = vweird.f32 %v4569_v10 }
 0x138   : > { %3798 = vrsqrt.f32 %v4573_v16  ;;  %vm1108_vm6 = vweird.f32 %v4573_v16 }
 0x13a   : > { %v2145_v38 = vpop.xlane.xlu1 %2144 }
 0x13b   : > { %v1603_v8 = vpop.xlane.xlu2 %1602  ;;  %v1067_v9 = vpop.xlane.xlu0 %1066  ;;  %v2165_v20 = vmul.f32 %v2145_v38, %v4350_v12 }
 0x13c   : > { %v1625_v23 = vmul.f32 %v1603_v8, %v4350_v12  ;;  %v1087_v29 = vmul.f32 %v1067_v9, %v4350_v12 }
 0x13d   : > { %v4578_v27 = vpop.eup %3796  ;;  %v4580_v28 = vadd.f32 1e-06, %v2165_v20 }
 0x13e   : > { %v4583_v24 = vadd.f32 1e-06, %v1625_v23  ;;  %v2181_v60 = vmul.f32 %v4578_v27, %v4569_v10  ;;  %v4589_v45 = vpop.eup %3798  ;;  %v4592_v47 = vadd.f32 1e-06, %v1087_v29  ;;  %vm2187_vm4 = vweird.f32 %v4578_v27 }
 0x13f   : > { %3800 = vrsqrt.f32 %v4580_v28  ;;  %v1103_v53 = vmul.f32 %v4589_v45, %v4573_v16  ;;  %vm4646_vm5 = vmor %vm2186_vm3, %vm2187_vm4  ;;  %vm1109_vm7 = vweird.f32 %v4589_v45  ;;  %vm2196_vm8 = vweird.f32 %v4580_v28 }
 0x140   : > { %3802 = vrsqrt.f32 %v4583_v24  ;;  %v2182_v52 = vmul.f32 %v4578_v27, %v2181_v60  ;;  %vm1647_vm10 = vweird.f32 %v4583_v24  ;;  %vm4689_vm11 = vmor %vm1108_vm6, %vm1109_vm7  ;;  %vm1118_vm13 = vweird.f32 %v4592_v47 }
 0x141   : > { %3804 = vrsqrt.f32 %v4592_v47  ;;  %v1104_v0 = vmul.f32 %v4589_v45, %v1103_v53 }
 0x142   : > { %v1609_v49 = vpop.xlane.xlu1 %1608  ;;  %v2183_v58 = vmul.f32 0.5, %v2182_v52 }
 0x143   : > { %v1606_v42 = vpop.xlane.xlu2 %1605  ;;  %v1070_v44 = vpop.xlane.xlu0 %1069  ;;  %v1627_v26 = vmul.f32 %v1609_v49, %v4350_v12  ;;  %v1105_v49 = vmul.f32 0.5, %v1104_v0 }
 0x144   : > { %v1626_v34 = vmul.f32 %v1606_v42, %v4350_v12  ;;  %v1088_v2 = vmul.f32 %v1070_v44, %v4350_v12  ;;  %v2184_v15 = vsub.f32 1.5, %v2183_v58 }
 0x145   : > { %v4595_v48 = vadd.f32 1e-06, %v1627_v26  ;;  %v4610_v25 = vpop.eup %3800 }
 0x146   : > { %v4601_v43 = vadd.f32 1e-06, %v1626_v34  ;;  %v4614_v4 = vadd.f32 1e-06, %v1088_v2  ;;  %v4616_v6 = vpop.eup %3802  ;;  %vm2197_vm9 = vweird.f32 %v4610_v25 }
 0x147   : > { %3806 = vrsqrt.f32 %v4595_v48  ;;  %v4625_v9 = vpop.eup %3804  ;;  %v1642_v42 = vmul.f32 %v4616_v6, %v4583_v24  ;;  %vm1648_vm12 = vweird.f32 %v4616_v6  ;;  %vm1667_vm15 = vweird.f32 %v4595_v48  ;;  %vm4722_vm1 = vmor %vm2196_vm8, %vm2197_vm9 }
 0x148   : > { %3808 = vrsqrt.f32 %v4601_v43  ;;  %v1113_v52 = vmul.f32 %v4625_v9, %v4592_v47  ;;  %vm1119_vm14 = vweird.f32 %v4625_v9  ;;  %vm1128_vm3 = vweird.f32 %v4614_v4 }
 0x149   : > { %3810 = vrsqrt.f32 %v4614_v4  ;;  %vm4768_vm8 = vmor %vm1118_vm13, %vm1119_vm14 }
 0x14a   : > { %v1612_v62 = vpop.xlane.xlu1 %1611 }
 0x14b   : > { %v2115_v55 = vpop.xlane.xlu2 %2114  ;;  %v1073_v3 = vpop.xlane.xlu0 %1072  ;;  %v1628_v61 = vmul.f32 %v1612_v62, %v4350_v12  ;;  %v2185_v62 = vmul.f32 %v4578_v27, %v2184_v15 }
 0x14c   : > { %v2123_v51 = vmul.f32 %v2115_v55, %v4350_v12  ;;  %v1089_v38 = vmul.f32 %v1073_v3, %v4350_v12  ;;  %v1106_v55 = vsub.f32 1.5, %v1105_v49 }
 0x14d   : > { %v4618_v7 = vadd.f32 1e-06, %v1628_v61  ;;  %v4630_v20 = vpop.eup %3806 }
 0x14e   : > { %v4608_v57 = vsub.f32 %v4415_v13, %v2123_v51  ;;  %v2191_v13 = vmul.f32 %v4610_v25, %v4580_v28  ;;  %v4634_v23 = vpop.eup %3808  ;;  %v4638_v29 = vadd.f32 1e-06, %v1089_v38  ;;  %v1643_v51 = vmul.f32 %v4616_v6, %v1642_v42 }
 0x14f   : > { %3812 = vrsqrt.f32 %v4618_v7  ;;  %v1662_v53 = vmul.f32 %v4630_v20, %v4595_v48  ;;  %v1652_v2 = vmul.f32 %v4634_v23, %v4601_v43  ;;  %v4654_v61 = vpop.eup %3810  ;;  %v1107_v15 = vmul.f32 %v4589_v45, %v1106_v55 }
 0x150   : > { %6938 = vst [vmem:[#allocation7_spill] sm:$0xff] %v4608_v57  ;;  %v2139_v8 = vmul.f32 %v4608_v57, %v4608_v57  ;;  %v2192_v34 = vmul.f32 %v4610_v25, %v2191_v13  ;;  %3814 = vrsqrt.f32 %v4638_v29  ;;  %v1644_v49 = vmul.f32 0.5, %v1643_v51 }
 0x151   : > { %v1114_v42 = vmul.f32 %v4625_v9, %v1113_v52  ;;  %vm1668_vm4 = vweird.f32 %v4630_v20  ;;  %vm1658_vm6 = vweird.f32 %v4634_v23  ;;  %vm1129_vm7 = vweird.f32 %v4654_v61 }
 0x152   : > { %v1615_v54 = vpop.xlane.xlu1 %1614  ;;  %v2161_v44 = vsel %vm1006_vm0, %v2139_v8, 0.0  ;;  %v2193_v38 = vmul.f32 0.5, %v2192_v34  ;;  %v2189_v8 = vsel %vm4646_vm5, %v4578_v27, %v2185_v62  ;;  %vm4742_vm5 = vmor %vm1647_vm10, %vm1648_vm12  ;;  %vm1657_vm10 = vweird.f32 %v4601_v43 }
 0x153   : > { %v2148_v56 = vpop.xlane.xlu2 %2147  ;;  %v1629_v26 = vmul.f32 %v1615_v54, %v4350_v12  ;;  %2162 = vadd.xlane.f32.xlu2 %v2161_v44  ;;  %v1076_v60 = vpop.xlane.xlu0 %1075  ;;  %v1653_v44 = vmul.f32 %v4634_v23, %v1652_v2  ;;  %v4683_v55 = vmul.f32 %v2189_v8, %v4355_v18  ;;  %v1111_v18 = vsel %vm4689_vm11, %v4589_v45, %v1107_v15  ;;  %vm4778_vm9 = vmor %vm1667_vm15, %vm1668_vm4 }
 0x154   : > { %v2166_v0 = vmul.f32 %v2148_v56, %v4350_v12  ;;  %v1663_v56 = vmul.f32 %v4630_v20, %v1662_v53  ;;  %v2194_v52 = vsub.f32 1.5, %v2193_v38  ;;  %v1645_v53 = vsub.f32 1.5, %v1644_v49  ;;  %vm4805_vm13 = vmor %vm1657_vm10, %vm1658_vm6 }
 0x155   : > { %v4657_v58 = vadd.f32 1e-06, %v1629_v26  ;;  %v4660_v54 = vpop.eup %3812  ;;  %v1123_v26 = vmul.f32 %v4654_v61, %v4614_v4  ;;  %v1115_v2 = vmul.f32 0.5, %v1114_v42  ;;  %v1090_v16 = vmul.f32 %v1076_v60, %v4350_v12  ;;  %vm4825_vm14 = vmor %vm1128_vm3, %vm1129_vm7 }
 0x156   : > { %v1672_v34 = vmul.f32 %v4660_v54, %v4618_v7  ;;  %v4679_v27 = vadd.f32 1e-06, %v2166_v0  ;;  %v4696_v10 = vpop.eup %3814  ;;  %v1654_v38 = vmul.f32 0.5, %v1653_v44  ;;  %v4710_v15 = vmul.f32 %v1111_v18, %v4358_v19 }
 0x157   : > { %3816 = vrsqrt.f32 %v4657_v58  ;;  %v1124_v8 = vmul.f32 %v4654_v61, %v1123_v26  ;;  %v2195_v60 = vmul.f32 %v4610_v25, %v2194_v52  ;;  %v1133_v49 = vmul.f32 %v4696_v10, %v4638_v29 }
 0x158   : > { %v1673_v57 = vmul.f32 %v4660_v54, %v1672_v34  ;;  %3818 = vrsqrt.f32 %v4679_v27  ;;  %v1646_v19 = vmul.f32 %v4616_v6, %v1645_v53  ;;  %v4728_v26 = vadd.f32 1e-06, %v1090_v16 }
 0x159   : > { %v1125_v18 = vmul.f32 0.5, %v1124_v8  ;;  %v2199_v53 = vsel %vm4722_vm1, %v4610_v25, %v2195_v60  ;;  %v1134_v16 = vmul.f32 %v4696_v10, %v1133_v49  ;;  %vm1677_vm11 = vweird.f32 %v4618_v7 }
 0x15a   : > { %v1618_v13 = vpop.xlane.xlu1 %1617  ;;  %v1650_v25 = vsel %vm4742_vm5, %v4616_v6, %v1646_v19  ;;  %vm1678_vm12 = vweird.f32 %v4660_v54  ;;  %vm1138_vm1 = vweird.f32 %v4638_v29  ;;  %v4848_v6 = vld [vmem:[%s6952_s21] ss:$0 sm:$0xff]  ;;  %vm1139_vm3 = vweird.f32 %v4696_v10 }
 0x15b   : > { %v2151_v3 = vpop.xlane.xlu2 %2150  ;;  %v1630_v62 = vmul.f32 %v1618_v13, %v4350_v12  ;;  %v1079_v0 = vpop.xlane.xlu0 %1078  ;;  %v1664_v13 = vmul.f32 0.5, %v1663_v56  ;;  %v1126_v49 = vsub.f32 1.5, %v1125_v18  ;;  %v1135_v44 = vmul.f32 0.5, %v1134_v16  ;;  %vm4830_vm15 = vmor %vm1677_vm11, %vm1678_vm12 }
 0x15c   : > { %v2167_v51 = vmul.f32 %v2151_v3, %v4350_v12  ;;  %v1091_v42 = vmul.f32 %v1079_v0, %v4350_v12  ;;  %v1116_v3 = vsub.f32 1.5, %v1115_v2  ;;  %v1674_v0 = vmul.f32 0.5, %v1673_v57  ;;  %vm4871_vm5 = vmor %vm1138_vm1, %vm1139_vm3 }
 0x15d   : > { %v4706_v32 = vadd.f32 1e-06, %v1630_v62  ;;  %v4716_v56 = vpop.eup %3816  ;;  %v1665_v34 = vsub.f32 1.5, %v1664_v13  ;;  %v1655_v62 = vsub.f32 1.5, %v1654_v38  ;;  %v1721_v48 = vmul.f32 %v1650_v25, %v4377_v40 }
 0x15e   : > { %v4733_v28 = vadd.f32 1e-06, %v2167_v51  ;;  %v1682_v57 = vmul.f32 %v4716_v56, %v4657_v58  ;;  %v4749_v13 = vadd.f32 1e-06, %v1091_v42  ;;  %v4751_v38 = vpop.eup %3818  ;;  %v1117_v8 = vmul.f32 %v4625_v9, %v1116_v3 }
 0x15f   : > { %3820 = vrsqrt.f32 %v4706_v32  ;;  %v1666_v24 = vmul.f32 %v4630_v20, %v1665_v34  ;;  %v1656_v60 = vmul.f32 %v4634_v23, %v1655_v62  ;;  %v1675_v42 = vsub.f32 1.5, %v1674_v0  ;;  %v4791_v34 = vld [vmem:[%s6951_s0 + $0x1] ss:$0 sm:$0xff] }
 0x160   : > { %3822 = vrsqrt.f32 %v4728_v26  ;;  %v1683_v47 = vmul.f32 %v4716_v56, %v1682_v57  ;;  %v2201_v19 = vmul.f32 %v4751_v38, %v4679_v27  ;;  %v4798_v62 = vmul.f32 %v2199_v53, %v4371_v35 }
 0x161   : > { %3824 = vrsqrt.f32 %v4733_v28  ;;  %v1670_v35 = vsel %vm4778_vm9, %v4630_v20, %v1666_v24  ;;  %v1127_v0 = vmul.f32 %v4654_v61, %v1126_v49  ;;  %v1676_v2 = vmul.f32 %v4660_v54, %v1675_v42 }
 0x162   : > { %3826 = vrsqrt.f32 %v4749_v13  ;;  %v1136_v20 = vsub.f32 1.5, %v1135_v44  ;;  %v1684_v57 = vmul.f32 0.5, %v1683_v47  ;;  %v4840_v4 = vmul.f32 %v4791_v34, %v1721_v48 }
 0x163   : > { %v2154_v45 = vpop.xlane.xlu2 %2153  ;;  %v1082_v43 = vpop.xlane.xlu0 %1081  ;;  %v1723_v49 = vmul.f32 %v1670_v35, %v4396_v59  ;;  %v1680_v44 = vsel %vm4830_vm15, %v4660_v54, %v1676_v2  ;;  %vm1687_vm4 = vweird.f32 %v4657_v58  ;;  %v4886_v35 = vld [vmem:[%s6961_s4] ss:$0 sm:$0xff]  ;;  %vm1688_vm6 = vweird.f32 %v4716_v56 }
 0x164   : > { %v2168_v52 = vmul.f32 %v2154_v45, %v4350_v12  ;;  %v1621_v31 = vpop.xlane.xlu1 %1620  ;;  %v1137_v47 = vmul.f32 %v4696_v10, %v1136_v20  ;;  %vm2206_vm7 = vweird.f32 %v4679_v27  ;;  %vm4912_vm9 = vmor %vm1687_vm4, %vm1688_vm6  ;;  %vm2207_vm10 = vweird.f32 %v4751_v38 }
 0x165   : > { %v1631_v45 = vmul.f32 %v1621_v31, %v4350_v12  ;;  %v4786_v3 = vpop.eup %3820  ;;  %v1131_v31 = vsel %vm4825_vm14, %v4654_v61, %v1127_v0  ;;  %v4889_v29 = vmul.f32 %v4791_v34, %v1723_v49  ;;  %vm1697_vm11 = vweird.f32 %v4706_v32 }
 0x166   : > { %v4761_v51 = vadd.f32 1e-06, %v2168_v52  ;;  %v1121_v52 = vsel %vm4768_vm8, %v4625_v9, %v1117_v8  ;;  %v4812_v7 = vpop.eup %3822  ;;  %v1660_v9 = vsel %vm4805_vm13, %v4634_v23, %v1656_v60  ;;  %v2202_v23 = vmul.f32 %v4751_v38, %v2201_v19  ;;  %vm4941_vm13 = vmor %vm2206_vm7, %vm2207_vm10 }
 0x167   : > { %v4810_v40 = vadd.f32 1e-06, %v1631_v45  ;;  %v1692_v25 = vmul.f32 %v4786_v3, %v4706_v32  ;;  %v4837_v8 = vpop.eup %3824  ;;  %v1183_v24 = vmul.f32 %v1121_v52, %v4374_v39  ;;  %v1092_v45 = vmul.f32 %v1082_v43, %v4350_v12 }
 0x168   : > { %3828 = vrsqrt.f32 %v4761_v51  ;;  %v4850_v60 = vpop.eup %3826  ;;  %v1143_v42 = vmul.f32 %v4812_v7, %v4728_v26  ;;  %v1722_v39 = vmul.f32 %v1660_v9, %v4384_v46  ;;  %v1685_v19 = vsub.f32 1.5, %v1684_v57 }
 0x169   : > { %3830 = vrsqrt.f32 %v4810_v40  ;;  %v2203_v48 = vmul.f32 0.5, %v2202_v23  ;;  %v1693_v52 = vmul.f32 %v4786_v3, %v1692_v25  ;;  %v2211_v61 = vmul.f32 %v4837_v8, %v4733_v28 }
 0x16a   : > { %v1153_v54 = vmul.f32 %v4850_v60, %v4749_v13  ;;  %v4879_v18 = vadd.f32 1e-06, %v1092_v45  ;;  %v1193_v43 = vmul.f32 %v4848_v6, %v4710_v15  ;;  %v1144_v9 = vmul.f32 %v4812_v7, %v1143_v42 }
 0x16b   : > { %v4895_v0 = vmul.f32 %v4791_v34, %v1722_v39  ;;  %v4898_v53 = vmul.f32 %v1131_v31, %v4399_v63  ;;  %v1724_v15 = vmul.f32 %v1680_v44, %v4412_v11  ;;  %v1141_v20 = vsel %vm4871_vm5, %v4696_v10, %v1137_v47  ;;  %v2157_v42 = vpop.xlane.xlu2 %2156 }
 0x16c   : > { %v1686_v57 = vmul.f32 %v4716_v56, %v1685_v19  ;;  %v2204_v23 = vsub.f32 1.5, %v2203_v48  ;;  %vm1148_vm8 = vweird.f32 %v4728_v26  ;;  %v1694_v25 = vmul.f32 0.5, %v1693_v52 }
 0x16d   : > { %v2212_v11 = vmul.f32 %v4837_v8, %v2211_v61  ;;  %v1154_v45 = vmul.f32 %v4850_v60, %v1153_v54  ;;  %3832 = vrsqrt.f32 %v4879_v18  ;;  %v4920_v10 = vadd.f32 %v4886_v35, %v1193_v43 }
 0x16e   : > { %v4865_v59 = vpop.eup %3828  ;;  %v1145_v49 = vmul.f32 0.5, %v1144_v9  ;;  %v1194_v58 = vmul.f32 %v4848_v6, %v1183_v24  ;;  %v4926_v39 = vmul.f32 %v4791_v34, %v1724_v15  ;;  %v4929_v31 = vmul.f32 %v1141_v20, %v4418_v14 }
 0x16f   : > { %v2221_v2 = vmul.f32 %v4865_v59, %v4761_v51  ;;  %v4903_v16 = vpop.eup %3830  ;;  %v1690_v19 = vsel %vm4912_vm9, %v4716_v56, %v1686_v57  ;;  %v2205_v48 = vmul.f32 %v4751_v38, %v2204_v23  ;;  %v1695_v52 = vsub.f32 1.5, %v1694_v25  ;;  %v1624_v25 = vpop.xlane.xlu1 %1623 }
 0x170   : > { %6964 = vst [vmem:[#allocation8_spill] sm:$0xff] %v4926_v39  ;;  %v1702_v47 = vmul.f32 %v4903_v16, %v4810_v40  ;;  %vm2216_vm12 = vweird.f32 %v4733_v28  ;;  %v2213_v14 = vmul.f32 0.5, %v2212_v11  ;;  %v1155_v46 = vmul.f32 0.5, %v1154_v45 }
 0x171   : > { %v2222_v44 = vmul.f32 %v4865_v59, %v2221_v2  ;;  %v2169_v61 = vmul.f32 %v2157_v42, %v4350_v12  ;;  %v4947_v54 = vmul.f32 0.70710677, %v4920_v10  ;;  %v1146_v43 = vsub.f32 1.5, %v1145_v49  ;;  %v1085_v49 = vpop.xlane.xlu0 %1084 }
 0x172   : > { %vm1149_vm14 = vweird.f32 %v4812_v7  ;;  %vm1158_vm15 = vweird.f32 %v4749_v13  ;;  %v4952_v56 = vadd.f32 %v4886_v35, %v1194_v58  ;;  %vm1698_vm1 = vweird.f32 %v4786_v3 }
 0x173   : > { %v4954_v27 = vpop.eup %3832  ;;  %v2223_v9 = vmul.f32 0.5, %v2222_v44  ;;  %v1703_v15 = vmul.f32 %v4903_v16, %v1702_v47  ;;  %v4959_v2 = vand.u32 2147483647, %v4947_v54  ;;  %v1725_v20 = vmul.f32 %v1690_v19, %v4448_v33  ;;  %vm4976_vm5 = vmor %vm1697_vm11, %vm1698_vm1  ;;  %v2160_v24 = vpop.xlane.xlu2 %2159 }
 0x174   : > { %v2209_v57 = vsel %vm4941_vm13, %v4751_v38, %v2205_v48  ;;  %v1696_v23 = vmul.f32 %v4786_v3, %v1695_v52  ;;  %vm2226_vm3 = vweird.f32 %v4761_v51  ;;  %v2214_v63 = vsub.f32 1.5, %v2213_v14  ;;  %vm4990_vm7 = vmor %vm1148_vm8, %vm1149_vm14  ;;  %v5064_v51 = vld [vmem:[%s6892_s6] ss:$0 sm:$0xff] }
 0x175   : > { %v1156_v11 = vsub.f32 1.5, %v1155_v46  ;;  %vm1707_vm4 = vweird.f32 %v4810_v40  ;;  %v4968_v45 = vadd.f32 1e-06, %v2169_v61  ;;  %v1236_v42 = vmul.f32 0.3275911, %v4959_v2 }
 0x176   : > { %v1147_v33 = vmul.f32 %v4812_v7, %v1146_v43  ;;  %vm2217_vm6 = vweird.f32 %v4837_v8  ;;  %v1163_v58 = vmul.f32 %v4954_v27, %v4879_v18  ;;  %v4984_v44 = vmul.f32 0.70710677, %v4952_v56  ;;  %v5110_v43 = vld [vmem:[%s6952_s21 + $0x2] ss:$0 sm:$0xff] }
 0x177   : > { %vm1159_vm9 = vweird.f32 %v4850_v60  ;;  %v2224_v32 = vsub.f32 1.5, %v2223_v9  ;;  %v1704_v19 = vmul.f32 0.5, %v1703_v15  ;;  %v1632_v48 = vmul.f32 %v1624_v25, %v4350_v12  ;;  %vm5011_vm8 = vmor %vm2216_vm12, %vm2217_vm6 }
 0x178   : > { %vm2227_vm10 = vweird.f32 %v4865_v59  ;;  %v1093_v52 = vmul.f32 %v1085_v49, %v4350_v12  ;;  %v4998_v14 = vadd.f32 1.0, %v1236_v42  ;;  %v5001_v46 = vand.u32 2147483647, %v4984_v44  ;;  %vm5024_vm11 = vmor %vm1158_vm15, %vm1159_vm9 }
 0x179   : > { %v1700_v26 = vsel %vm4976_vm5, %v4786_v3, %v1696_v23  ;;  %v2215_v61 = vmul.f32 %v4837_v8, %v2214_v63  ;;  %v1157_v9 = vmul.f32 %v4850_v60, %v1156_v11  ;;  %3834 = vrsqrt.f32 %v4968_v45  ;;  %vm5047_vm12 = vmor %vm2226_vm3, %vm2227_vm10 }
 0x17a   : > { %v1151_v15 = vsel %vm4990_vm7, %v4812_v7, %v1147_v33  ;;  %v1164_v28 = vmul.f32 %v4954_v27, %v1163_v58  ;;  %3836 = vrcp.f32 %v4998_v14  ;;  %v1195_v23 = vmul.f32 %v4848_v6, %v4898_v53  ;;  %v839_v58 = vpop.f32.mrf.mxu0 }
 0x17b   : > { %v2225_v25 = vmul.f32 %v4865_v59, %v2224_v32  ;;  %v1705_v63 = vsub.f32 1.5, %v1704_v19  ;;  %v5033_v11 = vadd.f32 1e-06, %v1632_v48  ;;  %v2170_v7 = vmul.f32 %v2160_v24, %v4350_v12  ;;  %v5087_v48 = vld [vmem:[%s6961_s4 + $0x1] ss:$0 sm:$0xff] }
 0x17c   : > { %v5037_v13 = vmul.f32 %v4791_v34, %v1725_v20  ;;  %v5040_v49 = vmul.f32 %v2209_v57, %v4426_v17  ;;  %v1726_v42 = vmul.f32 %v1700_v26, %v4480_v1  ;;  %v1237_v33 = vmul.f32 0.3275911, %v5001_v46 }
 0x17d   : > { %v2219_v20 = vsel %vm5011_vm8, %v4837_v8, %v2215_v61  ;;  %v1161_v17 = vsel %vm5024_vm11, %v4850_v60, %v1157_v9  ;;  %vm1708_vm13 = vweird.f32 %v4903_v16  ;;  %v5059_v1 = vadd.f32 1e-06, %v1093_v52 }
 0x17e   : > { %6975 = vst [vmem:[#allocation9_spill] sm:$0xff] %v5037_v13  ;;  %v5067_v57 = vmul.f32 %v1151_v15, %v4451_v41  ;;  %v1165_v38 = vmul.f32 0.5, %v1164_v28  ;;  %v5069_v47 = vadd.f32 1.0, %v1237_v33  ;;  %v5072_v8 = vadd.f32 %v4886_v35, %v1195_v23  ;;  %vm5102_vm15 = vmor %vm1707_vm4, %vm1708_vm13 }
 0x17f   : > { %6978 = vst [vmem:[#allocation10_spill] sm:$0xff] %v5059_v1  ;;  %v5074_v60 = vpop.eup %3834  ;;  %v2229_v32 = vsel %vm5047_vm12, %v4865_v59, %v2225_v25  ;;  %v1706_v19 = vmul.f32 %v4903_v16, %v1705_v63  ;;  %vm1168_vm14 = vweird.f32 %v4879_v18  ;;  %3838 = vrsqrt.f32 %v5033_v11 }
 0x180   : > { %6979 = vst [vmem:[#allocation11_spill] sm:$0xff] %v5072_v8  ;;  %v5082_v41 = vadd.f32 1e-06, %v2170_v7  ;;  %v3837_v52 = vpop.eup %3836  ;;  %v5090_v24 = vmul.f32 %v4791_v34, %v1726_v42  ;;  %v5093_v26 = vmul.f32 %v2219_v20, %v4459_v30  ;;  %v5096_v59 = vmul.f32 %v1161_v17, %v4486_v5 }
 0x181   : > { %3840 = vrcp.f32 %v5069_v47  ;;  %vm1169_vm1 = vweird.f32 %v4954_v27  ;;  %v5115_v30 = vadd.f32 %v5064_v51, %v839_v58  ;;  %v1253_v5 = vmul.f32 %v3837_v52, %v4998_v14 }
 0x182   : > { %6980 = vst [vmem:[#allocation12_spill] sm:$0xff] %v5082_v41  ;;  %3842 = vrsqrt.f32 %v5059_v1  ;;  %v5119_v40 = vmul.f32 %v2229_v32, %v4500_v36  ;;  %v1166_v9 = vsub.f32 1.5, %v1165_v38  ;;  %v2231_v15 = vmul.f32 %v5074_v60, %v4968_v45  ;;  %vm5179_vm7 = vmor %vm1168_vm14, %vm1169_vm1 }
 0x183   : > { %6981 = vst [vmem:[#allocation13_spill] sm:$0xff] %v5090_v24  ;;  %v5124_v3 = vmul.f32 0.70710677, %v5072_v8  ;;  %v1710_v28 = vsel %vm5102_vm15, %v4903_v16, %v1706_v19  ;;  %3844 = vrsqrt.f32 %v5082_v41  ;;  %v1254_v23 = vsub.f32 1.0, %v1253_v5  ;;  %v5146_v16 = vld [vmem:[%s6961_s4 + $0x2] ss:$0 sm:$0xff] }
 0x184   : > { %6982 = vst [vmem:[#allocation14_spill] sm:$0xff] %v5093_v26  ;;  %v5132_v25 = vadd.f32 %v5087_v48, %v4840_v4  ;;  %v5135_v36 = vmul.f32 0.5, %v4920_v10  ;;  %v1263_v63 = vand.u32 2147483648, %v4998_v14  ;;  %v2271_v42 = vmul.f32 %v5110_v43, %v4683_v55 }
 0x185   : > { %6985 = vst [vmem:[#allocation15_spill] sm:$0xff] %v5119_v40  ;;  %v5139_v7 = vand.u32 2147483647, %v5124_v3  ;;  %v5148_v53 = vpop.eup %3838  ;;  %v1255_v4 = vmul.f32 %v3837_v52, %v1254_v23  ;;  %vm1258_vm3 = vweird.f32 %v3837_v52  ;;  %v1261_v10 = vand.u32 2147483647, %v4998_v14 }
 0x186   : > { %6986 = vst [vmem:[#allocation16_spill] sm:$0xff] %v5124_v3  ;;  %v5152_v33 = vmul.f32 0.70710677, %v5132_v25  ;;  %v1727_v17 = vmul.f32 %v1710_v28, %v4518_v22  ;;  %v1167_v38 = vmul.f32 %v4954_v27, %v1166_v9  ;;  %v2232_v55 = vmul.f32 %v5074_v60, %v2231_v15 }
 0x187   : > { %v3841_v20 = vpop.eup %3840  ;;  %v1238_v58 = vmul.f32 0.3275911, %v5139_v7  ;;  %v1256_v19 = vadd.f32 %v3837_v52, %v1255_v4  ;;  %vm1257_vm4 = vweird.f32 %v4998_v14  ;;  %v1712_v23 = vmul.f32 %v5148_v53, %v5033_v11 }
 0x188   : > { %v5158_v32 = vpop.eup %3842  ;;  %v1268_v61 = vmul.f32 %v3841_v20, %v5069_v47  ;;  %v5163_v5 = vand.u32 2147483647, %v5152_v33  ;;  %vm1259_vm5 = vmor %vm1257_vm4, %vm1258_vm3  ;;  %v1264_v22 = vor.u32 1.1754944e-38, %v1263_v63  ;;  %v5170_v15 = vadd.f32 %v5146_v16, %v2271_v42 }
 0x189   : > { %v5167_v9 = vadd.f32 1.0, %v1238_v58  ;;  %v5172_v28 = vpop.eup %3844  ;;  %v1260_v4 = vsel %vm1259_vm5, %v3837_v52, %v1256_v19  ;;  %vm1262_vm6 = vcmp.eq.f32.partialorder %v1261_v10, 8.507059e+37  ;;  %v2233_v63 = vmul.f32 0.5, %v2232_v55 }
 0x18a   : > { %v1269_v14 = vsub.f32 1.0, %v1268_v61  ;;  %v1775_v12 = vmul.f32 0.3275911, %v5163_v5  ;;  %v5183_v58 = vsel %vm1262_vm6, %v1264_v22, %v1260_v4  ;;  %v1278_v42 = vand.u32 2147483648, %v5069_v47 }
 0x18b   : > { %3846 = vrcp.f32 %v5167_v9  ;;  %v1372_v52 = vmul.f32 1.0614054, %v5183_v58  ;;  %vm1273_vm9 = vweird.f32 %v3841_v20  ;;  %v1276_v19 = vand.u32 2147483647, %v5069_v47 }
 0x18c   : > { %v1270_v10 = vmul.f32 %v3841_v20, %v1269_v14  ;;  %v1173_v18 = vmul.f32 %v5158_v32, %v5059_v1  ;;  %v5191_v61 = vadd.f32 1.0, %v1775_v12  ;;  %v5194_v50 = vmul.f32 0.70710677, %v5170_v15 }
 0x18d   : > { %v1196_v55 = vmul.f32 %v4848_v6, %v4929_v31  ;;  %v1171_v22 = vsel %vm5179_vm7, %v4954_v27, %v1167_v38  ;;  %v3643_v4 = vadd.f32 -1.4531521, %v1372_v52  ;;  %vm1272_vm10 = vweird.f32 %v5069_v47 }
 0x18e   : > { %v1271_v14 = vadd.f32 %v3841_v20, %v1270_v10  ;;  %v1713_v40 = vmul.f32 %v5148_v53, %v1712_v23  ;;  %v1444_v13 = vsub.f32 0.0, %v4959_v2  ;;  %vm1274_vm8 = vmor %vm1272_vm10, %vm1273_vm9  ;;  %v1279_v12 = vor.u32 1.1754944e-38, %v1278_v42 }
 0x18f   : > { %3848 = vrcp.f32 %v5191_v61  ;;  %v1388_v8 = vmul.f32 %v3643_v4, %v5183_v58  ;;  %vm1277_vm11 = vcmp.eq.f32.partialorder %v1276_v19, 8.507059e+37  ;;  %v5207_v31 = vand.u32 2147483647, %v5194_v50 }
 0x190   : > { %v1275_v26 = vsel %vm1274_vm8, %v3841_v20, %v1271_v14  ;;  %v2234_v24 = vsub.f32 1.5, %v2233_v63  ;;  %v1174_v47 = vmul.f32 %v5158_v32, %v1173_v18  ;;  %v5215_v23 = vadd.f32 %v4886_v35, %v1196_v55 }
 0x191   : > { %v5209_v27 = vpop.eup %3846  ;;  %v5212_v38 = vsel %vm1277_vm11, %v1279_v12, %v1275_v26  ;;  %v1396_v42 = vadd.f32 1.4214138, %v1388_v8  ;;  %v5218_v52 = vmul.f32 0.5, %v4952_v56  ;;  %v5224_v19 = vmul.f32 %v4791_v34, %v1727_v17 }
 0x192   : > { %6989 = vst [vmem:[#allocation17_spill] sm:$0xff] %v5215_v23  ;;  %v1373_v20 = vmul.f32 1.0614054, %v5212_v38  ;;  %v1283_v10 = vmul.f32 %v5209_v27, %v5167_v9  ;;  %v5227_v63 = vmul.f32 %v1171_v22, %v4515_v21  ;;  %vm2236_vm12 = vweird.f32 %v4968_v45 }
 0x193   : > { %6990 = vst [vmem:[#allocation18_spill] sm:$0xff] %v5224_v19  ;;  %vm2237_vm13 = vweird.f32 %v5074_v60  ;;  %v1452_v8 = vmul.f32 %v1444_v13, %v4959_v2  ;;  %v2314_v56 = vmul.f32 0.3275911, %v5207_v31  ;;  %v5233_v26 = vmul.f32 0.5, %v1713_v40 }
 0x194   : > { %6991 = vst [vmem:[#allocation19_spill] sm:$0xff] %v5227_v63  ;;  %v1404_v18 = vmul.f32 %v1396_v42, %v5183_v58  ;;  %v3644_v55 = vadd.f32 -1.4531521, %v1373_v20  ;;  %v1284_v4 = vsub.f32 1.0, %v1283_v10  ;;  %v5237_v34 = vmul.f32 %v5074_v60, %v2234_v24  ;;  %vm5286_vm7 = vmor %vm2236_vm12, %vm2237_vm13 }
 0x195   : > { %v3849_v14 = vpop.eup %3848  ;;  %v5239_v21 = vmul.f32 0.5, %v1174_v47  ;;  %v5241_v17 = vadd.f32 1.0, %v2314_v56  ;;  %v5244_v22 = vmul.f32 0.70710677, %v5215_v23  ;;  %v5248_v2 = vmul.f32 %v5172_v28, %v5082_v41 }
 0x196   : > { %v3651_v13 = vadd.f32 -0.28449672, %v1404_v18  ;;  %v1285_v40 = vmul.f32 %v5209_v27, %v1284_v4  ;;  %v1792_v12 = vmul.f32 %v3849_v14, %v5191_v61  ;;  %v1460_v42 = vmul.f32 1.442695, %v1452_v8 }
 0x197   : > { %6992 = vst [vmem:[#allocation20_spill] sm:$0xff] %v5244_v22  ;;  %v1445_v24 = vsub.f32 0.0, %v5001_v46  ;;  %vm1288_vm14 = vweird.f32 %v5209_v27  ;;  %3850 = vrcp.f32 %v5241_v17  ;;  %v1389_v47 = vmul.f32 %v3644_v55, %v5212_v38 }
 0x198   : > { %v1286_v20 = vadd.f32 %v5209_v27, %v1285_v40  ;;  %v1293_v10 = vand.u32 2147483648, %v5167_v9  ;;  %v1793_v56 = vsub.f32 1.0, %v1792_v12  ;;  %vm1287_vm15 = vweird.f32 %v5167_v9 }
 0x199   : > { %v1291_v18 = vand.u32 2147483647, %v5167_v9  ;;  %v1802_v4 = vand.u32 2147483648, %v5191_v61  ;;  %v5262_v8 = vand.u32 2147483647, %v5244_v22  ;;  %v1420_v19 = vmul.f32 %v3651_v13, %v5183_v58  ;;  %vm5265_vm1 = vmor %vm1287_vm15, %vm1288_vm14 }
 0x19a   : > { %v1794_v55 = vmul.f32 %v3849_v14, %v1793_v56  ;;  %vm1797_vm3 = vweird.f32 %v3849_v14  ;;  %v1800_v40 = vand.u32 2147483647, %v5191_v61  ;;  %3852 = vpow2.f32 %v1460_v42 }
 0x19b   : > { %v1290_v9 = vsel %vm5265_vm1, %v5209_v27, %v1286_v20  ;;  %v1983_v12 = vsub.f32 0.0, %v5163_v5  ;;  %v1239_v23 = vmul.f32 0.3275911, %v5262_v8  ;;  %v1397_v63 = vadd.f32 1.4214138, %v1389_v47 }
 0x19c   : > { %v1294_v22 = vor.u32 1.1754944e-38, %v1293_v10  ;;  %v1795_v13 = vadd.f32 %v3849_v14, %v1794_v55  ;;  %vm1796_vm4 = vweird.f32 %v5191_v61  ;;  %vm1292_vm5 = vcmp.eq.f32.partialorder %v1291_v18, 8.507059e+37 }
 0x19d   : > { %v3851_v39 = vpop.eup %3850  ;;  %vm1798_vm6 = vmor %vm1796_vm4, %vm1797_vm3  ;;  %v1803_v56 = vor.u32 1.1754944e-38, %v1802_v4  ;;  %v5276_v3 = vadd.f32 1.0, %v1239_v23  ;;  %v5280_v42 = vadd.f32 %v5087_v48, %v4895_v0  ;;  %v1428_v27 = vadd.f32 0.2548296, %v1420_v19 }
 0x19e   : > { %v5290_v61 = vsel %vm1292_vm5, %v1294_v22, %v1290_v9  ;;  %v1799_v47 = vsel %vm1798_vm6, %v3849_v14, %v1795_v13  ;;  %vm1801_vm9 = vcmp.eq.f32.partialorder %v1800_v40, 8.507059e+37  ;;  %v2331_v0 = vmul.f32 %v3851_v39, %v5241_v17 }
 0x19f   : > { %6995 = vst [vmem:[#allocation21_spill] sm:$0xff] %v5280_v42  ;;  %v5293_v20 = vsel %vm1801_vm9, %v1803_v56, %v1799_v47  ;;  %3854 = vrcp.f32 %v5276_v3  ;;  %v1405_v10 = vmul.f32 %v1397_v63, %v5212_v38  ;;  %v1453_v45 = vmul.f32 %v1445_v24, %v5001_v46 }
 0x1a0   : > { %v1911_v18 = vmul.f32 1.0614054, %v5293_v20  ;;  %v1991_v19 = vmul.f32 %v1983_v12, %v5163_v5  ;;  %v3853_v22 = vpop.eup %3852  ;;  %v1374_v4 = vmul.f32 1.0614054, %v5290_v61  ;;  %v2332_v55 = vsub.f32 1.0, %v2331_v0 }
 0x1a1   : > { %v5307_v40 = vmul.f32 0.70710677, %v5280_v42  ;;  %v1436_v46 = vmul.f32 %v1428_v27, %v5183_v58  ;;  %v2341_v9 = vand.u32 2147483648, %v5241_v17  ;;  %v1446_v5 = vsub.f32 0.0, %v5139_v7 }
 0x1a2   : > { %v3669_v24 = vadd.f32 -1.4531521, %v1911_v18  ;;  %v2333_v12 = vmul.f32 %v3851_v39, %v2332_v55  ;;  %vm2336_vm10 = vweird.f32 %v3851_v39  ;;  %v2339_v13 = vand.u32 2147483647, %v5241_v17 }
 0x1a3   : > { %6998 = vst [vmem:[#allocation22_spill] sm:$0xff] %v5307_v40  ;;  %v3652_v56 = vadd.f32 -0.28449672, %v1405_v10  ;;  %v1462_v47 = vmul.f32 1.442695, %v1453_v45  ;;  %vm2335_vm8 = vweird.f32 %v5241_v17  ;;  %v1476_v27 = vmul.f32 %v3853_v22, %v1436_v46 }
 0x1a4   : > { %v1927_v0 = vmul.f32 %v3669_v24, %v5293_v20  ;;  %v1999_v23 = vmul.f32 1.442695, %v1991_v19  ;;  %v3645_v42 = vadd.f32 -1.4531521, %v1374_v4  ;;  %v2334_v1 = vadd.f32 %v3851_v39, %v2333_v12  ;;  %vm2337_vm11 = vmor %vm2335_vm8, %vm2336_vm10 }
 0x1a5   : > { %v3855_v14 = vpop.eup %3854  ;;  %v5317_v58 = vand.u32 2147483647, %v5307_v40  ;;  %v2342_v55 = vor.u32 1.1754944e-38, %v2341_v9  ;;  %v1454_v10 = vmul.f32 %v1446_v5, %v5139_v7  ;;  %vm2340_vm12 = vcmp.eq.f32.partialorder %v2339_v13, 8.507059e+37 }
 0x1a6   : > { %v1935_v18 = vadd.f32 1.4214138, %v1927_v0  ;;  %v1298_v63 = vmul.f32 %v3855_v14, %v5276_v3  ;;  %v2338_v45 = vsel %vm2337_vm11, %v3851_v39, %v2334_v1  ;;  %v2522_v19 = vsub.f32 0.0, %v5207_v31 }
 0x1a7   : > { %v1421_v4 = vmul.f32 %v3652_v56, %v5212_v38  ;;  %3856 = vpow2.f32 %v1999_v23  ;;  %v5324_v17 = vsel %vm2340_vm12, %v2342_v55, %v2338_v45  ;;  %vm1492_vm13 = vcmp.lt.f32.partialorder %v4947_v54, 0.0 }
 0x1a8   : > { %v1943_v24 = vmul.f32 %v1935_v18, %v5293_v20  ;;  %v1390_v22 = vmul.f32 %v3645_v42, %v5290_v61  ;;  %v2450_v46 = vmul.f32 1.0614054, %v5324_v17  ;;  %v1299_v9 = vsub.f32 1.0, %v1298_v63 }
 0x1a9   : > { %v1776_v7 = vmul.f32 0.3275911, %v5317_v58  ;;  %v1484_v39 = vsub.f32 1.0, %v1476_v27  ;;  %v1306_v5 = vand.u32 2147483647, %v5276_v3  ;;  %v1308_v12 = vand.u32 2147483648, %v5276_v3 }
 0x1aa   : > { %v3677_v1 = vadd.f32 -0.28449672, %v1943_v24  ;;  %v3695_v13 = vadd.f32 -1.4531521, %v2450_v46  ;;  %v1300_v56 = vmul.f32 %v3855_v14, %v1299_v9  ;;  %vm1303_vm14 = vweird.f32 %v3855_v14 }
 0x1ab   : > { %v5332_v23 = vadd.f32 1.0, %v1776_v7  ;;  %v1429_v0 = vadd.f32 0.2548296, %v1421_v4  ;;  %v2530_v42 = vmul.f32 %v2522_v19, %v5207_v31  ;;  %vm1302_vm15 = vweird.f32 %v5276_v3 }
 0x1ac   : > { %v1959_v18 = vmul.f32 %v3677_v1, %v5293_v20  ;;  %v1398_v63 = vadd.f32 1.4214138, %v1390_v22  ;;  %v2466_v27 = vmul.f32 %v3695_v13, %v5324_v17  ;;  %v1301_v55 = vadd.f32 %v3855_v14, %v1300_v56  ;;  %vm1304_vm1 = vmor %vm1302_vm15, %vm1303_vm14 }
 0x1ad   : > { %3858 = vrcp.f32 %v5332_v23  ;;  %v3857_v45 = vpop.eup %3856  ;;  %v1500_v24 = vsub.f32 0.0, %v1484_v39  ;;  %v1309_v9 = vor.u32 1.1754944e-38, %v1308_v12  ;;  %v1464_v7 = vmul.f32 1.442695, %v1454_v10 }
 0x1ae   : > { %3860 = vpow2.f32 %v1462_v47  ;;  %v1967_v46 = vadd.f32 0.2548296, %v1959_v18  ;;  %v2474_v4 = vadd.f32 1.4214138, %v2466_v27  ;;  %v1305_v40 = vsel %vm1304_vm1, %v3855_v14, %v1301_v55 }
 0x1af   : > { %vm1307_vm3 = vcmp.eq.f32.partialorder %v1306_v5, 8.507059e+37  ;;  %v1751_v31 = vmul.f32 0.5, %v5132_v25  ;;  %v2538_v19 = vmul.f32 1.442695, %v2530_v42  ;;  %v1437_v1 = vmul.f32 %v1429_v0, %v5212_v38 }
 0x1b0   : > { %v1975_v3 = vmul.f32 %v1967_v46, %v5293_v20  ;;  %v5341_v22 = vsel %vm1307_vm3, %v1309_v9, %v1305_v40  ;;  %v1406_v13 = vmul.f32 %v1398_v63, %v5290_v61  ;;  %vm2031_vm4 = vcmp.lt.f32.partialorder %v5152_v33, 0.0 }
 0x1b1   : > { %v2482_v47 = vmul.f32 %v2474_v4, %v5324_v17  ;;  %v1508_v10 = vsel %vm1492_vm13, %v1500_v24, %v1484_v39  ;;  %v5350_v5 = vmul.f32 0.5, %v5170_v15  ;;  %v2272_v25 = vmul.f32 %v5110_v43, %v4798_v62 }
 0x1b2   : > { %v2015_v14 = vmul.f32 %v3857_v45, %v1975_v3  ;;  %3862 = vpow2.f32 %v1464_v7  ;;  %v1375_v38 = vmul.f32 1.0614054, %v5341_v22  ;;  %v1197_v12 = vmul.f32 %v4848_v6, %v5067_v57 }
 0x1b3   : > { %v3859_v20 = vpop.eup %3858  ;;  %v3703_v40 = vadd.f32 -0.28449672, %v2482_v47  ;;  %3864 = vpow2.f32 %v2538_v19  ;;  %v1447_v54 = vsub.f32 0.0, %v5262_v8  ;;  %v1516_v15 = vadd.f32 1.0, %v1508_v10 }
 0x1b4   : > { %v3861_v56 = vpop.eup %3860  ;;  %v2023_v0 = vsub.f32 1.0, %v2015_v14  ;;  %v1807_v39 = vmul.f32 %v3859_v20, %v5332_v23  ;;  %v3653_v42 = vadd.f32 -0.28449672, %v1406_v13  ;;  %v1815_v55 = vand.u32 2147483647, %v5332_v23 }
 0x1b5   : > { %v5359_v18 = vmul.f32 %v3861_v56, %v1437_v1  ;;  %v2498_v62 = vmul.f32 %v3703_v40, %v5324_v17  ;;  %v5364_v45 = vadd.f32 %v5146_v16, %v2272_v25  ;;  %v3646_v24 = vadd.f32 -1.4531521, %v1375_v38 }
 0x1b6   : > { %v2039_v63 = vsub.f32 0.0, %v2023_v0  ;;  %v1808_v27 = vsub.f32 1.0, %v1807_v39  ;;  %v1817_v46 = vand.u32 2147483648, %v5332_v23  ;;  %v5368_v9 = vadd.f32 %v4886_v35, %v1197_v12 }
 0x1b7   : > { %v2506_v57 = vadd.f32 0.2548296, %v2498_v62  ;;  %vm1812_vm5 = vweird.f32 %v3859_v20  ;;  %v5373_v3 = vmul.f32 0.70710677, %v5364_v45  ;;  %v1524_v1 = vmul.f32 %v1516_v15, %v5135_v36 }
 0x1b8   : > { %v2047_v7 = vsel %vm2031_vm4, %v2039_v63, %v2023_v0  ;;  %v1809_v4 = vmul.f32 %v3859_v20, %v1808_v27  ;;  %v5375_v19 = vpop.eup %3862  ;;  %v1485_v13 = vsub.f32 1.0, %v5359_v18  ;;  %v5382_v10 = vadd.f32 %v5087_v48, %v4889_v29 }
 0x1b9   : > { %v2514_v47 = vmul.f32 %v2506_v57, %v5324_v17  ;;  %v3865_v14 = vpop.eup %3864  ;;  %vm1493_vm6 = vcmp.lt.f32.partialorder %v4984_v44, 0.0  ;;  %v2055_v33 = vadd.f32 1.0, %v2047_v7  ;;  %vm1811_vm9 = vweird.f32 %v5332_v23 }
 0x1ba   : > { %v1810_v25 = vadd.f32 %v3859_v20, %v1809_v4  ;;  %v5387_v40 = vand.u32 2147483647, %v5373_v3  ;;  %v1422_v36 = vmul.f32 %v3653_v42, %v5290_v61  ;;  %vm1813_vm10 = vmor %vm1811_vm9, %vm1812_vm5  ;;  %v1818_v17 = vor.u32 1.1754944e-38, %v1817_v46 }
 0x1bb   : > { %v2554_v38 = vmul.f32 %v3865_v14, %v2514_v47  ;;  %v5392_v12 = vmul.f32 0.70710677, %v5368_v9  ;;  %v1391_v29 = vmul.f32 %v3646_v24, %v5341_v22  ;;  %vm1816_vm8 = vcmp.eq.f32.partialorder %v1815_v55, 8.507059e+37 }
 0x1bc   : > { %v1814_v56 = vsel %vm1813_vm10, %v3859_v20, %v1810_v25  ;;  %v2315_v0 = vmul.f32 0.3275911, %v5387_v40  ;;  %v1984_v15 = vsub.f32 0.0, %v5317_v58  ;;  %v5400_v18 = vmul.f32 0.70710677, %v5382_v10 }
 0x1bd   : > { %v2562_v39 = vsub.f32 1.0, %v2554_v38  ;;  %v5396_v23 = vsel %vm1816_vm8, %v1818_v17, %v1814_v56  ;;  %v2063_v42 = vmul.f32 %v2055_v33, %v1751_v31  ;;  %v5406_v27 = vand.u32 2147483647, %v5392_v12 }
 0x1be   : > { %v1912_v62 = vmul.f32 1.0614054, %v5396_v23  ;;  %v5403_v63 = vadd.f32 1.0, %v2315_v0  ;;  %v1501_v20 = vsub.f32 0.0, %v1485_v13  ;;  %v1430_v55 = vadd.f32 0.2548296, %v1422_v36 }
 0x1bf   : > { %vm2570_vm11 = vcmp.lt.f32.partialorder %v5194_v50, 0.0  ;;  %v2578_v57 = vsub.f32 0.0, %v2562_v39  ;;  %v1532_v24 = vadd.f32 %v1524_v1, %v5115_v30  ;;  %v1399_v46 = vadd.f32 1.4214138, %v1391_v29 }
 0x1c0   : > { %v3670_v7 = vadd.f32 -1.4531521, %v1912_v62  ;;  %3866 = vrcp.f32 %v5403_v63  ;;  %v1455_v31 = vmul.f32 %v1447_v54, %v5262_v8  ;;  %v1992_v47 = vmul.f32 %v1984_v15, %v5317_v58 }
 0x1c1   : > { %v2586_v4 = vsel %vm2570_vm11, %v2578_v57, %v2562_v39  ;;  %v5414_v14 = vand.u32 2147483647, %v5400_v18  ;;  %v2071_v33 = vadd.f32 %v2063_v42, %v1532_v24  ;;  %v1240_v50 = vmul.f32 0.3275911, %v5406_v27  ;;  %v842_v39 = vpop.f32.mrf.mxu0 }
 0x1c2   : > { %v2594_v25 = vadd.f32 1.0, %v2586_v4  ;;  %v1928_v36 = vmul.f32 %v3670_v7, %v5396_v23  ;;  %v6999_v30 = vsel %vm5286_vm7, %v5074_v60, %v5237_v34  ;;  %v2242_v8 = vmul.f32 %v5172_v28, %v5248_v2 }
 0x1c3   : > { %v5424_v1 = vmul.f32 %v6999_v30, %v4523_v37  ;;  %v1509_v58 = vsel %vm1493_vm6, %v1501_v20, %v1485_v13  ;;  %v1438_v54 = vmul.f32 %v1430_v55, %v5290_v61  ;;  %v1407_v17 = vmul.f32 %v1399_v46, %v5341_v22 }
 0x1c4   : > { %v2602_v38 = vmul.f32 %v2594_v25, %v5350_v5  ;;  %v1936_v29 = vadd.f32 1.4214138, %v1928_v36  ;;  %v5433_v56 = vadd.f32 1.0, %v1240_v50  ;;  %v7000_v41 = vsub.f32 1.5, %v5233_v26 }
 0x1c5   : > { %v7001_v60 = vsub.f32 1.5, %v5239_v21  ;;  %v2001_v44 = vmul.f32 1.442695, %v1992_v47  ;;  %v1777_v2 = vmul.f32 0.3275911, %v5414_v14  ;;  %v5450_v26 = vmul.f32 0.5, %v2242_v8 }
 0x1c6   : > { %v5438_v37 = vmul.f32 %v5148_v53, %v7000_v41  ;;  %v3867_v61 = vpop.eup %3866  ;;  %v5446_v5 = vadd.f32 %v2602_v38, %v2071_v33  ;;  %v1466_v13 = vmul.f32 1.442695, %v1455_v31  ;;  %v1944_v0 = vmul.f32 %v1936_v29, %v5396_v23 }
 0x1c7   : > { %v5443_v34 = vmul.f32 %v5158_v32, %v7001_v60  ;;  %3868 = vrcp.f32 %v5433_v56  ;;  %v1517_v15 = vadd.f32 1.0, %v1509_v58  ;;  %v5453_v21 = vmul.f32 %v5375_v19, %v1438_v54 }
 0x1c8   : > { %v2346_v42 = vmul.f32 %v3867_v61, %v5403_v63  ;;  %v2620_v62 = vsel %vm1006_vm0, %v5446_v5, 0.0  ;;  %v3654_v20 = vadd.f32 -0.28449672, %v1407_v17  ;;  %v3678_v55 = vadd.f32 -0.28449672, %v1944_v0 }
 0x1c9   : > { %v2523_v57 = vsub.f32 0.0, %v5387_v40  ;;  %2621 = vadd.xlane.f32.xlu0 %v2620_v62  ;;  %3870 = vpow2.f32 %v2001_v44  ;;  %v2354_v46 = vand.u32 2147483647, %v5403_v63  ;;  %v5460_v7 = vadd.f32 1.0, %v1777_v2  ;;  %v7007_v62 = vld [vmem:[#allocation10_spill] sm:$0xff] }
 0x1ca   : > { %v2347_v24 = vsub.f32 1.0, %v2346_v42  ;;  %v5463_v4 = vadd.f32 %v5064_v51, %v842_v39  ;;  %3872 = vpow2.f32 %v1466_v13  ;;  %v1960_v19 = vmul.f32 %v3678_v55, %v5396_v23 }
 0x1cb   : > { %v2356_v31 = vand.u32 2147483648, %v5403_v63  ;;  %v5468_v47 = vmul.f32 %v1517_v15, %v5218_v52  ;;  %vm2351_vm7 = vweird.f32 %v3867_v61  ;;  %3874 = vrcp.f32 %v5460_v7  ;;  %v7006_v15 = vld [vmem:[#allocation22_spill] sm:$0xff] }
 0x1cc   : > { %v2348_v33 = vmul.f32 %v3867_v61, %v2347_v24  ;;  %v1486_v36 = vsub.f32 1.0, %v5453_v21  ;;  %v1423_v50 = vmul.f32 %v3654_v20, %v5341_v22  ;;  %v1968_v30 = vadd.f32 0.2548296, %v1960_v19 }
 0x1cd   : > { %v3869_v25 = vpop.eup %3868  ;;  %v2531_v8 = vmul.f32 %v2523_v57, %v5387_v40  ;;  %vm2350_vm12 = vweird.f32 %v5403_v63  ;;  %vm5475_vm13 = vcmp.eq.f32.partialorder %v2354_v46, 8.507059e+37  ;;  %v2357_v29 = vor.u32 1.1754944e-38, %v2356_v31 }
 0x1ce   : > { %v2349_v58 = vadd.f32 %v3867_v61, %v2348_v33  ;;  %v1313_v52 = vmul.f32 %v3869_v25, %v5433_v56  ;;  %v1976_v38 = vmul.f32 %v1968_v30, %v5396_v23  ;;  %vm5481_vm14 = vmor %vm2350_vm12, %vm2351_vm7  ;;  %v1321_v41 = vand.u32 2147483647, %v5433_v56 }
 0x1cf   : > { %v1323_v40 = vand.u32 2147483648, %v5433_v56  ;;  %v3871_v60 = vpop.eup %3870  ;;  %vm1717_vm15 = vweird.f32 %v5033_v11  ;;  %vm1718_vm1 = vweird.f32 %v5148_v53  ;;  %v2273_v23 = vmul.f32 %v5110_v43, %v5040_v49 }
 0x1d0   : > { %v2353_v63 = vsel %vm5481_vm14, %v3867_v61, %v2349_v58  ;;  %v1314_v44 = vsub.f32 1.0, %v1313_v52  ;;  %v1198_v2 = vmul.f32 %v4848_v6, %v5096_v59  ;;  %v5495_v13 = vpop.eup %3872  ;;  %v5497_v0 = vadd.f32 0.2548296, %v1423_v50 }
 0x1d1   : > { %v2016_v39 = vmul.f32 %v3871_v60, %v1976_v38  ;;  %vm2032_vm3 = vcmp.lt.f32.partialorder %v7006_v15, 0.0  ;;  %v5502_v42 = vsel %vm5475_vm13, %v2357_v29, %v2353_v63  ;;  %vm1318_vm4 = vweird.f32 %v3869_v25  ;;  %v3875_v61 = vpop.eup %3874  ;;  %vm5547_vm13 = vmor %vm1717_vm15, %vm1718_vm1 }
 0x1d2   : > { %vm1178_vm5 = vweird.f32 %v7007_v62  ;;  %vm1179_vm6 = vweird.f32 %v5158_v32  ;;  %v2451_v49 = vmul.f32 1.0614054, %v5502_v42  ;;  %v1315_v6 = vmul.f32 %v3869_v25, %v1314_v44 }
 0x1d3   : > { %v5508_v59 = vadd.f32 %v5146_v16, %v2273_v23  ;;  %v5511_v20 = vadd.f32 %v4886_v35, %v1198_v2  ;;  %v2024_v55 = vsub.f32 1.0, %v2016_v39  ;;  %vm1317_vm9 = vweird.f32 %v5433_v56  ;;  %vm5562_vm15 = vmor %vm1178_vm5, %vm1179_vm6 }
 0x1d4   : > { %vm1322_vm10 = vcmp.eq.f32.partialorder %v1321_v41, 8.507059e+37  ;;  %v1822_v57 = vmul.f32 %v3875_v61, %v5460_v7  ;;  %v3696_v24 = vadd.f32 -1.4531521, %v2451_v49  ;;  %v1316_v46 = vadd.f32 %v3869_v25, %v1315_v6  ;;  %vm1319_vm8 = vmor %vm1317_vm9, %vm1318_vm4 }
 0x1d5   : > { %v1324_v19 = vor.u32 1.1754944e-38, %v1323_v40  ;;  %v5516_v31 = vmul.f32 0.70710677, %v5508_v59  ;;  %v1830_v50 = vand.u32 2147483647, %v5460_v7  ;;  %v1832_v35 = vand.u32 2147483648, %v5460_v7 }
 0x1d6   : > { %v1823_v33 = vsub.f32 1.0, %v1822_v57  ;;  %v5522_v30 = vmul.f32 0.70710677, %v5511_v20  ;;  %v2040_v56 = vsub.f32 0.0, %v2024_v55  ;;  %v2467_v58 = vmul.f32 %v3696_v24, %v5502_v42 }
 0x1d7   : > { %v1320_v54 = vsel %vm1319_vm8, %v3869_v25, %v1316_v46  ;;  %v5526_v52 = vand.u32 2147483647, %v5516_v31  ;;  %vm1827_vm11 = vweird.f32 %v3875_v61  ;;  %v1502_v41 = vsub.f32 0.0, %v1486_v36 }
 0x1d8   : > { %v5528_v38 = vsel %vm1322_vm10, %v1324_v19, %v1320_v54  ;;  %v1824_v17 = vmul.f32 %v3875_v61, %v1823_v33  ;;  %v5531_v29 = vand.u32 2147483647, %v5522_v30  ;;  %v2475_v40 = vadd.f32 1.4214138, %v2467_v58  ;;  %v7013_v58 = vld [vmem:[#allocation21_spill] sm:$0xff] }
 0x1d9   : > { %v2540_v60 = vmul.f32 1.442695, %v2531_v8  ;;  %v1985_v63 = vsub.f32 0.0, %v5414_v14  ;;  %vm1826_vm7 = vweird.f32 %v5460_v7  ;;  %v2316_v25 = vmul.f32 0.3275911, %v5526_v52  ;;  %v7023_v8 = vld [vmem:[#allocation17_spill] sm:$0xff] }
 0x1da   : > { %v1825_v44 = vadd.f32 %v3875_v61, %v1824_v17  ;;  %v1241_v23 = vmul.f32 0.3275911, %v5531_v29  ;;  %v2048_v2 = vsel %vm2032_vm3, %v2040_v56, %v2024_v55  ;;  %v2483_v39 = vmul.f32 %v2475_v40, %v5502_v42  ;;  %vm1828_vm12 = vmor %vm1826_vm7, %vm1827_vm11 }
 0x1db   : > { %v1376_v49 = vmul.f32 1.0614054, %v5528_v38  ;;  %v1833_v6 = vor.u32 1.1754944e-38, %v1832_v35  ;;  %vm1831_vm14 = vcmp.eq.f32.partialorder %v1830_v50, 8.507059e+37  ;;  %v5551_v57 = vadd.f32 1.0, %v2316_v25 }
 0x1dc   : > { %v1829_v7 = vsel %vm1828_vm12, %v3875_v61, %v1825_v44  ;;  %v5553_v15 = vadd.f32 1.0, %v1241_v23  ;;  %v3704_v55 = vadd.f32 -0.28449672, %v2483_v39  ;;  %3876 = vpow2.f32 %v2540_v60  ;;  %v7012_v61 = vld [vmem:[#allocation16_spill] sm:$0xff] }
 0x1dd   : > { %v5555_v24 = vsel %vm1831_vm14, %v1833_v6, %v1829_v7  ;;  %v1993_v46 = vmul.f32 %v1985_v63, %v5414_v14  ;;  %vm1494_vm1 = vcmp.lt.f32.partialorder %v7012_v61, 0.0  ;;  %v2056_v19 = vadd.f32 1.0, %v2048_v2 }
 0x1de   : > { %v1913_v33 = vmul.f32 1.0614054, %v5555_v24  ;;  %3878 = vrcp.f32 %v5551_v57  ;;  %v1720_v14 = vsel %vm5547_vm13, %v5148_v53, %v5438_v37  ;;  %v1510_v50 = vsel %vm1494_vm1, %v1502_v41, %v1486_v36 }
 0x1df   : > { %v2499_v62 = vmul.f32 %v3704_v55, %v5502_v42  ;;  %v3647_v35 = vadd.f32 -1.4531521, %v1376_v49  ;;  %v1439_v56 = vmul.f32 %v5497_v0, %v5341_v22  ;;  %v1752_v54 = vmul.f32 0.5, %v7013_v58  ;;  %v7014_v0 = vld [vmem:[#allocation8_spill] sm:$0xff] }
 0x1e0   : > { %v3671_v17 = vadd.f32 -1.4531521, %v1913_v33  ;;  %3880 = vrcp.f32 %v5553_v15  ;;  %v1181_v40 = vsel %vm5562_vm15, %v5158_v32, %v5443_v34  ;;  %v1533_v21 = vadd.f32 %v5468_v47, %v5463_v4  ;;  %v5796_v32 = vld [vmem:[%s6892_s6] ss:$0 sm:$0xff] }
 0x1e1   : > { %v2507_v36 = vadd.f32 0.2548296, %v2499_v62  ;;  %v2003_v41 = vmul.f32 1.442695, %v1993_v46  ;;  %v5586_v60 = vadd.f32 1.0, %v1510_v50  ;;  %v2064_v63 = vmul.f32 %v2056_v19, %v1752_v54 }
 0x1e2   : > { %v1929_v22 = vmul.f32 %v3671_v17, %v5555_v24  ;;  %v5591_v44 = vadd.f32 %v5087_v48, %v7014_v0  ;;  %v3877_v25 = vpop.eup %3876  ;;  %v2291_v23 = vmul.f32 0.5, %v5364_v45  ;;  %vm2571_vm3 = vcmp.lt.f32.partialorder %v5373_v3, 0.0  ;;  %v845_v3 = vpop.f32.mrf.mxu0 }
 0x1e3   : > { %v2515_v2 = vmul.f32 %v2507_v36, %v5502_v42  ;;  %v1392_v4 = vmul.f32 %v3647_v35, %v5528_v38  ;;  %v5598_v39 = vmul.f32 %v5495_v13, %v1439_v56  ;;  %v1448_v49 = vsub.f32 0.0, %v5406_v27 }
 0x1e4   : > { %v3879_v47 = vpop.eup %3878  ;;  %v1937_v6 = vadd.f32 1.4214138, %v1929_v22  ;;  %v2371_v7 = vand.u32 2147483648, %v5551_v57  ;;  %3882 = vpow2.f32 %v2003_v41  ;;  %v2524_v45 = vsub.f32 0.0, %v5526_v52 }
 0x1e5   : > { %v2555_v48 = vmul.f32 %v3877_v25, %v2515_v2  ;;  %v2361_v55 = vmul.f32 %v3879_v47, %v5551_v57  ;;  %v2072_v46 = vadd.f32 %v2064_v63, %v1533_v21  ;;  %v2369_v19 = vand.u32 2147483647, %v5551_v57 }
 0x1e6   : > { %v3881_v42 = vpop.eup %3880  ;;  %v1945_v61 = vmul.f32 %v1937_v6, %v5555_v24  ;;  %v5607_v13 = vmul.f32 0.70710677, %v5591_v44  ;;  %v1400_v50 = vadd.f32 1.4214138, %v1392_v4  ;;  %vm2365_vm4 = vweird.f32 %v5551_v57 }
 0x1e7   : > { %v2563_v33 = vsub.f32 1.0, %v2555_v48  ;;  %v2362_v62 = vsub.f32 1.0, %v2361_v55  ;;  %v1328_v35 = vmul.f32 %v3881_v42, %v5553_v15  ;;  %v2372_v58 = vor.u32 1.1754944e-38, %v2371_v7 }
 0x1e8   : > { %v3679_v56 = vadd.f32 -0.28449672, %v1945_v61  ;;  %v5612_v54 = vand.u32 2147483647, %v5607_v13  ;;  %vm2366_vm5 = vweird.f32 %v3879_v47  ;;  %v1336_v63 = vand.u32 2147483647, %v5553_v15 }
 0x1e9   : > { %v2579_v17 = vsub.f32 0.0, %v2563_v33  ;;  %v2363_v21 = vmul.f32 %v3879_v47, %v2362_v62  ;;  %v1329_v36 = vsub.f32 1.0, %v1328_v35  ;;  %v1338_v22 = vand.u32 2147483648, %v5553_v15  ;;  %vm2367_vm9 = vmor %vm2365_vm4, %vm2366_vm5  ;;  %v7015_v61 = vld [vmem:[#allocation14_spill] sm:$0xff] }
 0x1ea   : > { %v1961_v41 = vmul.f32 %v3679_v56, %v5555_v24  ;;  %v1778_v0 = vmul.f32 0.3275911, %v5612_v54  ;;  %v3883_v25 = vpop.eup %3882  ;;  %vm1333_vm6 = vweird.f32 %v3881_v42  ;;  %v2274_v62 = vmul.f32 %v5110_v43, %v7015_v61  ;;  %v7016_v43 = vld [vmem:[#allocation11_spill] sm:$0xff] }
 0x1eb   : > { %v2587_v2 = vsel %vm2571_vm3, %v2579_v17, %v2563_v33  ;;  %v2364_v4 = vadd.f32 %v3879_v47, %v2363_v21  ;;  %v1330_v6 = vmul.f32 %v3881_v42, %v1329_v36  ;;  %vm2370_vm10 = vcmp.eq.f32.partialorder %v2369_v19, 8.507059e+37 }
 0x1ec   : > { %v2595_v7 = vadd.f32 1.0, %v2587_v2  ;;  %v1969_v48 = vadd.f32 0.2548296, %v1961_v41  ;;  %v5622_v55 = vadd.f32 1.0, %v1778_v0  ;;  %vm1332_vm8 = vweird.f32 %v5553_v15 }
 0x1ed   : > { %v2368_v35 = vsel %vm2367_vm9, %v3879_v47, %v2364_v4  ;;  %v1331_v56 = vadd.f32 %v3881_v42, %v1330_v6  ;;  %vm1334_vm11 = vmor %vm1332_vm8, %vm1333_vm6  ;;  %v1339_v21 = vor.u32 1.1754944e-38, %v1338_v22  ;;  %vm1337_vm7 = vcmp.eq.f32.partialorder %v1336_v63, 8.507059e+37 }
 0x1ee   : > { %v2603_v33 = vmul.f32 %v2595_v7, %v2291_v23  ;;  %v5627_v17 = vsel %vm2370_vm10, %v2372_v58, %v2368_v35  ;;  %3884 = vrcp.f32 %v5622_v55  ;;  %v1977_v57 = vmul.f32 %v1969_v48, %v5555_v24  ;;  %v7017_v7 = vld [vmem:[#allocation20_spill] sm:$0xff] }
 0x1ef   : > { %v2452_v36 = vmul.f32 1.0614054, %v5627_v17  ;;  %v1335_v41 = vsel %vm1334_vm11, %v3881_v42, %v1331_v56  ;;  %v1214_v47 = vmul.f32 0.5, %v7016_v43  ;;  %v5638_v15 = vadd.f32 %v5146_v16, %v2274_v62 }
 0x1f0   : > { %v5633_v19 = vadd.f32 %v2603_v33, %v2072_v46  ;;  %v5635_v0 = vsel %vm1337_vm7, %v1339_v21, %v1335_v41  ;;  %v846_v23 = vadd.f32 %v5064_v51, %v845_v3  ;;  %v1487_v58 = vsub.f32 1.0, %v5598_v39 }
 0x1f1   : > { %v3697_v22 = vadd.f32 -1.4531521, %v2452_v36  ;;  %v1377_v24 = vmul.f32 1.0614054, %v5635_v0  ;;  %v1526_v2 = vmul.f32 %v5586_v60, %v1214_v47  ;;  %v1456_v46 = vmul.f32 %v1448_v49, %v5406_v27  ;;  %v5661_v27 = vld [vmem:[%s6952_s21] ss:$0 sm:$0xff] }
 0x1f2   : > { %v2623_v42 = vsel %vm1006_vm0, %v5633_v19, 0.0  ;;  %v2532_v63 = vmul.f32 %v2524_v45, %v5526_v52  ;;  %v2244_v4 = vsub.f32 1.5, %v5450_v26  ;;  %v1408_v16 = vmul.f32 %v1400_v50, %v5528_v38  ;;  %v7018_v52 = vld [vmem:[#allocation19_spill] sm:$0xff] }
 0x1f3   : > { %2624 = vadd.xlane.f32.xlu1 %v2623_v42  ;;  %v2017_v51 = vmul.f32 %v3883_v25, %v1977_v57  ;;  %v2468_v39 = vmul.f32 %v3697_v22, %v5627_v17  ;;  %vm1495_vm12 = vcmp.lt.f32.partialorder %v7017_v7, 0.0  ;;  %v5653_v60 = vmul.f32 0.5, %v5382_v10  ;;  %v5679_v47 = vld [vmem:[%s6961_s4] ss:$0 sm:$0xff] }
 0x1f4   : > { %v3885_v6 = vpop.eup %3884  ;;  %v5656_v48 = vmul.f32 0.70710677, %v5638_v15  ;;  %v1199_v49 = vmul.f32 %v5661_v27, %v7018_v52  ;;  %v1503_v45 = vsub.f32 0.0, %v1487_v58  ;;  %v3648_v25 = vadd.f32 -1.4531521, %v1377_v24 }
 0x1f5   : > { %v2476_v50 = vadd.f32 1.4214138, %v2468_v39  ;;  %v1837_v61 = vmul.f32 %v3885_v6, %v5622_v55  ;;  %v5666_v62 = vadd.f32 %v1526_v2, %v846_v23  ;;  %v1468_v10 = vmul.f32 1.442695, %v1456_v46 }
 0x1f6   : > { %vm2033_vm14 = vcmp.lt.f32.partialorder %v5400_v18, 0.0  ;;  %v2542_v35 = vmul.f32 1.442695, %v2532_v63  ;;  %v5670_v56 = vand.u32 2147483647, %v5656_v48  ;;  %v2025_v33 = vsub.f32 1.0, %v2017_v51 }
 0x1f7   : > { %v3655_v3 = vadd.f32 -0.28449672, %v1408_v16  ;;  %v2484_v21 = vmul.f32 %v2476_v50, %v5627_v17  ;;  %v1838_v57 = vsub.f32 1.0, %v1837_v61  ;;  %v1845_v36 = vand.u32 2147483647, %v5622_v55 }
 0x1f8   : > { %v1847_v41 = vand.u32 2147483648, %v5622_v55  ;;  %v2317_v43 = vmul.f32 0.3275911, %v5670_v56  ;;  %v5682_v23 = vadd.f32 %v5679_v47, %v1199_v49  ;;  %v1393_v24 = vmul.f32 %v3648_v25, %v5635_v0 }
 0x1f9   : > { %v3705_v22 = vadd.f32 -0.28449672, %v2484_v21  ;;  %v1839_v2 = vmul.f32 %v3885_v6, %v1838_v57  ;;  %vm1842_vm1 = vweird.f32 %v3885_v6  ;;  %v1511_v42 = vsel %vm1495_vm12, %v1503_v45, %v1487_v58 }
 0x1fa   : > { %3886 = vpow2.f32 %v2542_v35  ;;  %v5687_v46 = vadd.f32 1.0, %v2317_v43  ;;  %v5690_v63 = vmul.f32 0.70710677, %v5682_v23  ;;  %v2041_v16 = vsub.f32 0.0, %v2025_v33  ;;  %v5714_v43 = vld [vmem:[%s6961_s4 + $0x1] ss:$0 sm:$0xff] }
 0x1fb   : > { %v2500_v51 = vmul.f32 %v3705_v22, %v5627_v17  ;;  %v1840_v39 = vadd.f32 %v3885_v6, %v1839_v2  ;;  %vm1841_vm3 = vweird.f32 %v5622_v55  ;;  %v1424_v52 = vmul.f32 %v3655_v3, %v5528_v38  ;;  %v7019_v22 = vld [vmem:[#allocation9_spill] sm:$0xff] }
 0x1fc   : > { %vm1843_vm4 = vmor %vm1841_vm3, %vm1842_vm1  ;;  %v1848_v49 = vor.u32 1.1754944e-38, %v1847_v41  ;;  %v1986_v50 = vsub.f32 0.0, %v5612_v54  ;;  %3888 = vrcp.f32 %v5687_v46  ;;  %v1401_v7 = vadd.f32 1.4214138, %v1393_v24 }
 0x1fd   : > { %v2508_v58 = vadd.f32 0.2548296, %v2500_v51  ;;  %v1844_v45 = vsel %vm1843_vm4, %v3885_v6, %v1840_v39  ;;  %vm1846_vm5 = vcmp.eq.f32.partialorder %v1845_v36, 8.507059e+37  ;;  %v5697_v25 = vadd.f32 1.0, %v1511_v42 }
 0x1fe   : > { %3890 = vpow2.f32 %v1468_v10  ;;  %v5699_v61 = vsel %vm1846_vm5, %v1848_v49, %v1844_v45  ;;  %v5702_v35 = vand.u32 2147483647, %v5690_v63  ;;  %v2049_v55 = vsel %vm2033_vm14, %v2041_v16, %v2025_v33 }
 0x1ff   : > { %v2516_v3 = vmul.f32 %v2508_v58, %v5627_v17  ;;  %v1449_v21 = vsub.f32 0.0, %v5531_v29  ;;  %v1914_v57 = vmul.f32 1.0614054, %v5699_v61  ;;  %v1432_v6 = vadd.f32 0.2548296, %v1424_v52 }
 0x200   : > { %v3887_v41 = vpop.eup %3886  ;;  %v1994_v36 = vmul.f32 %v1986_v50, %v5612_v54  ;;  %v1242_v10 = vmul.f32 0.3275911, %v5702_v35  ;;  %v5718_v18 = vadd.f32 %v5714_v43, %v7019_v22  ;;  %v2292_v17 = vmul.f32 0.5, %v5508_v59 }
 0x201   : > { %v2556_v33 = vmul.f32 %v3887_v41, %v2516_v3  ;;  %v1409_v24 = vmul.f32 %v1401_v7, %v5635_v0  ;;  %v3672_v2 = vadd.f32 -1.4531521, %v1914_v57  ;;  %v2057_v16 = vadd.f32 1.0, %v2049_v55 }
 0x202   : > { %v3889_v42 = vpop.eup %3888  ;;  %vm2572_vm6 = vcmp.lt.f32.partialorder %v5516_v31, 0.0  ;;  %v5723_v54 = vadd.f32 1.0, %v1242_v10  ;;  %v5726_v51 = vmul.f32 0.70710677, %v5718_v18  ;;  %v1457_v52 = vmul.f32 %v1449_v21, %v5531_v29 }
 0x203   : > { %v2564_v39 = vsub.f32 1.0, %v2556_v33  ;;  %v1930_v49 = vmul.f32 %v3672_v2, %v5699_v61  ;;  %v2376_v59 = vmul.f32 %v3889_v42, %v5687_v46  ;;  %v1440_v58 = vmul.f32 %v1432_v6, %v5528_v38 }
 0x204   : > { %v3891_v50 = vpop.eup %3890  ;;  %v2005_v7 = vmul.f32 1.442695, %v1994_v36  ;;  %v2525_v45 = vsub.f32 0.0, %v5670_v56  ;;  %3892 = vrcp.f32 %v5723_v54  ;;  %v3656_v3 = vadd.f32 -0.28449672, %v1409_v24 }
 0x205   : > { %v2580_v55 = vsub.f32 0.0, %v2564_v39  ;;  %v1938_v57 = vadd.f32 1.4214138, %v1930_v49  ;;  %v2377_v41 = vsub.f32 1.0, %v2376_v59  ;;  %v2065_v10 = vmul.f32 %v2057_v16, %v5653_v60 }
 0x206   : > { %v2384_v29 = vand.u32 2147483647, %v5687_v46  ;;  %v2386_v21 = vand.u32 2147483648, %v5687_v46  ;;  %v5738_v22 = vand.u32 2147483647, %v5726_v51  ;;  %vm2381_vm9 = vweird.f32 %v3889_v42 }
 0x207   : > { %v2588_v38 = vsel %vm2572_vm6, %v2580_v55, %v2564_v39  ;;  %v1946_v6 = vmul.f32 %v1938_v57, %v5699_v61  ;;  %v2378_v36 = vmul.f32 %v3889_v42, %v2377_v41  ;;  %3894 = vpow2.f32 %v2005_v7 }
 0x208   : > { %v2596_v33 = vadd.f32 1.0, %v2588_v38  ;;  %v2533_v24 = vmul.f32 %v2525_v45, %v5670_v56  ;;  %v1779_v60 = vmul.f32 0.3275911, %v5738_v22  ;;  %v2073_v2 = vadd.f32 %v2065_v10, %v5666_v62  ;;  %v7021_v10 = vld [vmem:[#allocation5_spill] sm:$0xff] }
 0x209   : > { %v3680_v16 = vadd.f32 -0.28449672, %v1946_v6  ;;  %v2379_v49 = vadd.f32 %v3889_v42, %v2378_v36  ;;  %vm2380_vm10 = vweird.f32 %v5687_v46  ;;  %v1425_v39 = vmul.f32 %v3656_v3, %v5635_v0  ;;  %v5763_v46 = vld [vmem:[%s6952_s21 + $0x2] ss:$0 sm:$0xff] }
 0x20a   : > { %v5747_v59 = vpop.eup %3892  ;;  %v2604_v31 = vmul.f32 %v2596_v33, %v2292_v17  ;;  %vm2382_vm8 = vmor %vm2380_vm10, %vm2381_vm9  ;;  %v2387_v55 = vor.u32 1.1754944e-38, %v2386_v21  ;;  %v5750_v57 = vadd.f32 1.0, %v1779_v60  ;;  %vm2385_vm11 = vcmp.eq.f32.partialorder %v2384_v29, 8.507059e+37  ;;  %v7020_v17 = vld [vmem:[#allocation15_spill] sm:$0xff]  ;;  %v848_v29 = vpop.f32.mrf.mxu0  ;;  %v7022_v33 = vld [vmem:[#allocation4_spill] sm:$0xff] }
 0x20b   : > { %v1962_v7 = vmul.f32 %v3680_v16, %v5699_v61  ;;  %v2383_v56 = vsel %vm2382_vm8, %v3889_v42, %v2379_v49  ;;  %v1343_v62 = vmul.f32 %v5747_v59, %v5723_v54  ;;  %v2275_v3 = vmul.f32 %v5763_v46, %v7020_v17 }
 0x20c   : > { %v5755_v45 = vadd.f32 %v2604_v31, %v2073_v2  ;;  %v5757_v41 = vsel %vm2385_vm11, %v2387_v55, %v2383_v56  ;;  %3896 = vrcp.f32 %v5750_v57  ;;  %v5773_v42 = vmul.f32 %v1720_v14, %v7021_v10 }
 0x20d   : > { %v1470_v21 = vmul.f32 1.442695, %v1457_v52  ;;  %v1970_v38 = vadd.f32 0.2548296, %v1962_v7  ;;  %v2453_v6 = vmul.f32 1.0614054, %v5757_v41  ;;  %v3895_v36 = vpop.eup %3894  ;;  %v1189_v60 = vmul.f32 %v1181_v40, %v7022_v33 }
 0x20e   : > { %v5782_v2 = vmul.f32 %v3891_v50, %v1440_v58  ;;  %v2626_v53 = vsel %vm1006_vm0, %v5755_v45, 0.0  ;;  %v1344_v37 = vsub.f32 1.0, %v1343_v62  ;;  %v1215_v14 = vmul.f32 0.5, %v7023_v8  ;;  %v5802_v50 = vld [vmem:[%s6961_s4 + $0x2] ss:$0 sm:$0xff] }
 0x20f   : > { %2627 = vadd.xlane.f32.xlu2 %v2626_v53  ;;  %v1978_v52 = vmul.f32 %v1970_v38, %v5699_v61  ;;  %v3698_v16 = vadd.f32 -1.4531521, %v2453_v6  ;;  %v2544_v49 = vmul.f32 1.442695, %v2533_v24  ;;  %v5791_v11 = vmul.f32 %v5172_v28, %v2244_v4 }
 0x210   : > { %v849_v34 = vadd.f32 %v5796_v32, %v848_v29  ;;  %v1433_v40 = vadd.f32 0.2548296, %v1425_v39  ;;  %v5805_v61 = vadd.f32 %v5802_v50, %v2275_v3  ;;  %v1527_v26 = vmul.f32 %v5697_v25, %v1215_v14 }
 0x211   : > { %v5809_v4 = vmul.f32 0.5, %v5368_v9  ;;  %3898 = vpow2.f32 %v1470_v21  ;;  %v2469_v58 = vmul.f32 %v3698_v16, %v5757_v41  ;;  %v1488_v31 = vsub.f32 1.0, %v5782_v2 }
 0x212   : > { %v3897_v24 = vpop.eup %3896  ;;  %v1345_v39 = vmul.f32 %v5747_v59, %v1344_v37  ;;  %v5815_v55 = vmul.f32 0.70710677, %v5805_v61  ;;  %v1200_v7 = vmul.f32 %v5661_v27, %v1189_v60  ;;  %v2018_v56 = vmul.f32 %v3895_v36, %v1978_v52 }
 0x213   : > { %v2477_v62 = vadd.f32 1.4214138, %v2469_v58  ;;  %3900 = vpow2.f32 %v2544_v49  ;;  %v1852_v25 = vmul.f32 %v3897_v24, %v5750_v57  ;;  %v1441_v9 = vmul.f32 %v1433_v40, %v5635_v0 }
 0x214   : > { %vm1347_vm13 = vweird.f32 %v5723_v54  ;;  %v1353_v17 = vand.u32 2147483648, %v5723_v54  ;;  %v5823_v3 = vand.u32 2147483647, %v5815_v55  ;;  %vm1348_vm15 = vweird.f32 %v5747_v59 }
 0x215   : > { %v2485_v10 = vmul.f32 %v2477_v62, %v5757_v41  ;;  %v1853_v29 = vsub.f32 1.0, %v1852_v25  ;;  %v1860_v27 = vand.u32 2147483647, %v5750_v57  ;;  %v1346_v21 = vadd.f32 %v5747_v59, %v1345_v39  ;;  %vm5844_vm14 = vmor %vm1347_vm13, %vm1348_vm15  ;;  %v7026_v25 = vld [vmem:[#allocation13_spill] sm:$0xff] }
 0x216   : > { %v1862_v38 = vand.u32 2147483648, %v5750_v57  ;;  %v2318_v0 = vmul.f32 0.3275911, %v5823_v3  ;;  %v5832_v6 = vadd.f32 %v5679_v47, %v1200_v7  ;;  %vm1496_vm7 = vcmp.lt.f32.partialorder %v5392_v12, 0.0 }
 0x217   : > { %v3899_v36 = vpop.eup %3898  ;;  %v2026_v33 = vsub.f32 1.0, %v2018_v56  ;;  %v3706_v60 = vadd.f32 -0.28449672, %v2485_v10  ;;  %v1854_v53 = vmul.f32 %v3897_v24, %v1853_v29  ;;  %vm1857_vm12 = vweird.f32 %v3897_v24 }
 0x218   : > { %v1351_v37 = vand.u32 2147483647, %v5723_v54  ;;  %v1354_v8 = vor.u32 1.1754944e-38, %v1353_v17  ;;  %v1987_v14 = vsub.f32 0.0, %v5738_v22  ;;  %v5837_v52 = vadd.f32 1.0, %v2318_v0 }
 0x219   : > { %v3901_v16 = vpop.eup %3900  ;;  %v2501_v49 = vmul.f32 %v3706_v60, %v5757_v41  ;;  %v1855_v40 = vadd.f32 %v3897_v24, %v1854_v53  ;;  %vm1856_vm1 = vweird.f32 %v5750_v57  ;;  %vm1861_vm3 = vcmp.eq.f32.partialorder %v1860_v27, 8.507059e+37  ;;  %v7027_v53 = vld [vmem:[#allocation12_spill] sm:$0xff] }
 0x21a   : > { %v1350_v58 = vsel %vm5844_vm14, %v5747_v59, %v1346_v21  ;;  %vm1858_vm4 = vmor %vm1856_vm1, %vm1857_vm12  ;;  %v1863_v39 = vor.u32 1.1754944e-38, %v1862_v38  ;;  %3902 = vrcp.f32 %v5837_v52  ;;  %v5854_v7 = vmul.f32 0.70710677, %v5832_v6 }
 0x21b   : > { %v2042_v54 = vsub.f32 0.0, %v2026_v33  ;;  %v2509_v56 = vadd.f32 0.2548296, %v2501_v49  ;;  %v1859_v62 = vsel %vm1858_vm4, %v3897_v24, %v1855_v40  ;;  %v5858_v17 = vadd.f32 %v5714_v43, %v7026_v25 }
 0x21c   : > { %v1504_v57 = vsub.f32 0.0, %v1488_v31  ;;  %vm1352_vm5 = vcmp.eq.f32.partialorder %v1351_v37, 8.507059e+37  ;;  %v5862_v10 = vsel %vm1861_vm3, %v1863_v39, %v1859_v62  ;;  %v1995_v59 = vmul.f32 %v1987_v14, %v5738_v22 }
 0x21d   : > { %v1535_v29 = vadd.f32 %v1527_v26, %v849_v34  ;;  %v2517_v27 = vmul.f32 %v2509_v56, %v5757_v41  ;;  %v5866_v21 = vsel %vm1352_vm5, %v1354_v8, %v1350_v58  ;;  %v1915_v38 = vmul.f32 1.0614054, %v5862_v10  ;;  %v851_v58 = vpop.f32.mrf.mxu0 }
 0x21e   : > { %v5869_v24 = vmul.f32 %v3899_v36, %v1441_v9  ;;  %v1754_v0 = vmul.f32 0.5, %v5591_v44  ;;  %vm2034_vm6 = vcmp.lt.f32.partialorder %v5607_v13, 0.0  ;;  %v5874_v60 = vand.u32 2147483647, %v5854_v7 }
 0x21f   : > { %vm2246_vm9 = vweird.f32 %v7027_v53  ;;  %vm2247_vm10 = vweird.f32 %v5172_v28  ;;  %v2050_v22 = vsel %vm2034_vm6, %v2042_v54, %v2026_v33  ;;  %v2557_v34 = vmul.f32 %v3901_v16, %v2517_v27 }
 0x220   : > { %v3673_v41 = vadd.f32 -1.4531521, %v1915_v38  ;;  %v5879_v26 = vmul.f32 0.70710677, %v5858_v17  ;;  %v3903_v37 = vpop.eup %3902  ;;  %v1512_v44 = vsel %vm1496_vm7, %v1504_v57, %v1488_v31  ;;  %v2293_v13 = vmul.f32 0.5, %v5638_v15  ;;  %vm5914_vm12 = vmor %vm2246_vm9, %vm2247_vm10 }
 0x221   : > { %v1378_v9 = vmul.f32 1.0614054, %v5866_v21  ;;  %v2007_v36 = vmul.f32 1.442695, %v1995_v59  ;;  %v2565_v8 = vsub.f32 1.0, %v2557_v34  ;;  %vm2573_vm8 = vcmp.lt.f32.partialorder %v5656_v48, 0.0 }
 0x222   : > { %v1931_v33 = vmul.f32 %v3673_v41, %v5862_v10  ;;  %v2391_v14 = vmul.f32 %v3903_v37, %v5837_v52  ;;  %v1489_v16 = vsub.f32 1.0, %v5869_v24  ;;  %v2058_v49 = vadd.f32 1.0, %v2050_v22 }
 0x223   : > { %v1450_v2 = vsub.f32 0.0, %v5702_v35  ;;  %v1243_v12 = vmul.f32 0.3275911, %v5874_v60  ;;  %v2581_v31 = vsub.f32 0.0, %v2565_v8  ;;  %v5894_v40 = vand.u32 2147483647, %v5879_v26 }
 0x224   : > { %v1939_v47 = vadd.f32 1.4214138, %v1931_v33  ;;  %v2392_v15 = vsub.f32 1.0, %v2391_v14  ;;  %v3649_v39 = vadd.f32 -1.4531521, %v1378_v9  ;;  %3904 = vpow2.f32 %v2007_v36 }
 0x225   : > { %v2399_v54 = vand.u32 2147483647, %v5837_v52  ;;  %v2401_v56 = vand.u32 2147483648, %v5837_v52  ;;  %v2589_v62 = vsel %vm2573_vm8, %v2581_v31, %v2565_v8  ;;  %vm2396_vm11 = vweird.f32 %v3903_v37 }
 0x226   : > { %v1947_v25 = vmul.f32 %v1939_v47, %v5862_v10  ;;  %v2393_v57 = vmul.f32 %v3903_v37, %v2392_v15  ;;  %v2066_v59 = vmul.f32 %v2058_v49, %v1754_v0  ;;  %v2597_v27 = vadd.f32 1.0, %v2589_v62 }
 0x227   : > { %vm2395_vm13 = vweird.f32 %v5837_v52  ;;  %v2526_v38 = vsub.f32 0.0, %v5823_v3  ;;  %v5903_v41 = vadd.f32 1.0, %v1243_v12  ;;  %v1780_v9 = vmul.f32 0.3275911, %v5894_v40 }
 0x228   : > { %v3681_v22 = vadd.f32 -0.28449672, %v1947_v25  ;;  %v2394_v34 = vadd.f32 %v3903_v37, %v2393_v57  ;;  %v2074_v36 = vadd.f32 %v2066_v59, %v1535_v29  ;;  %v2605_v33 = vmul.f32 %v2597_v27, %v2293_v13  ;;  %vm2397_vm15 = vmor %vm2395_vm13, %vm2396_vm11  ;;  %v854_v57 = vpop.f32.mrf.mxu0  ;;  %v7030_v59 = vld [vmem:[#allocation18_spill] sm:$0xff] }
 0x229   : > { %v1394_v48 = vmul.f32 %v3649_v39, %v5866_v21  ;;  %v2402_v8 = vor.u32 1.1754944e-38, %v2401_v56  ;;  %vm2400_vm7 = vcmp.eq.f32.partialorder %v2399_v54, 8.507059e+37  ;;  %v5908_v49 = vadd.f32 1.0, %v1780_v9 }
 0x22a   : > { %v1963_v14 = vmul.f32 %v3681_v22, %v5862_v10  ;;  %v2398_v0 = vsel %vm2397_vm15, %v3903_v37, %v2394_v34  ;;  %v3905_v52 = vpop.eup %3904  ;;  %v1520_v29 = vadd.f32 1.0, %v1512_v44  ;;  %v5918_v13 = vadd.f32 %v2605_v33, %v2074_v36 }
 0x22b   : > { %v5920_v31 = vsel %vm2400_vm7, %v2402_v8, %v2398_v0  ;;  %v2276_v37 = vmul.f32 %v5763_v46, %v5424_v1  ;;  %v1458_v47 = vmul.f32 %v1450_v2, %v5702_v35  ;;  %3906 = vrcp.f32 %v5903_v41 }
 0x22c   : > { %v1971_v15 = vadd.f32 0.2548296, %v1963_v14  ;;  %v2454_v39 = vmul.f32 1.0614054, %v5920_v31  ;;  %v2629_v53 = vsel %vm1006_vm0, %v5918_v13, 0.0  ;;  %v2534_v44 = vmul.f32 %v2526_v38, %v5823_v3 }
 0x22d   : > { %v1402_v54 = vadd.f32 1.4214138, %v1394_v48  ;;  %3908 = vrcp.f32 %v5908_v49  ;;  %v2249_v1 = vsel %vm5914_vm12, %v5172_v28, %v5791_v11  ;;  %v1505_v35 = vsub.f32 0.0, %v1489_v16  ;;  %2630 = vadd.xlane.f32.xlu0 %v2629_v53  ;;  %v4010_v28 = vld [vmem:[%s6952_s21 + $0x1] ss:$0 sm:$0xff] }
 0x22e   : > { %v1979_v2 = vmul.f32 %v1971_v15, %v5862_v10  ;;  %v3699_v56 = vadd.f32 -1.4531521, %v2454_v39  ;;  %v852_v62 = vadd.f32 %v5796_v32, %v851_v58  ;;  %v1528_v25 = vmul.f32 %v1520_v29, %v5809_v4  ;;  %v7031_v4 = vld [vmem:[#allocation6_spill] sm:$0xff] }
 0x22f   : > { %v5941_v3 = vadd.f32 %v5802_v50, %v2276_v37  ;;  %v5945_v27 = vadd.f32 %v5714_v43, %v7030_v59  ;;  %v5951_v11 = vmul.f32 %v4010_v28, %v5773_v42  ;;  %v1472_v10 = vmul.f32 1.442695, %v1458_v47 }
 0x230   : > { %v2019_v38 = vmul.f32 %v3905_v52, %v1979_v2  ;;  %v2470_v58 = vmul.f32 %v3699_v56, %v5920_v31  ;;  %v5955_v22 = vmul.f32 %v2249_v1, %v7031_v4  ;;  %vm1497_vm14 = vcmp.lt.f32.partialorder %v5522_v30, 0.0 }
 0x231   : > { %v1410_v34 = vmul.f32 %v1402_v54, %v5866_v21  ;;  %v2546_v9 = vmul.f32 1.442695, %v2534_v44  ;;  %v5959_v36 = vpop.eup %3906  ;;  %v855_v33 = vadd.f32 %v5796_v32, %v854_v57  ;;  %v1217_v48 = vmul.f32 0.5, %v5511_v20 }
 0x232   : > { %v1513_v42 = vsel %vm1497_vm14, %v1505_v35, %v1489_v16  ;;  %v2478_v8 = vadd.f32 1.4214138, %v2470_v58  ;;  %v5965_v0 = vadd.f32 %v1528_v25, %v852_v62  ;;  %v5968_v52 = vmul.f32 0.5, %v5718_v18 }
 0x233   : > { %v3909_v14 = vpop.eup %3908  ;;  %v5971_v30 = vmul.f32 0.70710677, %v5941_v3  ;;  %v5974_v12 = vmul.f32 0.70710677, %v5945_v27  ;;  %3910 = vpow2.f32 %v1472_v10  ;;  %v2027_v29 = vsub.f32 1.0, %v2019_v38 }
 0x234   : > { %v2486_v20 = vmul.f32 %v2478_v8, %v5920_v31  ;;  %v1867_v24 = vmul.f32 %v3909_v14, %v5908_v49  ;;  %v1521_v16 = vadd.f32 1.0, %v1513_v42  ;;  %v3657_v37 = vadd.f32 -0.28449672, %v1410_v34 }
 0x235   : > { %3912 = vpow2.f32 %v2546_v9  ;;  %v5979_v47 = vand.u32 2147483647, %v5971_v30  ;;  %v1358_v15 = vmul.f32 %v5959_v36, %v5903_v41  ;;  %v1875_v53 = vand.u32 2147483647, %v5908_v49 }
 0x236   : > { %v3707_v18 = vadd.f32 -0.28449672, %v2486_v20  ;;  %v1868_v39 = vsub.f32 1.0, %v1867_v24  ;;  %v1877_v54 = vand.u32 2147483648, %v5908_v49  ;;  %v1988_v44 = vsub.f32 0.0, %v5894_v40 }
 0x237   : > { %v2319_v1 = vmul.f32 0.3275911, %v5979_v47  ;;  %v5988_v35 = vand.u32 2147483647, %v5974_v12  ;;  %v2043_v2 = vsub.f32 0.0, %v2027_v29  ;;  %vm1872_vm1 = vweird.f32 %v3909_v14 }
 0x238   : > { %v2502_v56 = vmul.f32 %v3707_v18, %v5920_v31  ;;  %v1869_v62 = vmul.f32 %v3909_v14, %v1868_v39  ;;  %v1529_v25 = vmul.f32 %v1521_v16, %v1217_v48  ;;  %v1426_v57 = vmul.f32 %v3657_v37, %v5866_v21 }
 0x239   : > { %v5992_v59 = vadd.f32 1.0, %v2319_v1  ;;  %v1781_v28 = vmul.f32 0.3275911, %v5988_v35  ;;  %v5995_v10 = vpop.eup %3910  ;;  %v1359_v58 = vsub.f32 1.0, %v1358_v15  ;;  %vm1871_vm3 = vweird.f32 %v5908_v49 }
 0x23a   : > { %v2510_v38 = vadd.f32 0.2548296, %v2502_v56  ;;  %v1870_v4 = vadd.f32 %v3909_v14, %v1869_v62  ;;  %vm2035_vm4 = vcmp.lt.f32.partialorder %v5726_v51, 0.0  ;;  %vm1873_vm5 = vmor %vm1871_vm3, %vm1872_vm1  ;;  %v1878_v9 = vor.u32 1.1754944e-38, %v1877_v54 }
 0x23b   : > { %v3913_v34 = vpop.eup %3912  ;;  %v1996_v48 = vmul.f32 %v1988_v44, %v5894_v40  ;;  %3914 = vrcp.f32 %v5992_v59  ;;  %v2051_v42 = vsel %vm2035_vm4, %v2043_v2, %v2027_v29  ;;  %vm1876_vm6 = vcmp.eq.f32.partialorder %v1875_v53, 8.507059e+37 }
 0x23c   : > { %v2518_v8 = vmul.f32 %v2510_v38, %v5920_v31  ;;  %v1874_v20 = vsel %vm1873_vm5, %v3909_v14, %v1870_v4  ;;  %v1434_v24 = vadd.f32 0.2548296, %v1426_v57  ;;  %v1368_v16 = vand.u32 2147483648, %v5903_v41 }
 0x23d   : > { %v6003_v37 = vsel %vm1876_vm6, %v1878_v9, %v1874_v20  ;;  %v6005_v49 = vadd.f32 1.0, %v1781_v28  ;;  %v6007_v18 = vadd.f32 %v1529_v25, %v855_v33  ;;  %v1360_v15 = vmul.f32 %v5959_v36, %v1359_v58 }
 0x23e   : > { %v2558_v51 = vmul.f32 %v3913_v34, %v2518_v8  ;;  %v1916_v40 = vmul.f32 1.0614054, %v6003_v37  ;;  %v2059_v39 = vadd.f32 1.0, %v2051_v42  ;;  %v2294_v29 = vmul.f32 0.5, %v5805_v61 }
 0x23f   : > { %vm2574_vm9 = vcmp.lt.f32.partialorder %v5815_v55, 0.0  ;;  %v2009_v31 = vmul.f32 1.442695, %v1996_v48  ;;  %v1366_v53 = vand.u32 2147483647, %v5903_v41  ;;  %3916 = vrcp.f32 %v6005_v49 }
 0x240   : > { %v2566_v14 = vsub.f32 1.0, %v2558_v51  ;;  %v3674_v54 = vadd.f32 -1.4531521, %v1916_v40  ;;  %v1442_v33 = vmul.f32 %v1434_v24, %v5866_v21  ;;  %vm1363_vm10 = vweird.f32 %v5959_v36 }
 0x241   : > { %v3915_v44 = vpop.eup %3914  ;;  %v6017_v1 = vor.u32 1.1754944e-38, %v1368_v16  ;;  %v2277_v2 = vmul.f32 %v5763_v46, %v5955_v22  ;;  %v6022_v56 = vadd.f32 %v5959_v36, %v1360_v15  ;;  %vm1362_vm8 = vweird.f32 %v5903_v41 }
 0x242   : > { %v2582_v61 = vsub.f32 0.0, %v2566_v14  ;;  %v1932_v62 = vmul.f32 %v3674_v54, %v6003_v37  ;;  %v2406_v25 = vmul.f32 %v3915_v44, %v5992_v59  ;;  %v2067_v57 = vmul.f32 %v2059_v39, %v5968_v52  ;;  %vm6066_vm14 = vmor %vm1362_vm8, %vm1363_vm10 }
 0x243   : > { %3918 = vpow2.f32 %v2009_v31  ;;  %v2414_v21 = vand.u32 2147483647, %v5992_v59  ;;  %v6030_v28 = vadd.f32 %v5802_v50, %v2277_v2  ;;  %v2416_v4 = vand.u32 2147483648, %v5992_v59 }
 0x244   : > { %v2590_v22 = vsel %vm2574_vm9, %v2582_v61, %v2566_v14  ;;  %v1940_v38 = vadd.f32 1.4214138, %v1932_v62  ;;  %v2407_v58 = vsub.f32 1.0, %v2406_v25  ;;  %v2075_v34 = vadd.f32 %v2067_v57, %v5965_v0 }
 0x245   : > { %v2598_v9 = vadd.f32 1.0, %v2590_v22  ;;  %v2527_v48 = vsub.f32 0.0, %v5979_v47  ;;  %v6038_v52 = vmul.f32 0.70710677, %v6030_v28  ;;  %v3917_v42 = vpop.eup %3916  ;;  %vm2410_vm11 = vweird.f32 %v5992_v59 }
 0x246   : > { %v1948_v8 = vmul.f32 %v1940_v38, %v6003_v37  ;;  %v2408_v20 = vmul.f32 %v3915_v44, %v2407_v58  ;;  %vm2411_vm13 = vweird.f32 %v3915_v44  ;;  %vm6042_vm15 = vcmp.eq.f32.partialorder %v2414_v21, 8.507059e+37 }
 0x247   : > { %v2606_v55 = vmul.f32 %v2598_v9, %v2294_v29  ;;  %v1882_v0 = vmul.f32 %v3917_v42, %v6005_v49  ;;  %v6048_v16 = vand.u32 2147483647, %v6038_v52  ;;  %v2417_v40 = vor.u32 1.1754944e-38, %v2416_v4  ;;  %vm2412_vm7 = vmor %vm2410_vm11, %vm2411_vm13  ;;  %v2163_v4 = vpop.xlane.xlu2 %2162 }
 0x248   : > { %v3682_v51 = vadd.f32 -0.28449672, %v1948_v8  ;;  %v2409_v15 = vadd.f32 %v3915_v44, %v2408_v20  ;;  %v1890_v39 = vand.u32 2147483647, %v6005_v49  ;;  %v1892_v29 = vand.u32 2147483648, %v6005_v49 }
 0x249   : > { %v3919_v31 = vpop.eup %3918  ;;  %v6051_v14 = vadd.f32 %v2606_v55, %v2075_v34  ;;  %v1883_v59 = vsub.f32 1.0, %v1882_v0  ;;  %v2320_v54 = vmul.f32 0.3275911, %v6048_v16  ;;  %vm1887_vm12 = vweird.f32 %v3917_v42  ;;  %v7036_v34 = vld [vmem:[#allocation3_spill] sm:$0xff] }
 0x24a   : > { %v1964_v2 = vmul.f32 %v3682_v51, %v6003_v37  ;;  %v2413_v61 = vsel %vm2412_vm7, %v3915_v44, %v2409_v15  ;;  %v6058_v62 = vadd.f32 %v5714_v43, %v5951_v11  ;;  %v6077_v43 = vmul.f32 %v5995_v10, %v1442_v33 }
 0x24b   : > { %v2632_v25 = vsel %vm1006_vm0, %v6051_v14, 0.0  ;;  %v6072_v21 = vsel %vm6042_vm15, %v2417_v40, %v2413_v61  ;;  %v1884_v44 = vmul.f32 %v3917_v42, %v1883_v59  ;;  %v6074_v22 = vadd.f32 1.0, %v2320_v54 }
 0x24c   : > { %2633 = vadd.xlane.f32.xlu1 %v2632_v25  ;;  %v1365_v11 = vsel %vm6066_vm14, %v5959_v36, %v6022_v56  ;;  %v1972_v38 = vadd.f32 0.2548296, %v1964_v2  ;;  %v2455_v58 = vmul.f32 1.0614054, %v6072_v21  ;;  %v2171_v9 = vmul.f32 %v2163_v4, %v7036_v34 }
 0x24d   : > { %v1885_v8 = vadd.f32 %v3917_v42, %v1884_v44  ;;  %vm1886_vm1 = vweird.f32 %v6005_v49  ;;  %3920 = vrcp.f32 %v6074_v22  ;;  %v2535_v20 = vmul.f32 %v2527_v48, %v5979_v47 }
 0x24e   : > { %v1980_v10 = vmul.f32 %v1972_v38, %v6003_v37  ;;  %v3700_v33 = vadd.f32 -1.4531521, %v2455_v58  ;;  %vm1888_vm3 = vmor %vm1886_vm1, %vm1887_vm12  ;;  %v1893_v55 = vor.u32 1.1754944e-38, %v1892_v29  ;;  %v6090_v36 = vadd.f32 1e-06, %v2171_v9 }
 0x24f   : > { %v1889_v56 = vsel %vm1888_vm3, %v3917_v42, %v1885_v8  ;;  %vm1891_vm4 = vcmp.eq.f32.partialorder %v1890_v39, 8.507059e+37  ;;  %v6093_v24 = vmul.f32 0.70710677, %v6058_v62  ;;  %v1490_v0 = vsub.f32 1.0, %v6077_v43 }
 0x250   : > { %v2020_v49 = vmul.f32 %v3919_v31, %v1980_v10  ;;  %v2471_v51 = vmul.f32 %v3700_v33, %v6072_v21  ;;  %v6097_v15 = vsel %vm1891_vm4, %v1893_v55, %v1889_v56  ;;  %vm1367_vm5 = vcmp.eq.f32.partialorder %v1366_v53, 8.507059e+37 }
 0x251   : > { %3922 = vrsqrt.f32 %v6090_v36  ;;  %v1917_v47 = vmul.f32 1.0614054, %v6097_v15  ;;  %v1989_v37 = vsub.f32 0.0, %v5988_v35  ;;  %v6105_v48 = vsel %vm1367_vm5, %v6017_v1, %v1365_v11 }
 0x252   : > { %v2028_v42 = vsub.f32 1.0, %v2020_v49  ;;  %v2479_v40 = vadd.f32 1.4214138, %v2471_v51  ;;  %v2548_v39 = vmul.f32 1.442695, %v2535_v20  ;;  %v6108_v59 = vmul.f32 0.5, %v5858_v17 }
 0x253   : > { %v3921_v31 = vpop.eup %3920  ;;  %vm2036_vm6 = vcmp.lt.f32.partialorder %v5879_v26, 0.0  ;;  %v3675_v41 = vadd.f32 -1.4531521, %v1917_v47  ;;  %v6112_v53 = vand.u32 2147483647, %v6093_v24  ;;  %v6116_v29 = vsub.f32 0.0, %v1490_v0 }
 0x254   : > { %v6119_v1 = vmul.f32 0.5, %v5941_v3  ;;  %v2487_v54 = vmul.f32 %v2479_v40, %v6072_v21  ;;  %v2421_v2 = vmul.f32 %v3921_v31, %v6074_v22  ;;  %v1379_v17 = vmul.f32 1.0614054, %v6105_v48 }
 0x255   : > { %v1933_v61 = vmul.f32 %v3675_v41, %v6097_v15  ;;  %v1997_v25 = vmul.f32 %v1989_v37, %v5988_v35  ;;  %v1782_v57 = vmul.f32 0.3275911, %v6112_v53  ;;  %v2044_v44 = vsub.f32 0.0, %v2028_v42 }
 0x256   : > { %v3708_v11 = vadd.f32 -0.28449672, %v2487_v54  ;;  %3924 = vpow2.f32 %v2548_v39  ;;  %v2422_v38 = vsub.f32 1.0, %v2421_v2  ;;  %v2429_v3 = vand.u32 2147483647, %v6074_v22 }
 0x257   : > { %v3923_v58 = vpop.eup %3922  ;;  %v1941_v4 = vadd.f32 1.4214138, %v1933_v61  ;;  %v2431_v9 = vand.u32 2147483648, %v6074_v22  ;;  %v6129_v8 = vadd.f32 1.0, %v1782_v57  ;;  %vm2426_vm9 = vweird.f32 %v3921_v31 }
 0x258   : > { %v2503_v10 = vmul.f32 %v3708_v11, %v6072_v21  ;;  %v2251_v33 = vmul.f32 %v3923_v58, %v6090_v36  ;;  %v2423_v20 = vmul.f32 %v3921_v31, %v2422_v38  ;;  %v2011_v55 = vmul.f32 1.442695, %v1997_v25  ;;  %v2622_v11 = vpop.xlane.xlu0 %2621 }
 0x259   : > { %v1949_v35 = vmul.f32 %v1941_v4, %v6097_v15  ;;  %vm2425_vm10 = vweird.f32 %v6074_v22  ;;  %3926 = vrcp.f32 %v6129_v8  ;;  %v2052_v56 = vsel %vm2036_vm6, %v2044_v44, %v2028_v42 }
 0x25a   : > { %v2511_v49 = vadd.f32 0.2548296, %v2503_v10  ;;  %v2252_v51 = vmul.f32 %v3923_v58, %v2251_v33  ;;  %v2424_v47 = vadd.f32 %v3921_v31, %v2423_v20  ;;  %v3650_v37 = vadd.f32 -1.4531521, %v1379_v17  ;;  %vm2427_vm11 = vmor %vm2425_vm10, %vm2426_vm9 }
 0x25b   : > { %vm2575_vm8 = vcmp.lt.f32.partialorder %v5971_v30, 0.0  ;;  %v3683_v40 = vadd.f32 -0.28449672, %v1949_v35  ;;  %v2432_v39 = vor.u32 1.1754944e-38, %v2431_v9  ;;  %v2528_v41 = vsub.f32 0.0, %v6048_v16 }
 0x25c   : > { %v3925_v54 = vpop.eup %3924  ;;  %v2519_v2 = vmul.f32 %v2511_v49, %v6072_v21  ;;  %v2253_v22 = vmul.f32 0.5, %v2252_v51  ;;  %v2428_v61 = vsel %vm2427_vm11, %v3921_v31, %v2424_v47  ;;  %vm2430_vm13 = vcmp.eq.f32.partialorder %v2429_v3, 8.507059e+37 }
 0x25d   : > { %v2060_v25 = vadd.f32 1.0, %v2052_v56  ;;  %v1965_v26 = vmul.f32 %v3683_v40, %v6097_v15  ;;  %3928 = vpow2.f32 %v2011_v55  ;;  %v6142_v42 = vsel %vm2430_vm13, %v2432_v39, %v2428_v61  ;;  %v7037_v40 = vld [vmem:[#allocation7_spill] sm:$0xff] }
 0x25e   : > { %v2559_v17 = vmul.f32 %v3925_v54, %v2519_v2  ;;  %v2254_v57 = vsub.f32 1.5, %v2253_v22  ;;  %vm2257_vm15 = vweird.f32 %v3923_v58  ;;  %v2456_v44 = vmul.f32 1.0614054, %v6142_v42 }
 0x25f   : > { %v3927_v38 = vpop.eup %3926  ;;  %vm2256_vm7 = vweird.f32 %v6090_v36  ;;  %v1973_v4 = vadd.f32 0.2548296, %v1965_v26  ;;  %v2536_v21 = vmul.f32 %v2528_v41, %v6048_v16  ;;  %v2644_v31 = vmul.f32 %v2622_v11, %v7036_v34 }
 0x260   : > { %v2567_v3 = vsub.f32 1.0, %v2559_v17  ;;  %v2255_v9 = vmul.f32 %v3923_v58, %v2254_v57  ;;  %v3701_v10 = vadd.f32 -1.4531521, %v2456_v44  ;;  %v1897_v33 = vmul.f32 %v3927_v38, %v6129_v8  ;;  %vm2258_vm14 = vmor %vm2256_vm7, %vm2257_vm15 }
 0x261   : > { %vm1498_vm12 = vcmp.lt.f32.partialorder %v5690_v63, 0.0  ;;  %v2068_v20 = vmul.f32 %v2060_v25, %v6108_v59  ;;  %v1981_v35 = vmul.f32 %v1973_v4, %v6097_v15  ;;  %v6153_v55 = vsub.f32 %v5446_v5, %v2644_v31  ;;  %v857_v63 = vpop.f32.mrf.mxu0 }
 0x262   : > { %v1905_v36 = vand.u32 2147483647, %v6129_v8  ;;  %v2583_v16 = vsub.f32 0.0, %v2567_v3  ;;  %v2259_v56 = vsel %vm2258_vm14, %v3923_v58, %v2255_v9  ;;  %v2472_v49 = vmul.f32 %v3701_v10, %v6142_v42 }
 0x263   : > { %v1898_v51 = vsub.f32 1.0, %v1897_v33  ;;  %v3929_v47 = vpop.eup %3928  ;;  %v2267_v39 = vmul.f32 %v2259_v56, %v7037_v40  ;;  %v2660_v41 = vmul.f32 %v6153_v55, %v6153_v55  ;;  %vm1902_vm1 = vweird.f32 %v3927_v38 }
 0x264   : > { %v1907_v59 = vand.u32 2147483648, %v6129_v8  ;;  %v2591_v5 = vsel %vm2575_vm8, %v2583_v16, %v2567_v3  ;;  %v2021_v15 = vmul.f32 %v3929_v47, %v1981_v35  ;;  %v2480_v54 = vadd.f32 1.4214138, %v2472_v49 }
 0x265   : > { %v1899_v2 = vmul.f32 %v3927_v38, %v1898_v51  ;;  %v1395_v58 = vmul.f32 %v3650_v37, %v6105_v48  ;;  %v2599_v22 = vadd.f32 1.0, %v2591_v5  ;;  %v2550_v61 = vmul.f32 1.442695, %v2536_v21 }
 0x266   : > { %v2668_v25 = vsel %vm1006_vm0, %v2660_v41, 0.0  ;;  %v2076_v26 = vadd.f32 %v2068_v20, %v6007_v18  ;;  %v2488_v17 = vmul.f32 %v2480_v54, %v6142_v42  ;;  %vm1901_vm3 = vweird.f32 %v6129_v8  ;;  %v2625_v44 = vpop.xlane.xlu1 %2624 }
 0x267   : > { %2669 = vadd.xlane.f32.xlu0 %v2668_v25  ;;  %v1900_v57 = vadd.f32 %v3927_v38, %v1899_v2  ;;  %v2607_v30 = vmul.f32 %v2599_v22, %v6119_v1  ;;  %vm1903_vm4 = vmor %vm1901_vm3, %vm1902_vm1  ;;  %vm1906_vm5 = vcmp.eq.f32.partialorder %v1905_v36, 8.507059e+37  ;;  %v1908_v11 = vor.u32 1.1754944e-38, %v1907_v59 }
 0x268   : > { %v2278_v37 = vmul.f32 %v5763_v46, %v2267_v39  ;;  %v2029_v4 = vsub.f32 1.0, %v2021_v15  ;;  %v3709_v21 = vadd.f32 -0.28449672, %v2488_v17  ;;  %v2645_v31 = vmul.f32 %v2625_v44, %v7036_v34 }
 0x269   : > { %v1904_v18 = vsel %vm1903_vm4, %v3927_v38, %v1900_v57  ;;  %v6172_v3 = vadd.f32 %v2607_v30, %v2076_v26  ;;  %3930 = vpow2.f32 %v2550_v61  ;;  %v1514_v1 = vsel %vm1498_vm12, %v6116_v29, %v1490_v0 }
 0x26a   : > { %v6174_v9 = vsel %vm1906_vm5, %v1908_v11, %v1904_v18  ;;  %v6177_v8 = vadd.f32 %v5802_v50, %v2278_v37  ;;  %v2504_v46 = vmul.f32 %v3709_v21, %v6142_v42  ;;  %v6186_v10 = vsub.f32 %v5633_v19, %v2645_v31 }
 0x26b   : > { %v1918_v38 = vmul.f32 1.0614054, %v6174_v9  ;;  %v1403_v33 = vadd.f32 1.4214138, %v1395_v58  ;;  %v2635_v20 = vsel %vm1006_vm0, %v6172_v3, 0.0  ;;  %v2045_v43 = vsub.f32 0.0, %v2029_v4 }
 0x26c   : > { %v6192_v50 = vmul.f32 0.70710677, %v6177_v8  ;;  %2636 = vadd.xlane.f32.xlu2 %v2635_v20  ;;  %v2512_v35 = vadd.f32 0.2548296, %v2504_v46  ;;  %v1522_v0 = vadd.f32 1.0, %v1514_v1  ;;  %v2661_v29 = vmul.f32 %v6186_v10, %v6186_v10 }
 0x26d   : > { %v3676_v36 = vadd.f32 -1.4531521, %v1918_v38  ;;  %v1218_v51 = vmul.f32 0.5, %v5682_v23  ;;  %vm2037_vm6 = vcmp.lt.f32.partialorder %v5974_v12, 0.0  ;;  %v858_v40 = vadd.f32 %v5796_v32, %v857_v63 }
 0x26e   : > { %v6197_v19 = vand.u32 2147483647, %v6192_v50  ;;  %v2520_v16 = vmul.f32 %v2512_v35, %v6142_v42  ;;  %v1411_v39 = vmul.f32 %v1403_v33, %v6105_v48  ;;  %v2053_v41 = vsel %vm2037_vm6, %v2045_v43, %v2029_v4 }
 0x26f   : > { %v1934_v56 = vmul.f32 %v3676_v36, %v6174_v9  ;;  %v3931_v49 = vpop.eup %3930  ;;  %v1530_v5 = vmul.f32 %v1522_v0, %v1218_v51  ;;  %v1451_v15 = vsub.f32 0.0, %v5874_v60  ;;  %v2671_v42 = vsel %vm1006_vm0, %v2661_v29, 0.0 }
 0x270   : > { %v2321_v47 = vmul.f32 0.3275911, %v6197_v19  ;;  %v2560_v59 = vmul.f32 %v3931_v49, %v2520_v16  ;;  %v2061_v22 = vadd.f32 1.0, %v2053_v41  ;;  %v3658_v23 = vadd.f32 -0.28449672, %v1411_v39 }
 0x271   : > { %v1942_v58 = vadd.f32 1.4214138, %v1934_v56  ;;  %v1538_v61 = vadd.f32 %v1530_v5, %v858_v40  ;;  %v1459_v25 = vmul.f32 %v1451_v15, %v5874_v60  ;;  %v1757_v26 = vmul.f32 0.5, %v5945_v27 }
 0x272   : > { %v2329_v54 = vadd.f32 1.0, %v2321_v47  ;;  %v2568_v2 = vsub.f32 1.0, %v2560_v59  ;;  %vm2576_vm9 = vcmp.lt.f32.partialorder %v6038_v52, 0.0  ;;  %v2296_v44 = vmul.f32 0.5, %v6030_v28 }
 0x273   : > { %v1950_v57 = vmul.f32 %v1942_v58, %v6174_v9  ;;  %v2069_v30 = vmul.f32 %v2061_v22, %v1757_v26  ;;  %v1990_v37 = vsub.f32 0.0, %v6112_v53  ;;  %v1427_v4 = vmul.f32 %v3658_v23, %v6105_v48 }
 0x274   : > { %3932 = vrcp.f32 %v2329_v54  ;;  %v2584_v12 = vsub.f32 0.0, %v2568_v2  ;;  %2672 = vadd.xlane.f32.xlu2 %v2671_v42  ;;  %v1474_v31 = vmul.f32 1.442695, %v1459_v25  ;;  %v2446_v20 = vand.u32 2147483648, %v2329_v54 }
 0x275   : > { %v2077_v18 = vadd.f32 %v2069_v30, %v1538_v61  ;;  %v3684_v60 = vadd.f32 -0.28449672, %v1950_v57  ;;  %v1998_v52 = vmul.f32 %v1990_v37, %v6112_v53  ;;  %v1435_v38 = vadd.f32 0.2548296, %v1427_v4  ;;  %v860_v37 = vpop.f32.mrf.mxu0 }
 0x276   : > { %v2592_v17 = vsel %vm2576_vm9, %v2584_v12, %v2568_v2  ;;  %3934 = vpow2.f32 %v1474_v31  ;;  %v2444_v36 = vand.u32 2147483647, %v2329_v54  ;;  %vm2440_vm8 = vweird.f32 %v2329_v54 }
 0x277   : > { %v2600_v11 = vadd.f32 1.0, %v2592_v17  ;;  %v1966_v43 = vmul.f32 %v3684_v60, %v6174_v9  ;;  %v2013_v63 = vmul.f32 1.442695, %v1998_v52  ;;  %v1443_v0 = vmul.f32 %v1435_v38, %v6105_v48 }
 0x278   : > { %v2447_v53 = vor.u32 1.1754944e-38, %v2446_v20  ;;  %vm2445_vm13 = vcmp.eq.f32.partialorder %v2444_v36, 8.507059e+37  ;;  %v2529_v40 = vsub.f32 0.0, %v6197_v19  ;;  %vm1499_vm15 = vcmp.lt.f32.partialorder %v5854_v7, 0.0 }
 0x279   : > { %v2608_v1 = vmul.f32 %v2600_v11, %v2296_v44  ;;  %v1974_v16 = vadd.f32 0.2548296, %v1966_v43  ;;  %3936 = vpow2.f32 %v2013_v63  ;;  %v1219_v31 = vmul.f32 0.5, %v5832_v6 }
 0x27a   : > { %v3933_v21 = vpop.eup %3932  ;;  %v2537_v42 = vmul.f32 %v2529_v40, %v6197_v19  ;;  %vm2038_vm7 = vcmp.lt.f32.partialorder %v6093_v24, 0.0  ;;  %v861_v60 = vadd.f32 %v5796_v32, %v860_v37  ;;  %vm2577_vm12 = vcmp.lt.f32.partialorder %v6192_v50, 0.0  ;;  %v2821_v37 = vld [vmem:[%s6899_s13 + $0x18] sm:$0xff] }
 0x27b   : > { %v2436_v46 = vmul.f32 %v3933_v21, %v2329_v54  ;;  %v6215_v27 = vadd.f32 %v2608_v1, %v2077_v18  ;;  %vm2441_vm10 = vweird.f32 %v3933_v21  ;;  %v1982_v48 = vmul.f32 %v1974_v16, %v6174_v9 }
 0x27c   : > { %vm2442_vm11 = vmor %vm2440_vm8, %vm2441_vm10  ;;  %v3935_v49 = vpop.eup %3934  ;;  %v2552_v25 = vmul.f32 1.442695, %v2537_v42  ;;  %vm930_vm14 = vcmask 130048   ;;  %v922_v42 = vld [vmem:[%s6261_s27 + $0x30] sm:$0xff] }
 0x27d   : > { %v2437_v33 = vsub.f32 1.0, %v2436_v46  ;;  %v2638_v28 = vsel %vm1006_vm0, %v6215_v27, 0.0  ;;  %v1483_v39 = vmul.f32 %v3935_v49, %v1443_v0 }
 0x27e   : > { %2639 = vadd.xlane.f32.xlu1 %v2638_v28  ;;  %3938 = vpow2.f32 %v2552_v25  ;;  %v1758_v28 = vmul.f32 0.5, %v6058_v62 }
 0x27f   : > { %v2438_v35 = vmul.f32 %v3933_v21, %v2437_v33  ;;  %v1491_v54 = vsub.f32 1.0, %v1483_v39  ;;  %v3937_v22 = vpop.eup %3936  ;;  %v921_v39 = vld [vmem:[%s6261_s27 + $0x28] sm:$0xff] }
 0x280   : > { %v2022_v23 = vmul.f32 %v3937_v22, %v1982_v48 }
 0x281   : > { %v2439_v29 = vadd.f32 %v3933_v21, %v2438_v35  ;;  %v1507_v26 = vsub.f32 0.0, %v1491_v54  ;;  %v2297_v35 = vmul.f32 0.5, %v6177_v8 }
 0x282   : > { %v2628_v51 = vpop.xlane.xlu2 %2627  ;;  %v2030_v17 = vsub.f32 1.0, %v2022_v23 }
 0x283   : > { %v2443_v56 = vsel %vm2442_vm11, %v3933_v21, %v2439_v29  ;;  %v2646_v41 = vmul.f32 %v2628_v51, %v7036_v34  ;;  %v1515_v9 = vsel %vm1499_vm15, %v1507_v26, %v1491_v54 }
 0x284   : > { %v2448_v47 = vsel %vm2445_vm13, %v2447_v53, %v2443_v56  ;;  %v2046_v30 = vsub.f32 0.0, %v2030_v17  ;;  %v1523_v11 = vadd.f32 1.0, %v1515_v9  ;;  %v3939_v21 = vpop.eup %3938 }
 0x285   : > { %v2457_v59 = vmul.f32 1.0614054, %v2448_v47  ;;  %v6225_v5 = vsub.f32 %v5755_v45, %v2646_v41 }
 0x286   : > { %v2054_v18 = vsel %vm2038_vm7, %v2046_v30, %v2030_v17  ;;  %v1531_v46 = vmul.f32 %v1523_v11, %v1219_v31  ;;  %v923_v11 = vld [vmem:[%s6261_s27 + $0x38] sm:$0xff] }
 0x287   : > { %v3702_v15 = vadd.f32 -1.4531521, %v2457_v59  ;;  %v2662_v58 = vmul.f32 %v6225_v5, %v6225_v5  ;;  %v2062_v7 = vadd.f32 1.0, %v2054_v18  ;;  %v2820_v18 = vld [vmem:[%s6899_s13 + $0x10] sm:$0xff] }
 0x288   : > { %v1539_v33 = vadd.f32 %v1531_v46, %v861_v60  ;;  %v6314_v60 = vld [vmem:[%s6897_s11] ss:$0 sm:$0xff] }
 0x289   : > { %v2473_v2 = vmul.f32 %v3702_v15, %v2448_v47  ;;  %v2674_v61 = vsel %vm1006_vm0, %v2662_v58, 0.0  ;;  %v2070_v43 = vmul.f32 %v2062_v7, %v1758_v28  ;;  %v6319_v46 = vld [vmem:[%s6898_s12] ss:$0 sm:$0xff] }
 0x28a   : > { %2675 = vadd.xlane.f32.xlu1 %v2674_v61 }
 0x28b   : > { %v2481_v12 = vadd.f32 1.4214138, %v2473_v2  ;;  %v2078_v36 = vadd.f32 %v2070_v43, %v1539_v33  ;;  %v870_v43 = vld [vmem:[%s6893_s7 + $0x38] sm:$0xff] }
 0x28c   : > { %883 = vmatpush.msra.mxu1 %v870_v43 }
 0x28d   : > { %v2489_v45 = vmul.f32 %v2481_v12, %v2448_v47 }
 0x28f   : > { %v3710_v57 = vadd.f32 -0.28449672, %v2489_v45 }
 0x291   : > { %v2505_v19 = vmul.f32 %v3710_v57, %v2448_v47 }
 0x293   : > { %v2513_v44 = vadd.f32 0.2548296, %v2505_v19 }
 0x295   : > { %v2521_v4 = vmul.f32 %v2513_v44, %v2448_v47  ;;  %v6266_v47 = vld [vmem:[%s6895_s9 + $0x8] sm:$0xff] }
 0x296   : > { %3748 = vmatpush.msra.mxu3 %v6266_v47  ;;  %3747 = vmatpush.msra.mxu2 %v6266_v47 }
 0x297   : > { %v2561_v1 = vmul.f32 %v3939_v21, %v2521_v4  ;;  %969 = vmatpush.msrb.mxu0 %v6266_v47 }
 0x299   : > { %v2569_v52 = vsub.f32 1.0, %v2561_v1  ;;  %v2819_v1 = vld [vmem:[%s6899_s13 + $0x8] sm:$0xff] }
 0x29b   : > { %v2585_v38 = vsub.f32 0.0, %v2569_v52 }
 0x29d   : > { %v2593_v20 = vsel %vm2577_vm12, %v2585_v38, %v2569_v52 }
 0x29e   : > { %v2601_v6 = vadd.f32 1.0, %v2593_v20 }
 0x2a0   : > { %v2609_v24 = vmul.f32 %v2601_v6, %v2297_v35  ;;  %v2631_v32 = vpop.xlane.xlu0 %2630 }
 0x2a1   : > { %v2647_v0 = vmul.f32 %v2631_v32, %v7036_v34 }
 0x2a2   : > { %v6239_v63 = vadd.f32 %v2609_v24, %v2078_v36 }
 0x2a3   : > { %v6245_v62 = vsub.f32 %v5918_v13, %v2647_v0 }
 0x2a4   : > { %v2641_v29 = vsel %vm1006_vm0, %v6239_v63, 0.0 }
 0x2a5   : > { %2642 = vadd.xlane.f32.xlu0 %v2641_v29  ;;  %v2663_v50 = vmul.f32 %v6245_v62, %v6245_v62 }
 0x2a7   : > { %v2677_v8 = vsel %vm1006_vm0, %v2663_v50, 0.0 }
 0x2a8   : > { %2678 = vadd.xlane.f32.xlu2 %v2677_v8 }
 0x2bf   : > { %v2634_v53 = vpop.xlane.xlu1 %2633 }
 0x2c0   : > { %v2648_v16 = vmul.f32 %v2634_v53, %v7036_v34 }
 0x2c2   : > { %v6252_v56 = vsub.f32 %v6051_v14, %v2648_v16  ;;  %v6271_v14 = vld [vmem:[%s6895_s9] sm:$0xff]  ;;  %v869_v16 = vld [vmem:[%s6893_s7 + $0x30] sm:$0xff] }
 0x2c3   : > { %3751 = vmatpush.msra.mxu3 %v6271_v14  ;;  %3750 = vmatpush.msra.mxu2 %v6271_v14 }
 0x2c4   : > { %v2664_v49 = vmul.f32 %v6252_v56, %v6252_v56  ;;  %3640 = vmatmul.msk.f32.vlgmr.msra.gmra.mxu3 %vm930_vm14, %v921_v39  ;;  %970 = vmatpush.msrb.mxu0 %v6271_v14 }
 0x2c5   : > { %2862 = vmatpush.msrb.mxu3 %v2821_v37  ;;  %884 = vmatpush.msra.mxu1 %v869_v16 }
 0x2c6   : > { %v2680_v51 = vsel %vm1006_vm0, %v2664_v49, 0.0  ;;  %v867_v49 = vld [vmem:[%s6893_s7 + $0x20] sm:$0xff] }
 0x2c7   : > { %2681 = vadd.xlane.f32.xlu0 %v2680_v51  ;;  %2863 = vmatpush.msrb.mxu3 %v2820_v18  ;;  %v866_v51 = vld [vmem:[%s6893_s7 + $0x18] sm:$0xff] }
 0x2c9   : > { %2864 = vmatpush.msrb.mxu3 %v2819_v1 }
 0x2cc   : > { %3641 = vmatmul.msk.f32.gmra.mxu3 %vm930_vm14, %v922_v42 }
 0x2d4   : > { %3642 = vmatmul.msk.f32.gmra.mxu3 %vm930_vm14, %v923_v11  ;;  %v863_v11 = vld [vmem:[%s6893_s7] sm:$0xff] }
 0x2da   : > { %v2670_v13 = vpop.xlane.xlu0 %2669 }
 0x2db   : > { %v2692_v40 = vmul.f32 %v2670_v13, %v7036_v34 }
 0x2dd   : > { %v2700_v41 = vadd.f32 1e-06, %v2692_v40 }
 0x2df   : > { %3940 = vrsqrt.f32 %v2700_v41  ;;  %v2637_v59 = vpop.xlane.xlu2 %2636  ;;  %vm2714_vm3 = vweird.f32 %v2700_v41 }
 0x2e0   : > { %v2649_v48 = vmul.f32 %v2637_v59, %v7036_v34 }
 0x2e2   : > { %v6284_v15 = vsub.f32 %v6172_v3, %v2649_v48 }
 0x2e4   : > { %v2665_v2 = vmul.f32 %v6284_v15, %v6284_v15 }
 0x2e5   : > { %v3941_v54 = vpop.eup %3940 }
 0x2e6   : > { %v2683_v58 = vsel %vm1006_vm0, %v2665_v2, 0.0  ;;  %v2709_v22 = vmul.f32 %v3941_v54, %v2700_v41  ;;  %vm2715_vm1 = vweird.f32 %v3941_v54 }
 0x2e7   : > { %2684 = vadd.xlane.f32.xlu1 %v2683_v58  ;;  %v2673_v23 = vpop.xlane.xlu2 %2672  ;;  %vm2716_vm4 = vmor %vm2714_vm3, %vm2715_vm1 }
 0x2e8   : > { %v2693_v12 = vmul.f32 %v2673_v23, %v7036_v34  ;;  %v2710_v61 = vmul.f32 %v3941_v54, %v2709_v22 }
 0x2ea   : > { %v2701_v25 = vadd.f32 1e-06, %v2693_v12  ;;  %v2711_v26 = vmul.f32 0.5, %v2710_v61 }
 0x2ec   : > { %3942 = vrsqrt.f32 %v2701_v25  ;;  %v2712_v17 = vsub.f32 1.5, %v2711_v26  ;;  %vm2724_vm6 = vweird.f32 %v2701_v25 }
 0x2ee   : > { %v2713_v19 = vmul.f32 %v3941_v54, %v2712_v17 }
 0x2f0   : > { %v2717_v4 = vsel %vm2716_vm4, %v3941_v54, %v2713_v19  ;;  %v864_v19 = vld [vmem:[%s6893_s7 + $0x8] sm:$0xff] }
 0x2f1   : > { %v2640_v3 = vpop.xlane.xlu1 %2639 }
 0x2f2   : > { %v2650_v45 = vmul.f32 %v2640_v3, %v7036_v34  ;;  %v3943_v30 = vpop.eup %3942 }
 0x2f3   : > { %v2719_v21 = vmul.f32 %v3943_v30, %v2701_v25  ;;  %vm2725_vm5 = vweird.f32 %v3943_v30 }
 0x2f4   : > { %v6294_v57 = vsub.f32 %v6215_v27, %v2650_v45  ;;  %v2788_v27 = vmul.f32 %v2717_v4, %v6153_v55  ;;  %v2818_v55 = vld [vmem:[%s6899_s13] sm:$0xff]  ;;  %vm2726_vm9 = vmor %vm2724_vm6, %vm2725_vm5 }
 0x2f5   : > { %v2720_v31 = vmul.f32 %v3943_v30, %v2719_v21  ;;  %2865 = vmatpush.msrb.mxu3 %v2818_v55 }
 0x2f6   : > { %v2666_v9 = vmul.f32 %v6294_v57, %v6294_v57  ;;  %v2799_v52 = vmul.f32 %v6314_v60, %v2788_v27 }
 0x2f7   : > { %v2721_v7 = vmul.f32 0.5, %v2720_v31  ;;  %v4011_v31 = vld [vmem:[%s4492_s29] sm:$0xff] }
 0x2f8   : > { %v2686_v44 = vsel %vm1006_vm0, %v2666_v9, 0.0  ;;  %v6326_v38 = vadd.f32 %v6319_v46, %v2799_v52  ;;  %v865_v9 = vld [vmem:[%s6893_s7 + $0x10] sm:$0xff] }
 0x2f9   : > { %2687 = vadd.xlane.f32.xlu2 %v2686_v44  ;;  %v2722_v33 = vsub.f32 1.5, %v2721_v7 }
 0x2fa   : > { %3711 = vmatmul.msk.f32.vlgmr.msrb.gmra.mxu3 %vm1006_vm0, %v6326_v38 }
 0x2fb   : > { %v2723_v28 = vmul.f32 %v3943_v30, %v2722_v33 }
 0x2fd   : > { %v2727_v20 = vsel %vm2726_vm9, %v3943_v30, %v2723_v28  ;;  %v2676_v50 = vpop.xlane.xlu1 %2675  ;;  %v4012_v28 = vld [vmem:[%s4492_s29 + $0x8] sm:$0xff] }
 0x2fe   : > { %v2789_v35 = vmul.f32 %v2727_v20, %v6186_v10  ;;  %v2694_v8 = vmul.f32 %v2676_v50, %v7036_v34 }
 0x300   : > { %v2800_v6 = vmul.f32 %v6314_v60, %v2789_v35  ;;  %v2702_v53 = vadd.f32 1e-06, %v2694_v8 }
 0x302   : > { %v6336_v36 = vadd.f32 %v6319_v46, %v2800_v6  ;;  %3944 = vrsqrt.f32 %v2702_v53  ;;  %vm2734_vm8 = vweird.f32 %v2702_v53 }
 0x304   : > { %3712 = vmatmul.msk.f32.gmra.mxu3 %vm1006_vm0, %v6336_v36 }
 0x308   : > { %v3945_v13 = vpop.eup %3944 }
 0x309   : > { %v2729_v39 = vmul.f32 %v3945_v13, %v2702_v53  ;;  %vm2735_vm10 = vweird.f32 %v3945_v13 }
 0x30a   : > { %vm2736_vm11 = vmor %vm2734_vm8, %vm2735_vm10 }
 0x30b   : > { %v2730_v42 = vmul.f32 %v3945_v13, %v2729_v39 }
 0x30d   : > { %v2731_v58 = vmul.f32 0.5, %v2730_v42 }
 0x30f   : > { %v2732_v22 = vsub.f32 1.5, %v2731_v58 }
 0x311   : > { %v2733_v61 = vmul.f32 %v3945_v13, %v2732_v22 }
 0x313   : > { %v2737_v3 = vsel %vm2736_vm11, %v3945_v13, %v2733_v61 }
 0x314   : > { %v2790_v30 = vmul.f32 %v2737_v3, %v6225_v5 }
 0x316   : > { %v2801_v37 = vmul.f32 %v6314_v60, %v2790_v30  ;;  %v6436_v30 = vld [vmem:[%s6900_s14] ss:$0 sm:$0xff] }
 0x318   : > { %v2643_v24 = vpop.xlane.xlu0 %2642  ;;  %v6374_v21 = vadd.f32 %v6319_v46, %v2801_v37 }
 0x319   : > { %v2651_v32 = vmul.f32 %v2643_v24, %v7036_v34 }
 0x31a   : > { %3713 = vmatmul.msk.f32.gmra.mxu3 %vm1006_vm0, %v6374_v21 }
 0x31b   : > { %v6342_v0 = vsub.f32 %v6239_v63, %v2651_v32  ;;  %v868_v63 = vld [vmem:[%s6893_s7 + $0x28] sm:$0xff]  ;;  %v2679_v40 = vpop.xlane.xlu2 %2678  ;;  %v4013_v32 = vld [vmem:[%s4492_s29 + $0x10] sm:$0xff] }
 0x31c   : > { %885 = vmatpush.msra.mxu1 %v868_v63  ;;  %v2695_v41 = vmul.f32 %v2679_v40, %v7036_v34  ;;  %v4014_v63 = vld [vmem:[%s4492_s29 + $0x18] sm:$0xff] }
 0x31d   : > { %v2667_v29 = vmul.f32 %v6342_v0, %v6342_v0 }
 0x31e   : > { %886 = vmatpush.msra.mxu1 %v867_v49  ;;  %v2703_v54 = vadd.f32 1e-06, %v2695_v41  ;;  %v4015_v41 = vld [vmem:[%s4492_s29 + $0x20] sm:$0xff] }
 0x31f   : > { %v2689_v10 = vsel %vm1006_vm0, %v2667_v29, 0.0 }
 0x320   : > { %2690 = vadd.xlane.f32.xlu0 %v2689_v10  ;;  %887 = vmatpush.msra.mxu1 %v866_v51  ;;  %3946 = vrsqrt.f32 %v2703_v54  ;;  %vm2744_vm15 = vweird.f32 %v2703_v54 }
 0x322   : > { %888 = vmatpush.msra.mxu1 %v865_v9 }
 0x324   : > { %889 = vmatpush.msra.mxu1 %v864_v19 }
 0x326   : > { %v3947_v23 = vpop.eup %3946  ;;  %890 = vmatpush.msra.mxu1 %v863_v11 }
 0x327   : > { %v2739_v25 = vmul.f32 %v3947_v23, %v2703_v54  ;;  %3627 = vmatmul.msk.f32.vlgmr.msra.gmra.mxu1 %vm797_vm2, %v4011_v31  ;;  %vm2745_vm13 = vweird.f32 %v3947_v23 }
 0x328   : > { %3746 = vmatpush.msrb.mxu1 %v6266_v47  ;;  %vm2746_vm12 = vmor %vm2744_vm15, %vm2745_vm13 }
 0x329   : > { %v2740_v45 = vmul.f32 %v3947_v23, %v2739_v25  ;;  %v4017_v25 = vld [vmem:[%s4492_s29 + $0x30] sm:$0xff] }
 0x32a   : > { %3749 = vmatpush.msrb.mxu1 %v6271_v14 }
 0x32b   : > { %v2741_v44 = vmul.f32 0.5, %v2740_v45  ;;  %v4018_v45 = vld [vmem:[%s4492_s29 + $0x38] sm:$0xff] }
 0x32d   : > { %v2742_v27 = vsub.f32 1.5, %v2741_v44 }
 0x32f   : > { %v2743_v18 = vmul.f32 %v3947_v23, %v2742_v27  ;;  %3628 = vmatmul.msk.f32.gmra.mxu1 %vm797_vm2, %v4012_v28 }
 0x331   : > { %v2747_v33 = vsel %vm2746_vm12, %v3947_v23, %v2743_v18 }
 0x332   : > { %v2791_v14 = vmul.f32 %v2747_v33, %v6245_v62 }
 0x334   : > { %v2802_v20 = vmul.f32 %v6314_v60, %v2791_v14 }
 0x336   : > { %v6389_v6 = vadd.f32 %v6319_v46, %v2802_v20 }
 0x337   : > { %3629 = vmatmul.msk.f32.gmra.mxu1 %vm797_vm2, %v4013_v32 }
 0x338   : > { %3714 = vmatmul.msk.f32.gmra.mxu3 %vm1006_vm0, %v6389_v6 }
 0x33a   : > { %v2682_v59 = vpop.xlane.xlu0 %2681 }
 0x33b   : > { %v2696_v48 = vmul.f32 %v2682_v59, %v7036_v34 }
 0x33d   : > { %v2704_v2 = vadd.f32 1e-06, %v2696_v48 }
 0x33f   : > { %3948 = vrsqrt.f32 %v2704_v2  ;;  %vm2754_vm1 = vweird.f32 %v2704_v2  ;;  %3630 = vmatmul.msk.f32.gmra.mxu1 %vm797_vm2, %v4014_v63 }
 0x345   : > { %v3949_v12 = vpop.eup %3948 }
 0x346   : > { %v2749_v26 = vmul.f32 %v3949_v12, %v2704_v2  ;;  %vm2755_vm7 = vweird.f32 %v3949_v12 }
 0x347   : > { %vm2756_vm3 = vmor %vm2754_vm1, %vm2755_vm7  ;;  %3631 = vmatmul.msk.f32.gmra.mxu1 %vm797_vm2, %v4015_v41  ;;  %v6415_v58 = vpop.f32.mrf.mxu3 }
 0x348   : > { %v2750_v17 = vmul.f32 %v3949_v12, %v2749_v26 }
 0x34a   : > { %v2751_v4 = vmul.f32 0.5, %v2750_v17 }
 0x34c   : > { %v2752_v5 = vsub.f32 1.5, %v2751_v4 }
 0x34e   : > { %v2753_v52 = vmul.f32 %v3949_v12, %v2752_v5 }
 0x34f   : > { %v6424_v3 = vpop.f32.mrf.mxu3 }
 0x350   : > { %v2757_v47 = vsel %vm2756_vm3, %v3949_v12, %v2753_v52 }
 0x351   : > { %v2792_v43 = vmul.f32 %v2757_v47, %v6252_v56 }
 0x353   : > { %v2803_v29 = vmul.f32 %v6314_v60, %v2792_v43 }
 0x355   : > { %v6397_v50 = vadd.f32 %v6319_v46, %v2803_v29 }
 0x357   : > { %3715 = vmatmul.msk.f32.gmra.mxu3 %vm1006_vm0, %v6397_v50  ;;  %v6430_v17 = vpop.f32.mrf.mxu3 }
 0x35a   : > { %v2685_v1 = vpop.xlane.xlu1 %2684 }
 0x35b   : > { %v2697_v55 = vmul.f32 %v2685_v1, %v7036_v34 }
 0x35d   : > { %v2705_v7 = vadd.f32 1e-06, %v2697_v55 }
 0x35f   : > { %3950 = vrsqrt.f32 %v2705_v7  ;;  %vm2764_vm5 = vweird.f32 %v2705_v7 }
 0x365   : > { %v3951_v35 = vpop.eup %3950 }
 0x366   : > { %v2759_v24 = vmul.f32 %v3951_v35, %v2705_v7  ;;  %vm2765_vm4 = vweird.f32 %v3951_v35 }
 0x367   : > { %vm2766_vm6 = vmor %vm2764_vm5, %vm2765_vm4 }
 0x368   : > { %v2760_v10 = vmul.f32 %v3951_v35, %v2759_v24 }
 0x36a   : > { %v2761_v62 = vmul.f32 0.5, %v2760_v10 }
 0x36c   : > { %v2762_v56 = vsub.f32 1.5, %v2761_v62  ;;  %v2688_v8 = vpop.xlane.xlu2 %2687 }
 0x36d   : > { %v2698_v53 = vmul.f32 %v2688_v8, %v7036_v34 }
 0x36e   : > { %v2763_v16 = vmul.f32 %v3951_v35, %v2762_v56 }
 0x36f   : > { %v2706_v49 = vadd.f32 1e-06, %v2698_v53 }
 0x370   : > { %v2767_v51 = vsel %vm2766_vm6, %v3951_v35, %v2763_v16 }
 0x371   : > { %3952 = vrsqrt.f32 %v2706_v49  ;;  %v2793_v13 = vmul.f32 %v2767_v51, %v6284_v15  ;;  %v4016_v15 = vld [vmem:[%s4492_s29 + $0x28] sm:$0xff]  ;;  %vm2774_vm10 = vweird.f32 %v2706_v49 }
 0x372   : > { %3632 = vmatmul.msk.f32.gmra.mxu1 %vm797_vm2, %v4016_v15 }
 0x373   : > { %v2804_v40 = vmul.f32 %v6314_v60, %v2793_v13 }
 0x375   : > { %v6407_v39 = vadd.f32 %v6319_v46, %v2804_v40 }
 0x377   : > { %v3953_v59 = vpop.eup %3952  ;;  %3716 = vmatmul.msk.f32.gmra.mxu3 %vm1006_vm0, %v6407_v39 }
 0x378   : > { %v2769_v48 = vmul.f32 %v3953_v59, %v2706_v49  ;;  %vm2775_vm9 = vweird.f32 %v3953_v59 }
 0x379   : > { %vm2776_vm8 = vmor %vm2774_vm10, %vm2775_vm9 }
 0x37a   : > { %v2770_v42 = vmul.f32 %v3953_v59, %v2769_v48  ;;  %3633 = vmatmul.msk.f32.gmra.mxu1 %vm797_vm2, %v4017_v25 }
 0x37c   : > { %v2771_v54 = vmul.f32 0.5, %v2770_v42 }
 0x37d   : > { %v2867_v44 = vpop.f32.mrf.mxu3 }
 0x37e   : > { %v2772_v2 = vsub.f32 1.5, %v2771_v54  ;;  %v6439_v11 = vadd.f32 %v6436_v30, %v2867_v44 }
 0x380   : > { %v2773_v22 = vmul.f32 %v3953_v59, %v2772_v2  ;;  %v6442_v37 = vmul.f32 0.70710677, %v6439_v11 }
 0x382   : > { %v2777_v23 = vsel %vm2776_vm8, %v3953_v59, %v2773_v22  ;;  %3634 = vmatmul.msk.f32.gmra.mxu1 %vm797_vm2, %v4018_v45  ;;  %v2907_v27 = vand.u32 2147483647, %v6442_v37  ;;  %vm3171_vm10 = vcmp.lt.f32.partialorder %v6442_v37, 0.0 }
 0x383   : > { %v2794_v12 = vmul.f32 %v2777_v23, %v6294_v57 }
 0x384   : > { %v2915_v5 = vmul.f32 0.3275911, %v2907_v27  ;;  %v3123_v48 = vsub.f32 0.0, %v2907_v27 }
 0x385   : > { %v2805_v61 = vmul.f32 %v6314_v60, %v2794_v12 }
 0x386   : > { %v2923_v55 = vadd.f32 1.0, %v2915_v5  ;;  %v3131_v15 = vmul.f32 %v3123_v48, %v2907_v27 }
 0x387   : > { %v6422_v26 = vadd.f32 %v6319_v46, %v2805_v61  ;;  %v2870_v56 = vpop.f32.mrf.mxu3 }
 0x388   : > { %v2942_v29 = vand.u32 2147483648, %v2923_v55  ;;  %vm2936_vm12 = vweird.f32 %v2923_v55  ;;  %v2940_v10 = vand.u32 2147483647, %v2923_v55  ;;  %v3139_v45 = vmul.f32 1.442695, %v3131_v15  ;;  %v3214_v15 = vld [vmem:[%s6901_s15 + $0x18] sm:$0xff] }
 0x389   : > { %3717 = vmatmul.msk.f32.gmra.mxu3 %vm1006_vm0, %v6422_v26 }
 0x38a   : > { %vm2941_vm3 = vcmp.eq.f32.partialorder %v2940_v10, 8.507059e+37 }
 0x393   : > { %v2691_v9 = vpop.xlane.xlu0 %2690 }
 0x394   : > { %v2699_v57 = vmul.f32 %v2691_v9, %v7036_v34 }
 0x396   : > { %v2707_v19 = vadd.f32 1e-06, %v2699_v57 }
 0x398   : > { %3954 = vrsqrt.f32 %v2707_v19  ;;  %vm2784_vm13 = vweird.f32 %v2707_v19 }
 0x399   : > { %3956 = vrcp.f32 %v2923_v55 }
 0x39d   : > { %v2873_v42 = vpop.f32.mrf.mxu3 }
 0x39e   : > { %v3955_v4 = vpop.eup %3954  ;;  %v6465_v2 = vadd.f32 %v6436_v30, %v2873_v42 }
 0x39f   : > { %v2779_v31 = vmul.f32 %v3955_v4, %v2707_v19  ;;  %vm2785_vm11 = vweird.f32 %v3955_v4  ;;  %v3957_v28 = vpop.eup %3956  ;;  %v918_v19 = vld [vmem:[%s6261_s27 + $0x10] sm:$0xff] }
 0x3a0   : > { %vm2786_vm15 = vmor %vm2784_vm13, %vm2785_vm11  ;;  %v2932_v14 = vmul.f32 %v3957_v28, %v2923_v55  ;;  %vm2937_vm7 = vweird.f32 %v3957_v28  ;;  %v6470_v23 = vmul.f32 0.70710677, %v6465_v2  ;;  %3637 = vmatmul.msk.f32.vlgmr.msra.gmra.mxu2 %vm930_vm14, %v918_v19 }
 0x3a1   : > { %v2780_v18 = vmul.f32 %v3955_v4, %v2779_v31  ;;  %vm2938_vm1 = vmor %vm2936_vm12, %vm2937_vm7 }
 0x3a2   : > { %v2933_v35 = vsub.f32 1.0, %v2932_v14  ;;  %v6473_v25 = vand.u32 2147483647, %v6470_v23  ;;  %v3217_v14 = vld [vmem:[%s6901_s15 + $0x30] sm:$0xff] }
 0x3a3   : > { %v2781_v1 = vmul.f32 0.5, %v2780_v18 }
 0x3a4   : > { %v2934_v24 = vmul.f32 %v3957_v28, %v2933_v35  ;;  %v6462_v41 = vpop.f32.mrf.mxu1  ;;  %v2917_v57 = vmul.f32 0.3275911, %v6473_v25 }
 0x3a5   : > { %v2782_v52 = vsub.f32 1.5, %v2781_v1 }
 0x3a6   : > { %v2935_v32 = vadd.f32 %v3957_v28, %v2934_v24 }
 0x3a7   : > { %v2783_v7 = vmul.f32 %v3955_v4, %v2782_v52  ;;  %v919_v52 = vld [vmem:[%s6261_s27 + $0x18] sm:$0xff] }
 0x3a8   : > { %v2939_v62 = vsel %vm2938_vm1, %v3957_v28, %v2935_v32  ;;  %3638 = vmatmul.msk.f32.gmra.mxu2 %vm930_vm14, %v919_v52 }
 0x3a9   : > { %v2787_v33 = vsel %vm2786_vm15, %v3955_v4, %v2783_v7  ;;  %v6478_v4 = vadd.f32 1.0, %v2917_v57  ;;  %v3218_v7 = vld [vmem:[%s6901_s15 + $0x38] sm:$0xff] }
 0x3aa   : > { %v2795_v47 = vmul.f32 %v2787_v33, %v6342_v0  ;;  %v2943_v0 = vor.u32 1.1754944e-38, %v2942_v29  ;;  %3255 = vmatpush.msrb.mxu2 %v3218_v7  ;;  %v6548_v7 = vld [vmem:[%s6896_s10] ss:$0 sm:$0xff] }
 0x3ab   : > { %vm2966_vm11 = vweird.f32 %v6478_v4 }
 0x3ac   : > { %v2806_v20 = vmul.f32 %v6314_v60, %v2795_v47  ;;  %v2944_v8 = vsel %vm2941_vm3, %v2943_v0, %v2939_v62  ;;  %v6453_v60 = vadd.f32 %v6436_v30, %v2870_v56  ;;  %v6467_v22 = vpop.f32.mrf.mxu1  ;;  %3256 = vmatpush.msrb.mxu2 %v3217_v14 }
 0x3ae   : > { %v6448_v43 = vadd.f32 %v6319_v46, %v2806_v20  ;;  %v3051_v46 = vmul.f32 1.0614054, %v2944_v8  ;;  %v6456_v53 = vmul.f32 0.70710677, %v6453_v60 }
 0x3b0   : > { %3718 = vmatmul.msk.f32.gmra.mxu3 %vm1006_vm0, %v6448_v43  ;;  %v3719_v16 = vadd.f32 -1.4531521, %v3051_v46  ;;  %v6459_v63 = vand.u32 2147483647, %v6456_v53 }
 0x3b2   : > { %v3067_v49 = vmul.f32 %v3719_v16, %v2944_v8  ;;  %v2916_v51 = vmul.f32 0.3275911, %v6459_v63  ;;  %v3216_v16 = vld [vmem:[%s6901_s15 + $0x28] sm:$0xff] }
 0x3b3   : > { %3257 = vmatpush.msrb.mxu2 %v3216_v16  ;;  %v2891_v16 = vmul.f32 0.5, %v6439_v11  ;;  %v988_v11 = vadd.f32 %v6548_v7, %v6415_v58 }
 0x3b4   : > { %v3075_v13 = vadd.f32 1.4214138, %v3067_v49  ;;  %v2924_v40 = vadd.f32 1.0, %v2916_v51  ;;  %v6480_v31 = vpop.f32.mrf.mxu1  ;;  %v3215_v49 = vld [vmem:[%s6901_s15 + $0x20] sm:$0xff] }
 0x3b5   : > { %v920_v51 = vld [vmem:[%s6261_s27 + $0x20] sm:$0xff]  ;;  %3258 = vmatpush.msrb.mxu2 %v3215_v49 }
 0x3b6   : > { %v3083_v59 = vmul.f32 %v3075_v13, %v2944_v8  ;;  %3958 = vrcp.f32 %v2924_v40  ;;  %v2957_v55 = vand.u32 2147483648, %v2924_v40  ;;  %v2955_v28 = vand.u32 2147483647, %v2924_v40  ;;  %3639 = vmatmul.msk.f32.gmra.mxu2 %vm930_vm14, %v920_v51 }
 0x3b7   : > { %3960 = vpow2.f32 %v3139_v45  ;;  %vm2951_vm5 = vweird.f32 %v2924_v40  ;;  %3259 = vmatpush.msrb.mxu2 %v3214_v15  ;;  %v6583_v15 = vld [vmem:[%s6894_s8] ss:$0 sm:$0xff] }
 0x3b8   : > { %v3727_v54 = vadd.f32 -0.28449672, %v3083_v59  ;;  %3962 = vrcp.f32 %v6478_v4  ;;  %v2958_v32 = vor.u32 1.1754944e-38, %v2957_v55  ;;  %vm2956_vm9 = vcmp.eq.f32.partialorder %v2955_v28, 8.507059e+37 }
 0x3b9   : > { %v3125_v28 = vsub.f32 0.0, %v6473_v25 }
 0x3ba   : > { %v3099_v61 = vmul.f32 %v3727_v54, %v2944_v8 }
 0x3bb   : > { %v2876_v47 = vpop.f32.mrf.mxu3 }
 0x3bc   : > { %v3959_v12 = vpop.eup %3958  ;;  %v3107_v44 = vadd.f32 0.2548296, %v3099_v61  ;;  %v6494_v35 = vadd.f32 %v6436_v30, %v2876_v47  ;;  %v6501_v56 = vpop.f32.mrf.mxu1 }
 0x3bd   : > { %v2947_v9 = vmul.f32 %v3959_v12, %v2924_v40  ;;  %v3961_v1 = vpop.eup %3960  ;;  %vm2952_vm4 = vweird.f32 %v3959_v12  ;;  %v3124_v40 = vsub.f32 0.0, %v6459_v63 }
 0x3be   : > { %v3115_v5 = vmul.f32 %v3107_v44, %v2944_v8  ;;  %v6491_v20 = vpop.eup %3962  ;;  %vm2953_vm6 = vmor %vm2951_vm5, %vm2952_vm4  ;;  %v6497_v29 = vmul.f32 0.70710677, %v6494_v35  ;;  %vm3172_vm4 = vcmp.lt.f32.partialorder %v6456_v53, 0.0 }
 0x3bf   : > { %v2948_v27 = vsub.f32 1.0, %v2947_v9  ;;  %v2962_v62 = vmul.f32 %v6491_v20, %v6478_v4  ;;  %v3213_v9 = vld [vmem:[%s6901_s15 + $0x10] sm:$0xff]  ;;  %v3132_v19 = vmul.f32 %v3124_v40, %v6459_v63  ;;  %vm2967_vm8 = vweird.f32 %v6491_v20 }
 0x3c0   : > { %v3155_v33 = vmul.f32 %v3961_v1, %v3115_v5  ;;  %v6504_v8 = vand.u32 2147483647, %v6497_v29  ;;  %3260 = vmatpush.msrb.mxu2 %v3213_v9  ;;  %vm6562_vm13 = vmor %vm2966_vm11, %vm2967_vm8 }
 0x3c1   : > { %v2949_v18 = vmul.f32 %v3959_v12, %v2948_v27  ;;  %v2963_v42 = vsub.f32 1.0, %v2962_v62  ;;  %v3141_v37 = vmul.f32 1.442695, %v3132_v19 }
 0x3c2   : > { %v3163_v10 = vsub.f32 1.0, %v3155_v33  ;;  %v2918_v59 = vmul.f32 0.3275911, %v6504_v8  ;;  %v2972_v33 = vand.u32 2147483648, %v6478_v4 }
 0x3c3   : > { %v2950_v24 = vadd.f32 %v3959_v12, %v2949_v18  ;;  %v2964_v27 = vmul.f32 %v6491_v20, %v2963_v42 }
 0x3c4   : > { %v3179_v48 = vsub.f32 0.0, %v3163_v10  ;;  %v6522_v61 = vadd.f32 1.0, %v2918_v59  ;;  %v6541_v55 = vpop.f32.mrf.mxu1 }
 0x3c5   : > { %v2954_v0 = vsel %vm2953_vm6, %v3959_v12, %v2950_v24  ;;  %v2965_v24 = vadd.f32 %v6491_v20, %v2964_v27 }
 0x3c6   : > { %v6506_v46 = vsel %vm2956_vm9, %v2958_v32, %v2954_v0  ;;  %3964 = vrcp.f32 %v6522_v61  ;;  %v3187_v44 = vsel %vm3171_vm10, %v3179_v48, %v3163_v10  ;;  %v2970_v10 = vand.u32 2147483647, %v6478_v4 }
 0x3c7   : > { %v3052_v13 = vmul.f32 1.0614054, %v6506_v46  ;;  %v3195_v52 = vadd.f32 1.0, %v3187_v44  ;;  %3966 = vpow2.f32 %v3141_v37  ;;  %v2969_v59 = vsel %vm6562_vm13, %v6491_v20, %v2965_v24 }
 0x3c8   : > { %v2973_v48 = vor.u32 1.1754944e-38, %v2972_v33  ;;  %vm2971_vm15 = vcmp.eq.f32.partialorder %v2970_v10, 8.507059e+37  ;;  %vm2981_vm12 = vweird.f32 %v6522_v61  ;;  %v2987_v19 = vand.u32 2147483648, %v6522_v61 }
 0x3c9   : > { %v3720_v12 = vadd.f32 -1.4531521, %v3052_v13  ;;  %v3126_v44 = vsub.f32 0.0, %v6504_v8  ;;  %v6611_v24 = vadd.f32 %v6548_v7, %v6430_v17 }
 0x3cb   : > { %v3068_v57 = vmul.f32 %v3720_v12, %v6506_v46  ;;  %v3133_v12 = vmul.f32 %v3125_v28, %v6473_v25  ;;  %v3212_v25 = vld [vmem:[%s6901_s15 + $0x8] sm:$0xff] }
 0x3cc   : > { %v6554_v32 = vpop.eup %3964  ;;  %3261 = vmatpush.msrb.mxu2 %v3212_v25 }
 0x3cd   : > { %v3076_v18 = vadd.f32 1.4214138, %v3068_v57  ;;  %v2977_v51 = vmul.f32 %v6554_v32, %v6522_v61  ;;  %vm2982_vm7 = vweird.f32 %v6554_v32  ;;  %v6591_v57 = vsel %vm2971_vm15, %v2973_v48, %v2969_v59 }
 0x3ce   : > { %v3053_v33 = vmul.f32 1.0614054, %v6591_v57  ;;  %vm6617_vm1 = vmor %vm2981_vm12, %vm2982_vm7  ;;  %v3143_v49 = vmul.f32 1.442695, %v3133_v12  ;;  %v3134_v48 = vmul.f32 %v3126_v44, %v6504_v8  ;;  %vm3173_vm7 = vcmp.lt.f32.partialorder %v6470_v23, 0.0 }
 0x3cf   : > { %v3084_v63 = vmul.f32 %v3076_v18, %v6506_v46  ;;  %v2978_v42 = vsub.f32 1.0, %v2977_v51  ;;  %v2985_v18 = vand.u32 2147483647, %v6522_v61  ;;  %v2988_v61 = vor.u32 1.1754944e-38, %v2987_v19 }
 0x3d0   : > { %v3721_v51 = vadd.f32 -1.4531521, %v3053_v33  ;;  %vm3174_vm12 = vcmp.lt.f32.partialorder %v6497_v29, 0.0  ;;  %v2894_v29 = vmul.f32 0.5, %v6494_v35 }
 0x3d1   : > { %v3728_v0 = vadd.f32 -0.28449672, %v3084_v63  ;;  %v2979_v20 = vmul.f32 %v6554_v32, %v2978_v42  ;;  %vm2986_vm3 = vcmp.eq.f32.partialorder %v2985_v18, 8.507059e+37 }
 0x3d3   : > { %v3100_v4 = vmul.f32 %v3728_v0, %v6506_v46  ;;  %v2980_v28 = vadd.f32 %v6554_v32, %v2979_v20 }
 0x3d5   : > { %v3108_v58 = vadd.f32 0.2548296, %v3100_v4  ;;  %v2984_v17 = vsel %vm6617_vm1, %v6554_v32, %v2980_v28  ;;  %v2892_v4 = vmul.f32 0.5, %v6453_v60  ;;  %v3069_v32 = vmul.f32 %v3721_v51, %v6591_v57 }
 0x3d7   : > { %v3116_v63 = vmul.f32 %v3108_v58, %v6506_v46  ;;  %v3077_v44 = vadd.f32 1.4214138, %v3069_v32 }
 0x3d9   : > { %v3085_v33 = vmul.f32 %v3077_v44, %v6591_v57 }
 0x3da   : > { %v2879_v54 = vpop.f32.mrf.mxu3 }
 0x3db   : > { %v6525_v45 = vadd.f32 %v6436_v30, %v2879_v54  ;;  %v3203_v54 = vmul.f32 %v3195_v52, %v2891_v16  ;;  %v3211_v52 = vld [vmem:[%s6901_s15] sm:$0xff] }
 0x3dc   : > { %3262 = vmatpush.msrb.mxu2 %v3211_v52 }
 0x3dd   : > { %v6536_v5 = vmul.f32 0.70710677, %v6525_v45  ;;  %3735 = vmatmul.msk.f32.vlgmr.msrb.gmra.mxu2 %vm797_vm2, %v3203_v54 }
 0x3df   : > { %v6539_v1 = vand.u32 2147483647, %v6536_v5 }
 0x3e1   : > { %v2919_v47 = vmul.f32 0.3275911, %v6539_v1  ;;  %v3127_v32 = vsub.f32 0.0, %v6539_v1 }
 0x3e3   : > { %v6568_v13 = vadd.f32 1.0, %v2919_v47  ;;  %v3967_v47 = vpop.eup %3966 }
 0x3e5   : > { %3968 = vrcp.f32 %v6568_v13  ;;  %v3000_v42 = vand.u32 2147483647, %v6568_v13  ;;  %v3002_v60 = vand.u32 2147483648, %v6568_v13  ;;  %vm2996_vm6 = vweird.f32 %v6568_v13 }
 0x3e7   : > { %vm6642_vm9 = vcmp.eq.f32.partialorder %v3000_v42, 8.507059e+37 }
 0x3eb   : > { %v3969_v16 = vpop.eup %3968 }
 0x3ec   : > { %v2992_v59 = vmul.f32 %v3969_v16, %v6568_v13  ;;  %vm2997_vm5 = vweird.f32 %v3969_v16 }
 0x3ed   : > { %vm2998_vm10 = vmor %vm2996_vm6, %vm2997_vm5  ;;  %vm3175_vm6 = vcmp.lt.f32.partialorder %v6536_v5, 0.0 }
 0x3ee   : > { %v2993_v20 = vsub.f32 1.0, %v2992_v59 }
 0x3ef   : > { %v907_v37 = vpop.f32.mrf.mxu1 }
 0x3f0   : > { %v908_v0 = vadd.f32 %v6583_v15, %v907_v37  ;;  %v2994_v19 = vmul.f32 %v3969_v16, %v2993_v20 }
 0x3f2   : > { %v6633_v12 = vadd.f32 %v988_v11, %v908_v0  ;;  %v3145_v11 = vmul.f32 1.442695, %v3134_v48  ;;  %v2995_v28 = vadd.f32 %v3969_v16, %v2994_v19 }
 0x3f7   : > { %v910_v25 = vpop.f32.mrf.mxu1 }
 0x3f8   : > { %v911_v53 = vadd.f32 %v6583_v15, %v910_v25 }
 0x3fa   : > { %v2882_v14 = vpop.f32.mrf.mxu3 }
 0x3fb   : > { %v6559_v62 = vadd.f32 %v6436_v30, %v2882_v14  ;;  %v991_v14 = vadd.f32 %v6548_v7, %v6424_v3  ;;  %v3156_v3 = vmul.f32 %v3967_v47, %v3116_v63  ;;  %v3003_v47 = vor.u32 1.1754944e-38, %v3002_v60 }
 0x3fd   : > { %v6571_v40 = vmul.f32 0.70710677, %v6559_v62  ;;  %v3164_v58 = vsub.f32 1.0, %v3156_v3  ;;  %v6653_v51 = vadd.f32 %v991_v14, %v911_v53 }
 0x3ff   : > { %v6587_v9 = vand.u32 2147483647, %v6571_v40  ;;  %v3180_v8 = vsub.f32 0.0, %v3164_v58 }
 0x401   : > { %v2920_v27 = vmul.f32 0.3275911, %v6587_v9  ;;  %v3188_v63 = vsel %vm3172_vm4, %v3180_v8, %v3164_v58 }
 0x403   : > { %v6621_v46 = vadd.f32 1.0, %v2920_v27  ;;  %v6636_v27 = vsel %vm2986_vm3, %v2988_v61, %v2984_v17  ;;  %v3729_v17 = vadd.f32 -0.28449672, %v3085_v33  ;;  %v2999_v61 = vsel %vm2998_vm10, %v3969_v16, %v2995_v28 }
 0x404   : > { %v3054_v54 = vmul.f32 1.0614054, %v6636_v27  ;;  %v6657_v58 = vsel %vm6642_vm9, %v3003_v47, %v2999_v61  ;;  %v3135_v33 = vmul.f32 %v3127_v32, %v6539_v1  ;;  %vm3176_vm9 = vcmp.lt.f32.partialorder %v6571_v40, 0.0 }
 0x405   : > { %3970 = vrcp.f32 %v6621_v46  ;;  %v3055_v14 = vmul.f32 1.0614054, %v6657_v58  ;;  %v3017_v16 = vand.u32 2147483648, %v6621_v46  ;;  %v3015_v8 = vand.u32 2147483647, %v6621_v46 }
 0x406   : > { %3972 = vpow2.f32 %v3143_v49  ;;  %v3722_v18 = vadd.f32 -1.4531521, %v3054_v54  ;;  %v3196_v49 = vadd.f32 1.0, %v3188_v63  ;;  %v3101_v54 = vmul.f32 %v3729_v17, %v6591_v57 }
 0x407   : > { %3974 = vpow2.f32 %v3145_v11  ;;  %vm3011_vm11 = vweird.f32 %v6621_v46  ;;  %v3723_v53 = vadd.f32 -1.4531521, %v3055_v14  ;;  %vm3016_vm15 = vcmp.eq.f32.partialorder %v3015_v8, 8.507059e+37 }
 0x408   : > { %v3070_v13 = vmul.f32 %v3722_v18, %v6636_v27  ;;  %v3204_v42 = vmul.f32 %v3196_v49, %v2892_v4  ;;  %v3109_v25 = vadd.f32 0.2548296, %v3101_v54  ;;  %v913_v18 = vpop.f32.mrf.mxu1  ;;  %v3147_v32 = vmul.f32 1.442695, %v3135_v33 }
 0x409   : > { %v914_v47 = vadd.f32 %v6583_v15, %v913_v18  ;;  %v3071_v49 = vmul.f32 %v3723_v53, %v6657_v58 }
 0x40a   : > { %v3078_v20 = vadd.f32 1.4214138, %v3070_v13  ;;  %3736 = vmatmul.msk.f32.gmra.mxu2 %vm797_vm2, %v3204_v42  ;;  %v3117_v11 = vmul.f32 %v3109_v25, %v6591_v57  ;;  %v3128_v57 = vsub.f32 0.0, %v6587_v9 }
 0x40b   : > { %v3971_v37 = vpop.eup %3970  ;;  %v6680_v17 = vadd.f32 %v6611_v24, %v914_v47 }
 0x40c   : > { %v3007_v10 = vmul.f32 %v3971_v37, %v6621_v46  ;;  %v2885_v0 = vpop.f32.mrf.mxu3  ;;  %v3973_v59 = vpop.eup %3972  ;;  %vm3012_vm8 = vweird.f32 %v3971_v37  ;;  %v3086_v4 = vmul.f32 %v3078_v20, %v6636_v27  ;;  %v3136_v8 = vmul.f32 %v3128_v57, %v6587_v9 }
 0x40d   : > { %v6651_v3 = vadd.f32 %v6436_v30, %v2885_v0  ;;  %vm3013_vm13 = vmor %vm3011_vm11, %vm3012_vm8  ;;  %v3157_v61 = vmul.f32 %v3973_v59, %v3117_v11  ;;  %v3975_v20 = vpop.eup %3974 }
 0x40e   : > { %v3008_v48 = vsub.f32 1.0, %v3007_v10  ;;  %v3730_v52 = vadd.f32 -0.28449672, %v3086_v4  ;;  %v3018_v10 = vor.u32 1.1754944e-38, %v3017_v16 }
 0x40f   : > { %v6661_v60 = vmul.f32 0.70710677, %v6651_v3  ;;  %v3165_v54 = vsub.f32 1.0, %v3157_v61 }
 0x410   : > { %v3009_v19 = vmul.f32 %v3971_v37, %v3008_v48  ;;  %v3102_v0 = vmul.f32 %v3730_v52, %v6636_v27  ;;  %v3079_v48 = vadd.f32 1.4214138, %v3071_v49 }
 0x411   : > { %v6670_v44 = vand.u32 2147483647, %v6661_v60  ;;  %v3181_v24 = vsub.f32 0.0, %v3165_v54  ;;  %vm3177_vm10 = vcmp.lt.f32.partialorder %v6661_v60, 0.0  ;;  %v899_v60 = vadd.f32 %v6583_v15, %v6480_v31 }
 0x412   : > { %v3010_v63 = vadd.f32 %v3971_v37, %v3009_v19  ;;  %v3110_v1 = vadd.f32 0.2548296, %v3102_v0  ;;  %v3149_v0 = vmul.f32 1.442695, %v3136_v8 }
 0x413   : > { %v2921_v28 = vmul.f32 0.3275911, %v6670_v44  ;;  %v3189_v25 = vsel %vm3173_vm7, %v3181_v24, %v3165_v54 }
 0x414   : > { %v3014_v13 = vsel %vm3013_vm13, %v3971_v37, %v3010_v63  ;;  %v3118_v14 = vmul.f32 %v3110_v1, %v6636_v27  ;;  %v3087_v37 = vmul.f32 %v3079_v48, %v6657_v58  ;;  %v2893_v27 = vmul.f32 0.5, %v6465_v2 }
 0x415   : > { %v2929_v46 = vadd.f32 1.0, %v2921_v28  ;;  %v6682_v42 = vsel %vm3016_vm15, %v3018_v10, %v3014_v13  ;;  %v3197_v63 = vadd.f32 1.0, %v3189_v25 }
 0x416   : > { %v3056_v19 = vmul.f32 1.0614054, %v6682_v42  ;;  %v3158_v16 = vmul.f32 %v3975_v20, %v3118_v14  ;;  %v3731_v59 = vadd.f32 -0.28449672, %v3087_v37 }
 0x417   : > { %3976 = vrcp.f32 %v2929_v46  ;;  %v3205_v23 = vmul.f32 %v3197_v63, %v2893_v27  ;;  %v3032_v1 = vand.u32 2147483648, %v2929_v46  ;;  %vm3026_vm3 = vweird.f32 %v2929_v46 }
 0x418   : > { %3978 = vpow2.f32 %v3147_v32  ;;  %v3724_v4 = vadd.f32 -1.4531521, %v3056_v19  ;;  %v3166_v18 = vsub.f32 1.0, %v3158_v16  ;;  %v3103_v52 = vmul.f32 %v3731_v59, %v6657_v58 }
 0x419   : > { %3737 = vmatmul.msk.f32.gmra.mxu2 %vm797_vm2, %v3205_v23  ;;  %v3030_v32 = vand.u32 2147483647, %v2929_v46  ;;  %3980 = vpow2.f32 %v3149_v0 }
 0x41a   : > { %v3072_v33 = vmul.f32 %v3724_v4, %v6682_v42  ;;  %v3182_v47 = vsub.f32 0.0, %v3166_v18  ;;  %v3111_v11 = vadd.f32 0.2548296, %v3103_v52  ;;  %v3129_v4 = vsub.f32 0.0, %v6670_v44 }
 0x41b   : > { %vm3031_vm5 = vcmp.eq.f32.partialorder %v3030_v32, 8.507059e+37 }
 0x41c   : > { %v3080_v10 = vadd.f32 1.4214138, %v3072_v33  ;;  %v3190_v9 = vsel %vm3174_vm12, %v3182_v47, %v3166_v18  ;;  %v3119_v13 = vmul.f32 %v3111_v11, %v6657_v58  ;;  %v3033_v58 = vor.u32 1.1754944e-38, %v3032_v1 }
 0x41d   : > { %v3977_v53 = vpop.eup %3976  ;;  %v3198_v2 = vadd.f32 1.0, %v3190_v9  ;;  %v2895_v33 = vmul.f32 0.5, %v6525_v45 }
 0x41e   : > { %v3022_v28 = vmul.f32 %v3977_v53, %v2929_v46  ;;  %v3979_v61 = vpop.eup %3978  ;;  %v3088_v48 = vmul.f32 %v3080_v10, %v6682_v42  ;;  %vm3027_vm1 = vweird.f32 %v3977_v53 }
 0x41f   : > { %v3159_v57 = vmul.f32 %v3979_v61, %v3119_v13  ;;  %vm3028_vm4 = vmor %vm3026_vm3, %vm3027_vm1  ;;  %v3206_v19 = vmul.f32 %v3198_v2, %v2894_v29  ;;  %v3981_v27 = vpop.eup %3980  ;;  %v2896_v61 = vmul.f32 0.5, %v6559_v62  ;;  %v2897_v29 = vmul.f32 0.5, %v6651_v3 }
 0x420   : > { %v3023_v49 = vsub.f32 1.0, %v3022_v28  ;;  %v3732_v54 = vadd.f32 -0.28449672, %v3088_v48 }
 0x421   : > { %v3167_v14 = vsub.f32 1.0, %v3159_v57  ;;  %3738 = vmatmul.msk.f32.gmra.mxu2 %vm797_vm2, %v3206_v19 }
 0x422   : > { %v3024_v20 = vmul.f32 %v3977_v53, %v3023_v49  ;;  %v3104_v24 = vmul.f32 %v3732_v54, %v6682_v42 }
 0x423   : > { %v3183_v16 = vsub.f32 0.0, %v3167_v14 }
 0x424   : > { %v3025_v37 = vadd.f32 %v3977_v53, %v3024_v20  ;;  %v3112_v8 = vadd.f32 0.2548296, %v3104_v24 }
 0x425   : > { %v3191_v35 = vsel %vm3175_vm6, %v3183_v16, %v3167_v14 }
 0x426   : > { %v3029_v59 = vsel %vm3028_vm4, %v3977_v53, %v3025_v37  ;;  %v3199_v46 = vadd.f32 1.0, %v3191_v35  ;;  %v3120_v52 = vmul.f32 %v3112_v8, %v6682_v42  ;;  %v3137_v53 = vmul.f32 %v3129_v4, %v6670_v44  ;;  %v978_v8 = vpop.f32.mrf.mxu2 }
 0x427   : > { %v3034_v25 = vsel %vm3031_vm5, %v3033_v58, %v3029_v59  ;;  %v979_v3 = vadd.f32 %v6548_v7, %v978_v8 }
 0x428   : > { %v3057_v18 = vmul.f32 1.0614054, %v3034_v25  ;;  %v3160_v28 = vmul.f32 %v3981_v27, %v3120_v52  ;;  %v3207_v5 = vmul.f32 %v3199_v46, %v2895_v33  ;;  %v3151_v10 = vmul.f32 1.442695, %v3137_v53 }
 0x429   : > { %v6716_v35 = vadd.f32 %v979_v3, %v899_v60  ;;  %v902_v52 = vadd.f32 %v6583_v15, %v6501_v56 }
 0x42a   : > { %v3725_v63 = vadd.f32 -1.4531521, %v3057_v18  ;;  %v3168_v11 = vsub.f32 1.0, %v3160_v28  ;;  %3739 = vmatmul.msk.f32.gmra.mxu2 %vm797_vm2, %v3207_v5  ;;  %3982 = vpow2.f32 %v3151_v10  ;;  %v905_v10 = vadd.f32 %v6583_v15, %v6541_v55  ;;  %v3791_v55 = vld [vmem:[%s6902_s16] ss:$0 sm:$0xff] }
 0x42c   : > { %v3073_v47 = vmul.f32 %v3725_v63, %v3034_v25  ;;  %v3184_v0 = vsub.f32 0.0, %v3168_v11 }
 0x42e   : > { %v3081_v23 = vadd.f32 1.4214138, %v3073_v47  ;;  %v3192_v9 = vsel %vm3176_vm9, %v3184_v0, %v3168_v11  ;;  %v981_v27 = vpop.f32.mrf.mxu2 }
 0x42f   : > { %v3200_v42 = vadd.f32 1.0, %v3192_v9  ;;  %v982_v31 = vadd.f32 %v6548_v7, %v981_v27 }
 0x430   : > { %v3089_v49 = vmul.f32 %v3081_v23, %v3034_v25  ;;  %v3983_v48 = vpop.eup %3982 }
 0x431   : > { %v3208_v44 = vmul.f32 %v3200_v42, %v2896_v61  ;;  %v6721_v47 = vadd.f32 %v982_v31, %v902_v52 }
 0x432   : > { %v3733_v13 = vadd.f32 -0.28449672, %v3089_v49 }
 0x433   : > { %3740 = vmatmul.msk.f32.gmra.mxu2 %vm797_vm2, %v3208_v44  ;;  %v2888_v14 = vpop.f32.mrf.mxu3 }
 0x434   : > { %v3105_v45 = vmul.f32 %v3733_v13, %v3034_v25  ;;  %v2889_v62 = vadd.f32 %v6436_v30, %v2888_v14 }
 0x436   : > { %v3113_v1 = vadd.f32 0.2548296, %v3105_v45  ;;  %v2906_v58 = vmul.f32 0.70710677, %v2889_v62 }
 0x438   : > { %v3121_v2 = vmul.f32 %v3113_v1, %v3034_v25  ;;  %v2914_v19 = vand.u32 2147483647, %v2906_v58  ;;  %vm3178_vm7 = vcmp.lt.f32.partialorder %v2906_v58, 0.0 }
 0x439   : > { %v984_v56 = vpop.f32.mrf.mxu2 }
 0x43a   : > { %v3161_v20 = vmul.f32 %v3983_v48, %v3121_v2  ;;  %v2922_v24 = vmul.f32 0.3275911, %v2914_v19  ;;  %v3130_v28 = vsub.f32 0.0, %v2914_v19  ;;  %v985_v9 = vadd.f32 %v6548_v7, %v984_v56 }
 0x43c   : > { %v3169_v32 = vsub.f32 1.0, %v3161_v20  ;;  %v2930_v16 = vadd.f32 1.0, %v2922_v24  ;;  %v3138_v0 = vmul.f32 %v3130_v28, %v2914_v19  ;;  %v6726_v61 = vadd.f32 %v985_v9, %v905_v10  ;;  %v916_v10 = vld [vmem:[%s6261_s27] sm:$0xff] }
 0x43d   : > { %3635 = vmatmul.msk.f32.vlgmr.msrb.gmra.mxu0 %vm930_vm14, %v916_v10 }
 0x43e   : > { %v3185_v57 = vsub.f32 0.0, %v3169_v32  ;;  %3984 = vrcp.f32 %v2930_v16  ;;  %v3047_v30 = vand.u32 2147483648, %v2930_v16  ;;  %v3045_v46 = vand.u32 2147483647, %v2930_v16 }
 0x43f   : > { %vm3041_vm11 = vweird.f32 %v2930_v16  ;;  %v3153_v13 = vmul.f32 1.442695, %v3138_v0 }
 0x440   : > { %v3193_v40 = vsel %vm3177_vm10, %v3185_v57, %v3169_v32  ;;  %v3048_v33 = vor.u32 1.1754944e-38, %v3047_v30  ;;  %vm3046_vm15 = vcmp.eq.f32.partialorder %v3045_v46, 8.507059e+37 }
 0x441   : > { %v3201_v54 = vadd.f32 1.0, %v3193_v40  ;;  %3986 = vpow2.f32 %v3153_v13 }
 0x443   : > { %v3209_v37 = vmul.f32 %v3201_v54, %v2897_v29 }
 0x444   : > { %v3985_v59 = vpop.eup %3984 }
 0x445   : > { %3741 = vmatmul.msk.f32.gmra.mxu2 %vm797_vm2, %v3209_v37  ;;  %v3037_v4 = vmul.f32 %v3985_v59, %v2930_v16  ;;  %vm3042_vm8 = vweird.f32 %v3985_v59  ;;  %v2898_v37 = vmul.f32 0.5, %v2889_v62 }
 0x446   : > { %vm3043_vm13 = vmor %vm3041_vm11, %vm3042_vm8 }
 0x447   : > { %v3038_v25 = vsub.f32 1.0, %v3037_v4  ;;  %v3987_v20 = vpop.eup %3986 }
 0x449   : > { %v3039_v18 = vmul.f32 %v3985_v59, %v3038_v25 }
 0x44b   : > { %v3040_v63 = vadd.f32 %v3985_v59, %v3039_v18 }
 0x44d   : > { %v3044_v53 = vsel %vm3043_vm13, %v3985_v59, %v3040_v63 }
 0x44e   : > { %v3049_v5 = vsel %vm3046_vm15, %v3048_v33, %v3044_v53 }
 0x44f   : > { %v3058_v11 = vmul.f32 1.0614054, %v3049_v5 }
 0x451   : > { %v3726_v23 = vadd.f32 -1.4531521, %v3058_v11 }
 0x453   : > { %v3074_v49 = vmul.f32 %v3726_v23, %v3049_v5 }
 0x455   : > { %v3082_v42 = vadd.f32 1.4214138, %v3074_v49 }
 0x457   : > { %v3090_v45 = vmul.f32 %v3082_v42, %v3049_v5 }
 0x459   : > { %v3734_v44 = vadd.f32 -0.28449672, %v3090_v45 }
 0x45b   : > { %v3106_v1 = vmul.f32 %v3734_v44, %v3049_v5 }
 0x45d   : > { %v3114_v2 = vadd.f32 0.2548296, %v3106_v1 }
 0x45f   : > { %v3122_v48 = vmul.f32 %v3114_v2, %v3049_v5 }
 0x460   : > { %v3264_v29 = vpop.f32.mrf.mxu2 }
 0x461   : > { %v3162_v32 = vmul.f32 %v3987_v20, %v3122_v48  ;;  %v3265_v54 = vadd.f32 %v3791_v55, %v3264_v29 }
 0x463   : > { %v3170_v57 = vsub.f32 1.0, %v3162_v32  ;;  %v3288_v24 = vadd.f32 %v3265_v54, %v6326_v38 }
 0x465   : > { %v3186_v40 = vsub.f32 0.0, %v3170_v57  ;;  %v3298_v59 = vsel %vm1006_vm0, %v3288_v24, 0.0 }
 0x466   : > { %3299 = vadd.xlane.f32.xlu1 %v3298_v59 }
 0x467   : > { %v3194_v14 = vsel %vm3178_vm7, %v3186_v40, %v3170_v57 }
 0x468   : > { %v3202_v19 = vadd.f32 1.0, %v3194_v14 }
 0x46a   : > { %v3210_v16 = vmul.f32 %v3202_v19, %v2898_v37 }
 0x46c   : > { %3742 = vmatmul.msk.f32.gmra.mxu2 %vm797_vm2, %v3210_v16 }
 0x48d   : > { %v3267_v4 = vpop.f32.mrf.mxu2 }
 0x48e   : > { %v3268_v60 = vadd.f32 %v3791_v55, %v3267_v4 }
 0x490   : > { %v3289_v8 = vadd.f32 %v3268_v60, %v6336_v36 }
 0x492   : > { %v3301_v25 = vsel %vm1006_vm0, %v3289_v8, 0.0 }
 0x493   : > { %3302 = vadd.xlane.f32.xlu2 %v3301_v25 }
 0x49c   : > { %v3270_v58 = vpop.f32.mrf.mxu2 }
 0x49d   : > { %v3271_v3 = vadd.f32 %v3791_v55, %v3270_v58 }
 0x49f   : > { %v3290_v62 = vadd.f32 %v3271_v3, %v6374_v21 }
 0x4a1   : > { %v3304_v18 = vsel %vm1006_vm0, %v3290_v62, 0.0 }
 0x4a2   : > { %3305 = vadd.xlane.f32.xlu0 %v3304_v18 }
 0x4a4   : > { %v3273_v38 = vpop.f32.mrf.mxu2 }
 0x4a5   : > { %v3274_v30 = vadd.f32 %v3791_v55, %v3273_v38 }
 0x4a7   : > { %v3291_v46 = vadd.f32 %v3274_v30, %v6389_v6 }
 0x4a9   : > { %v3307_v52 = vsel %vm1006_vm0, %v3291_v46, 0.0 }
 0x4aa   : > { %3308 = vadd.xlane.f32.xlu1 %v3307_v52 }
 0x4ad   : > { %v3276_v27 = vpop.f32.mrf.mxu2 }
 0x4ae   : > { %v3277_v36 = vadd.f32 %v3791_v55, %v3276_v27 }
 0x4b0   : > { %v3292_v63 = vadd.f32 %v3277_v36, %v6397_v50  ;;  %v917_v50 = vld [vmem:[%s6261_s27 + $0x8] sm:$0xff] }
 0x4b1   : > { %3636 = vmatmul.msk.f32.vlgmr.msrb.gmra.mxu1 %vm930_vm14, %v917_v50 }
 0x4b2   : > { %v3310_v33 = vsel %vm1006_vm0, %v3292_v63, 0.0 }
 0x4b3   : > { %3311 = vadd.xlane.f32.xlu2 %v3310_v33 }
 0x4b6   : > { %v3279_v21 = vpop.f32.mrf.mxu2 }
 0x4b7   : > { %v3280_v31 = vadd.f32 %v3791_v55, %v3279_v21 }
 0x4b9   : > { %v3293_v53 = vadd.f32 %v3280_v31, %v6407_v39 }
 0x4bb   : > { %v3313_v28 = vsel %vm1006_vm0, %v3293_v53, 0.0 }
 0x4bc   : > { %3314 = vadd.xlane.f32.xlu0 %v3313_v28 }
 0x4c8   : > { %v3282_v6 = vpop.f32.mrf.mxu2 }
 0x4c9   : > { %v3283_v5 = vadd.f32 %v3791_v55, %v3282_v6 }
 0x4cb   : > { %v3294_v11 = vadd.f32 %v3283_v5, %v6422_v26 }
 0x4cd   : > { %v3316_v23 = vsel %vm1006_vm0, %v3294_v11, 0.0 }
 0x4ce   : > { %3317 = vadd.xlane.f32.xlu1 %v3316_v23 }
 0x4d9   : > { %v3300_v0 = vpop.xlane.xlu1 %3299 }
 0x4da   : > { %v3322_v56 = vmul.f32 %v3300_v0, %v7036_v34 }
 0x4dc   : > { %v6751_v39 = vsub.f32 %v3288_v24, %v3322_v56 }
 0x4de   : > { %v3338_v49 = vmul.f32 %v6751_v39, %v6751_v39 }
 0x4e0   : > { %v3346_v9 = vsel %vm1006_vm0, %v3338_v49, 0.0 }
 0x4e1   : > { %3347 = vadd.xlane.f32.xlu0 %v3346_v9  ;;  %v6805_v9 = vld [vmem:[%s6903_s17] ss:$0 sm:$0xff] }
 0x4ef   : > { %v3285_v44 = vpop.f32.mrf.mxu2 }
 0x4f0   : > { %v3286_v1 = vadd.f32 %v3791_v55, %v3285_v44 }
 0x4f2   : > { %v3295_v48 = vadd.f32 %v3286_v1, %v6448_v43 }
 0x4f4   : > { %v3319_v20 = vsel %vm1006_vm0, %v3295_v48, 0.0 }
 0x4f5   : > { %3320 = vadd.xlane.f32.xlu2 %v3319_v20 }
 0x506   : > { %v3303_v26 = vpop.xlane.xlu2 %3302 }
 0x507   : > { %v3323_v42 = vmul.f32 %v3303_v26, %v7036_v34 }
 0x509   : > { %v6757_v13 = vsub.f32 %v3289_v8, %v3323_v42 }
 0x50b   : > { %v3339_v45 = vmul.f32 %v6757_v13, %v6757_v13 }
 0x50d   : > { %v3349_v2 = vsel %vm1006_vm0, %v3339_v45, 0.0  ;;  %v893_v45 = vadd.f32 %v6583_v15, %v6462_v41 }
 0x50e   : > { %3350 = vadd.xlane.f32.xlu1 %v3349_v2  ;;  %v6813_v2 = vld [vmem:[%s6904_s18] ss:$0 sm:$0xff] }
 0x515   : > { %v3306_v32 = vpop.xlane.xlu0 %3305 }
 0x516   : > { %v3324_v57 = vmul.f32 %v3306_v32, %v7036_v34 }
 0x518   : > { %v6765_v40 = vsub.f32 %v3290_v62, %v3324_v57 }
 0x51a   : > { %v3340_v29 = vmul.f32 %v6765_v40, %v6765_v40 }
 0x51c   : > { %v3352_v54 = vsel %vm1006_vm0, %v3340_v29, 0.0 }
 0x51d   : > { %v3309_v14 = vpop.xlane.xlu1 %3308  ;;  %3353 = vadd.xlane.f32.xlu2 %v3352_v54 }
 0x51e   : > { %v3325_v55 = vmul.f32 %v3309_v14, %v7036_v34 }
 0x520   : > { %v6771_v37 = vsub.f32 %v3291_v46, %v3325_v55 }
 0x522   : > { %v3341_v43 = vmul.f32 %v6771_v37, %v6771_v37 }
 0x524   : > { %v3355_v19 = vsel %vm1006_vm0, %v3341_v43, 0.0 }
 0x525   : > { %3356 = vadd.xlane.f32.xlu0 %v3355_v19 }
 0x526   : > { %v3312_v24 = vpop.xlane.xlu2 %3311 }
 0x527   : > { %v3326_v16 = vmul.f32 %v3312_v24, %v7036_v34 }
 0x529   : > { %v6777_v59 = vsub.f32 %v3292_v63, %v3326_v16  ;;  %v896_v16 = vadd.f32 %v6583_v15, %v6467_v22 }
 0x52b   : > { %v3342_v4 = vmul.f32 %v6777_v59, %v6777_v59 }
 0x52d   : > { %v3358_v60 = vsel %vm1006_vm0, %v3342_v4, 0.0 }
 0x52e   : > { %3359 = vadd.xlane.f32.xlu1 %v3358_v60  ;;  %v975_v4 = vpop.f32.mrf.mxu1 }
 0x52f   : > { %v3315_v8 = vpop.xlane.xlu0 %3314 }
 0x530   : > { %v3327_v25 = vmul.f32 %v3315_v8, %v7036_v34  ;;  %v976_v8 = vadd.f32 %v6548_v7, %v975_v4 }
 0x532   : > { %v6783_v58 = vsub.f32 %v3293_v53, %v3327_v25 }
 0x534   : > { %v3343_v3 = vmul.f32 %v6783_v58, %v6783_v58 }
 0x536   : > { %v3361_v62 = vsel %vm1006_vm0, %v3343_v3, 0.0 }
 0x537   : > { %3362 = vadd.xlane.f32.xlu2 %v3361_v62 }
 0x541   : > { %v3318_v18 = vpop.xlane.xlu1 %3317 }
 0x542   : > { %v3328_v38 = vmul.f32 %v3318_v18, %v7036_v34  ;;  %v3497_v18 = vadd.f32 %v976_v8, %v896_v16 }
 0x544   : > { %v6789_v30 = vsub.f32 %v3294_v11, %v3328_v38 }
 0x546   : > { %v3344_v46 = vmul.f32 %v6789_v30, %v6789_v30 }
 0x548   : > { %v3364_v52 = vsel %vm1006_vm0, %v3344_v46, 0.0 }
 0x549   : > { %3365 = vadd.xlane.f32.xlu0 %v3364_v52 }
 0x554   : > { %v3348_v27 = vpop.xlane.xlu0 %3347 }
 0x555   : > { %v3370_v36 = vmul.f32 %v3348_v27, %v7036_v34 }
 0x557   : > { %v3378_v63 = vadd.f32 1e-06, %v3370_v36 }
 0x559   : > { %3988 = vrsqrt.f32 %v3378_v63  ;;  %vm3392_vm14 = vweird.f32 %v3378_v63 }
 0x55f   : > { %v3989_v33 = vpop.eup %3988 }
 0x560   : > { %v3387_v31 = vmul.f32 %v3989_v33, %v3378_v63  ;;  %vm3393_vm2 = vweird.f32 %v3989_v33 }
 0x561   : > { %vm3394_vm12 = vmor %vm3392_vm14, %vm3393_vm2 }
 0x562   : > { %v3388_v28 = vmul.f32 %v3989_v33, %v3387_v31 }
 0x564   : > { %v3389_v23 = vmul.f32 0.5, %v3388_v28 }
 0x566   : > { %v3390_v50 = vsub.f32 1.5, %v3389_v23 }
 0x568   : > { %v3321_v5 = vpop.xlane.xlu2 %3320  ;;  %v3391_v56 = vmul.f32 %v3989_v33, %v3390_v50 }
 0x569   : > { %v3329_v11 = vmul.f32 %v3321_v5, %v7036_v34 }
 0x56a   : > { %v3395_v42 = vsel %vm3394_vm12, %v3989_v33, %v3391_v56 }
 0x56b   : > { %v6797_v10 = vsub.f32 %v3295_v48, %v3329_v11  ;;  %v3466_v44 = vmul.f32 %v3395_v42, %v6751_v39  ;;  %v972_v48 = vpop.f32.mrf.mxu0 }
 0x56c   : > { %v973_v32 = vadd.f32 %v6548_v7, %v972_v48 }
 0x56d   : > { %v3345_v0 = vmul.f32 %v6797_v10, %v6797_v10  ;;  %v3477_v57 = vmul.f32 %v6805_v9, %v3466_v44 }
 0x56e   : > { %v3496_v14 = vadd.f32 %v973_v32, %v893_v45 }
 0x56f   : > { %v3367_v49 = vsel %vm1006_vm0, %v3345_v0, 0.0  ;;  %v3488_v54 = vadd.f32 %v6813_v2, %v3477_v57 }
 0x570   : > { %3368 = vadd.xlane.f32.xlu1 %v3367_v49 }
 0x571   : > { %v3504_v43 = vadd.f32 %v3496_v14, %v3488_v54 }
 0x573   : > { %3512 = vst.msk [vmem:[%s6822_s5] sm:$0xff] %vm1006_vm0, %v3504_v43 }
 0x581   : > { %v3351_v21 = vpop.xlane.xlu1 %3350 }
 0x582   : > { %v3371_v53 = vmul.f32 %v3351_v21, %v7036_v34 }
 0x584   : > { %v3379_v6 = vadd.f32 1e-06, %v3371_v53 }
 0x586   : > { %3990 = vrsqrt.f32 %v3379_v6  ;;  %vm3402_vm3 = vweird.f32 %v3379_v6 }
 0x58c   : > { %v3991_v26 = vpop.eup %3990 }
 0x58d   : > { %v3397_v1 = vmul.f32 %v3991_v26, %v3379_v6  ;;  %vm3403_vm1 = vweird.f32 %v3991_v26 }
 0x58e   : > { %vm3404_vm4 = vmor %vm3402_vm3, %vm3403_vm1 }
 0x58f   : > { %v3398_v20 = vmul.f32 %v3991_v26, %v3397_v1 }
 0x590   : > { %v3354_v41 = vpop.xlane.xlu2 %3353 }
 0x591   : > { %v3399_v29 = vmul.f32 0.5, %v3398_v20  ;;  %v3372_v55 = vmul.f32 %v3354_v41, %v7036_v34 }
 0x593   : > { %v3400_v39 = vsub.f32 1.5, %v3399_v29  ;;  %v3380_v24 = vadd.f32 1e-06, %v3372_v55 }
 0x595   : > { %v3401_v19 = vmul.f32 %v3991_v26, %v3400_v39  ;;  %3992 = vrsqrt.f32 %v3380_v24  ;;  %vm3412_vm6 = vweird.f32 %v3380_v24 }
 0x597   : > { %v3405_v60 = vsel %vm3404_vm4, %v3991_v26, %v3401_v19 }
 0x598   : > { %v3467_v25 = vmul.f32 %v3405_v60, %v6757_v13  ;;  %v3357_v3 = vpop.xlane.xlu0 %3356 }
 0x599   : > { %v3373_v38 = vmul.f32 %v3357_v3, %v7036_v34 }
 0x59a   : > { %v3478_v62 = vmul.f32 %v6805_v9, %v3467_v25 }
 0x59b   : > { %v3993_v52 = vpop.eup %3992  ;;  %v3381_v27 = vadd.f32 1e-06, %v3373_v38 }
 0x59c   : > { %v3489_v46 = vadd.f32 %v6813_v2, %v3478_v62  ;;  %v3407_v22 = vmul.f32 %v3993_v52, %v3380_v24  ;;  %vm3413_vm5 = vweird.f32 %v3993_v52 }
 0x59d   : > { %3994 = vrsqrt.f32 %v3381_v27  ;;  %vm3414_vm9 = vmor %vm3412_vm6, %vm3413_vm5  ;;  %vm3422_vm8 = vweird.f32 %v3381_v27 }
 0x59e   : > { %v3505_v15 = vadd.f32 %v3497_v18, %v3489_v46  ;;  %v3408_v36 = vmul.f32 %v3993_v52, %v3407_v22 }
 0x5a0   : > { %3513 = vst.msk [vmem:[%s6822_s5 + $0x8] sm:$0xff] %vm1006_vm0, %v3505_v15  ;;  %v3409_v63 = vmul.f32 0.5, %v3408_v36 }
 0x5a1   : > { %v3360_v7 = vpop.xlane.xlu1 %3359 }
 0x5a2   : > { %v3374_v13 = vmul.f32 %v3360_v7, %v7036_v34  ;;  %v3410_v33 = vsub.f32 1.5, %v3409_v63 }
 0x5a3   : > { %v3995_v21 = vpop.eup %3994 }
 0x5a4   : > { %v3382_v31 = vadd.f32 1e-06, %v3374_v13  ;;  %v3411_v53 = vmul.f32 %v3993_v52, %v3410_v33  ;;  %v3417_v28 = vmul.f32 %v3995_v21, %v3381_v27  ;;  %vm3423_vm10 = vweird.f32 %v3995_v21 }
 0x5a5   : > { %vm3424_vm11 = vmor %vm3422_vm8, %vm3423_vm10 }
 0x5a6   : > { %3996 = vrsqrt.f32 %v3382_v31  ;;  %v3415_v6 = vsel %vm3414_vm9, %v3993_v52, %v3411_v53  ;;  %v3418_v5 = vmul.f32 %v3995_v21, %v3417_v28  ;;  %vm3432_vm15 = vweird.f32 %v3382_v31 }
 0x5a7   : > { %v3468_v11 = vmul.f32 %v3415_v6, %v6765_v40 }
 0x5a8   : > { %v3419_v23 = vmul.f32 0.5, %v3418_v5 }
 0x5a9   : > { %v3479_v0 = vmul.f32 %v6805_v9, %v3468_v11 }
 0x5aa   : > { %v3363_v50 = vpop.xlane.xlu2 %3362  ;;  %v3420_v49 = vsub.f32 1.5, %v3419_v23 }
 0x5ab   : > { %v3375_v56 = vmul.f32 %v3363_v50, %v7036_v34  ;;  %v3490_v42 = vadd.f32 %v6813_v2, %v3479_v0 }
 0x5ac   : > { %v3997_v26 = vpop.eup %3996  ;;  %v3421_v44 = vmul.f32 %v3995_v21, %v3420_v49 }
 0x5ad   : > { %v3383_v45 = vadd.f32 1e-06, %v3375_v56  ;;  %v3427_v1 = vmul.f32 %v3997_v26, %v3382_v31  ;;  %v3506_v48 = vadd.f32 %v6716_v35, %v3490_v42  ;;  %vm3433_vm13 = vweird.f32 %v3997_v26 }
 0x5ae   : > { %v3425_v40 = vsel %vm3424_vm11, %v3995_v21, %v3421_v44  ;;  %vm3434_vm7 = vmor %vm3432_vm15, %vm3433_vm13 }
 0x5af   : > { %3998 = vrsqrt.f32 %v3383_v45  ;;  %v3428_v20 = vmul.f32 %v3997_v26, %v3427_v1  ;;  %3514 = vst.msk [vmem:[%s6822_s5 + $0x10] sm:$0xff] %vm1006_vm0, %v3506_v48  ;;  %v3469_v32 = vmul.f32 %v3425_v40, %v6771_v37  ;;  %vm3442_vm14 = vweird.f32 %v3383_v45 }
 0x5b1   : > { %v3429_v57 = vmul.f32 0.5, %v3428_v20  ;;  %v3480_v29 = vmul.f32 %v6805_v9, %v3469_v32 }
 0x5b3   : > { %v3430_v54 = vsub.f32 1.5, %v3429_v57  ;;  %v3491_v41 = vadd.f32 %v6813_v2, %v3480_v29 }
 0x5b5   : > { %v3999_v14 = vpop.eup %3998  ;;  %v3431_v39 = vmul.f32 %v3997_v26, %v3430_v54  ;;  %v3507_v43 = vadd.f32 %v6721_v47, %v3491_v41 }
 0x5b6   : > { %v3437_v35 = vmul.f32 %v3999_v14, %v3383_v45  ;;  %vm3443_vm2 = vweird.f32 %v3999_v14 }
 0x5b7   : > { %v3435_v24 = vsel %vm3434_vm7, %v3997_v26, %v3431_v39  ;;  %3515 = vst.msk [vmem:[%s6822_s5 + $0x18] sm:$0xff] %vm1006_vm0, %v3507_v43  ;;  %vm3444_vm12 = vmor %vm3442_vm14, %vm3443_vm2 }
 0x5b8   : > { %v3438_v37 = vmul.f32 %v3999_v14, %v3437_v35  ;;  %v3470_v16 = vmul.f32 %v3435_v24, %v6777_v59 }
 0x5ba   : > { %v3439_v60 = vmul.f32 0.5, %v3438_v37  ;;  %v3481_v8 = vmul.f32 %v6805_v9, %v3470_v16 }
 0x5bc   : > { %v3366_v55 = vpop.xlane.xlu0 %3365  ;;  %v3440_v25 = vsub.f32 1.5, %v3439_v60  ;;  %v3492_v3 = vadd.f32 %v6813_v2, %v3481_v8 }
 0x5bd   : > { %v3376_v19 = vmul.f32 %v3366_v55, %v7036_v34 }
 0x5be   : > { %v3441_v47 = vmul.f32 %v3999_v14, %v3440_v25  ;;  %v3508_v62 = vadd.f32 %v6726_v61, %v3492_v3 }
 0x5bf   : > { %v3384_v4 = vadd.f32 1e-06, %v3376_v19 }
 0x5c0   : > { %v3445_v18 = vsel %vm3444_vm12, %v3999_v14, %v3441_v47  ;;  %3516 = vst.msk [vmem:[%s6822_s5 + $0x20] sm:$0xff] %vm1006_vm0, %v3508_v62 }
 0x5c1   : > { %4000 = vrsqrt.f32 %v3384_v4  ;;  %v3471_v59 = vmul.f32 %v3445_v18, %v6783_v58  ;;  %vm3452_vm3 = vweird.f32 %v3384_v4 }
 0x5c3   : > { %v3482_v52 = vmul.f32 %v6805_v9, %v3471_v59 }
 0x5c5   : > { %v3493_v22 = vadd.f32 %v6813_v2, %v3482_v52 }
 0x5c7   : > { %v4001_v38 = vpop.eup %4000  ;;  %v3509_v36 = vadd.f32 %v6633_v12, %v3493_v22 }
 0x5c8   : > { %v3447_v46 = vmul.f32 %v4001_v38, %v3384_v4  ;;  %vm3453_vm1 = vweird.f32 %v4001_v38 }
 0x5c9   : > { %3517 = vst.msk [vmem:[%s6822_s5 + $0x28] sm:$0xff] %vm1006_vm0, %v3509_v36  ;;  %vm3454_vm4 = vmor %vm3452_vm3, %vm3453_vm1 }
 0x5ca   : > { %v3448_v27 = vmul.f32 %v4001_v38, %v3447_v46 }
 0x5cc   : > { %v3449_v15 = vmul.f32 0.5, %v3448_v27 }
 0x5ce   : > { %v3450_v63 = vsub.f32 1.5, %v3449_v15 }
 0x5d0   : > { %v3451_v61 = vmul.f32 %v4001_v38, %v3450_v63 }
 0x5d2   : > { %v3455_v7 = vsel %vm3454_vm4, %v4001_v38, %v3451_v61 }
 0x5d3   : > { %v3472_v58 = vmul.f32 %v3455_v7, %v6789_v30 }
 0x5d5   : > { %v3483_v13 = vmul.f32 %v6805_v9, %v3472_v58 }
 0x5d7   : > { %v3494_v33 = vadd.f32 %v6813_v2, %v3483_v13 }
 0x5d9   : > { %v3510_v21 = vadd.f32 %v6653_v51, %v3494_v33 }
 0x5db   : > { %3518 = vst.msk [vmem:[%s6822_s5 + $0x30] sm:$0xff] %vm1006_vm0, %v3510_v21 }
 0x5e3   : > { %v3369_v31 = vpop.xlane.xlu1 %3368 }
 0x5e4   : > { %v3377_v12 = vmul.f32 %v3369_v31, %v7036_v34 }
 0x5e6   : > { %v3385_v53 = vadd.f32 1e-06, %v3377_v12 }
 0x5e8   : > { %4002 = vrsqrt.f32 %v3385_v53  ;;  %vm3462_vm6 = vweird.f32 %v3385_v53 }
 0x5ee   : > { %v4003_v28 = vpop.eup %4002 }
 0x5ef   : > { %v3457_v6 = vmul.f32 %v4003_v28, %v3385_v53  ;;  %vm3463_vm5 = vweird.f32 %v4003_v28 }
 0x5f0   : > { %vm3464_vm9 = vmor %vm3462_vm6, %vm3463_vm5 }
 0x5f1   : > { %v3458_v5 = vmul.f32 %v4003_v28, %v3457_v6 }
 0x5f3   : > { %v3459_v11 = vmul.f32 0.5, %v3458_v5 }
 0x5f5   : > { %v3460_v23 = vsub.f32 1.5, %v3459_v11 }
 0x5f7   : > { %v3461_v30 = vmul.f32 %v4003_v28, %v3460_v23 }
 0x5f9   : > { %v3465_v50 = vsel %vm3464_vm9, %v4003_v28, %v3461_v30 }
 0x5fa   : > { %v3473_v51 = vmul.f32 %v3465_v50, %v6797_v10 }
 0x5fc   : > { %v3484_v0 = vmul.f32 %v6805_v9, %v3473_v51 }
 0x5fe   : > { %v3495_v56 = vadd.f32 %v6813_v2, %v3484_v0 }
 0x600   : > { %v3511_v34 = vadd.f32 %v6680_v17, %v3495_v56 }
 0x602   : > { %3519 = vst.msk [vmem:[%s6822_s5 + $0x38] sm:$0xff] %vm1006_vm0, %v3511_v34 }
 0x603 PF: > { %p26_p9 = scmp.ge.s32.totalorder %s4161_s1, 4   ;;  %s7045_s0 = smov %s4037_s30 }
 0x604   : > { %s7046_s30 = smov %s4170_s23  ;;  %s7047_s20 = smov %s4161_s1 }
 0x605   :  { %28 = sbr.rel (!%p26_p9) target bundleno = 9 (0x9), region = 181 }

</bundles_post_ra>
